<compile_context>
chip_gen: v7x
topology: tpu7x:2x2x1
jax: 0.10.0
libtpu: 0.0.40
codegen_flags: <defaults>
</compile_context>

<pallas_src>
import functools
import math

import jax
import jax.numpy as jnp
from jax.experimental import pallas as pl
from jax.experimental.pallas import tpu as pltpu

FEATURE_DIM = 64
NUM_FILTERS = 32
NUM_ATTN_LAYERS = 2
NUM_HEADS = 1            # module instantiates MTM(..., num_heads=1, ...)
MLP_RATIO = 2.0
LN_EPS = 1e-5
CONV_K = 3
CONV_STRIDE = 2
OUT_HW = 4                         # conv trunk output spatial (Linear(512,...) => 32*4*4)
NUM_PLANES = CONV_K * CONV_K       # conv2 kernel taps
NUM_SITES = OUT_HW * OUT_HW        # conv2 output spatial sites

_VMEM = pl.BlockSpec(memory_space=pltpu.MemorySpace.VMEM)


# ------------------------------- fused kernel --------------------------------

def _encoder_kernel(p1_ref, w1_ref, b1_ref, w2_ref, b2_ref, wfc_ref, bfc_ref,
                    lng_ref, lnb_ref, cls_ref, pos_ref, bias_ref,
                    ln1g_ref, ln1b_ref, wqkv_ref, wproj_ref, bproj_ref,
                    ln2g_ref, ln2b_ref, wfc1_ref, bfc1_ref, wfc2_ref, bfc2_ref,
                    out_ref, seq_ref, *, batch, frames, feat, layers):
    f32, bf16 = jnp.float32, jnp.bfloat16
    B, T, D, L = batch, frames, feat, layers
    BT = B * T
    N = T + 1
    SB = NUM_SITES * BT            # rows per conv2-tap plane (multiple of 16)

    def ln(v, g, b):
        mu = jnp.mean(v, axis=-1, keepdims=True)
        var = jnp.mean(jnp.square(v - mu), axis=-1, keepdims=True)
        return (v - mu) * jax.lax.rsqrt(var + LN_EPS) * g + b

    # --- conv trunk.  conv1 is evaluated for every (conv2-tap, conv2-site,
    # frame) row with ONE big matmul; conv2 then accumulates tap-by-tap over
    # sublane-aligned 128-row slices of the relu'd conv1 activations.
    x1 = jnp.dot(p1_ref[...], w1_ref[...], preferred_element_type=f32)
    x1 = jnp.maximum(x1 + b1_ref[...], 0.0).astype(bf16)        # (9*SB, 32)
    acc2 = jnp.dot(x1[0:SB, :], w2_ref[0], preferred_element_type=f32)
    for p in range(1, NUM_PLANES):
        acc2 = acc2 + jnp.dot(x1[p * SB:(p + 1) * SB, :], w2_ref[p],
                              preferred_element_type=f32)
    c2 = jnp.maximum(acc2 + b2_ref[...], 0.0)                   # (SB, 32) f32

    # --- fc (Linear(512, D)) as 16 per-site (BT,32)@(32,D) partial matmuls,
    # matching torch's NCHW .view(N, -1) flatten via the permuted fc weights.
    h_fc = jnp.dot(c2[0:BT, :].astype(bf16), wfc_ref[0],
                   preferred_element_type=f32)
    for s in range(1, NUM_SITES):
        h_fc = h_fc + jnp.dot(c2[s * BT:(s + 1) * BT, :].astype(bf16),
                              wfc_ref[s], preferred_element_type=f32)
    h_fc = h_fc + bfc_ref[...]                                  # (BT, D)
    h_norm = ln(h_fc, lng_ref[...], lnb_ref[...])

    # --- token sequence: [cls | frame features] per batch element, + pos emb.
    for b in range(B):
        seq_ref[pl.ds(b * N, 1), :] = cls_ref[...]
        seq_ref[pl.ds(b * N + 1, T), :] = h_norm[b * T:(b + 1) * T, :]
    x = seq_ref[...] + pos_ref[...]                             # (B*N, D) f32

    # --- pre-norm transformer blocks (num_heads=1, mlp_ratio=2, exact GELU,
    #     qkv_bias=False, init_values=0.0 -> no LayerScale, no dropout).
    scale = (D // NUM_HEADS) ** -0.5
    attn_bias = bias_ref[...]                                   # block-diag 0 / -1e30
    inv_sqrt2 = 1.0 / math.sqrt(2.0)
    for l in range(L):
        y = ln(x, ln1g_ref[l], ln1b_ref[l])
        qkv = jnp.dot(y.astype(bf16), wqkv_ref[l], preferred_element_type=f32)
        q = qkv[:, 0:D] * scale
        k = qkv[:, D:2 * D]
        v = qkv[:, 2 * D:3 * D]
        scores = jnp.dot(q, k.T, preferred_element_type=f32) + attn_bias
        scores = scores - jnp.max(scores, axis=-1, keepdims=True)
        a = jnp.exp(scores)
        a = a * pl.reciprocal(jnp.sum(a, axis=-1, keepdims=True), approx=True)
        o = jnp.dot(a.astype(bf16), v.astype(bf16), preferred_element_type=f32)
        o = jnp.dot(o.astype(bf16), wproj_ref[l], preferred_element_type=f32)
        x = x + o + bproj_ref[l]
        y2 = ln(x, ln2g_ref[l], ln2b_ref[l])
        h1 = jnp.dot(y2.astype(bf16), wfc1_ref[l], preferred_element_type=f32)
        h1 = h1 + bfc1_ref[l]
        h1 = 0.5 * h1 * (1.0 + jax.lax.erf(h1 * inv_sqrt2))     # exact GELU
        h2 = jnp.dot(h1.astype(bf16), wfc2_ref[l], preferred_element_type=f32)
        x = x + h2 + bfc2_ref[l]

    # --- cls-token readout: rows b*N of the flat token matrix.
    for b in range(B):
        out_ref[pl.ds(b, 1), :] = x[b * N:b * N + 1, :]


# ------------------------------ parameter prep --------------------------------

def sinusoidal_position_embedding(seq_len, d_model):
    # TODO(synk): the reference PositionalEmbedding class body is not provided;
    # a standard fixed sinusoidal table is assumed.
    pos = jnp.arange(seq_len, dtype=jnp.float32)[:, None]
    div = jnp.exp(jnp.arange(0, d_model, 2, dtype=jnp.float32)
                  * (-math.log(10000.0) / d_model))
    pe = jnp.zeros((seq_len, d_model), jnp.float32)
    pe = pe.at[:, 0::2].set(jnp.sin(pos * div))
    pe = pe.at[:, 1::2].set(jnp.cos(pos * div))
    return pe


def init_params(key, obs_channels, feature_dim):
    """PyTorch-layout parameters (same conventions as the nn.Module)."""
    keys = iter(jax.random.split(key, 64))
    std = 0.02

    def nrm(shape):
        return std * jax.random.normal(next(keys), shape, jnp.float32)

    hidden = int(MLP_RATIO * feature_dim)
    p = {
        'conv1_w': nrm((NUM_FILTERS, obs_channels, CONV_K, CONV_K)),
        'conv1_b': jnp.zeros((NUM_FILTERS,), jnp.float32),
        'conv2_w': nrm((NUM_FILTERS, NUM_FILTERS, CONV_K, CONV_K)),
        'conv2_b': jnp.zeros((NUM_FILTERS,), jnp.float32),
        'fc_w': nrm((feature_dim, NUM_FILTERS * NUM_SITES)),   # Linear(512, feat)
        'fc_b': jnp.zeros((feature_dim,), jnp.float32),
        'ln_g': jnp.ones((feature_dim,), jnp.float32),
        'ln_b': jnp.zeros((feature_dim,), jnp.float32),
        'cls_token': nrm((1, 1, feature_dim)),
        'blocks': [],
    }
    for _ in range(NUM_ATTN_LAYERS):
        p['blocks'].append({
            'ln1_g': jnp.ones((feature_dim,), jnp.float32),
            'ln1_b': jnp.zeros((feature_dim,), jnp.float32),
            'w_q': nrm((feature_dim, feature_dim)),
            'w_k': nrm((feature_dim, feature_dim)),
            'w_v': nrm((feature_dim, feature_dim)),
            'w_proj': nrm((feature_dim, feature_dim)),
            'b_proj': jnp.zeros((feature_dim,), jnp.float32),
            'ln2_g': jnp.ones((feature_dim,), jnp.float32),
            'ln2_b': jnp.zeros((feature_dim,), jnp.float32),
            'w_fc1': nrm((feature_dim, hidden)),
            'b_fc1': jnp.zeros((hidden,), jnp.float32),
            'w_fc2': nrm((hidden, feature_dim)),
            'b_fc2': jnp.zeros((feature_dim,), jnp.float32),
        })
    return p


def prepare_params(params, batch, num_frames):
    """One-time weight-layout permutation / bf16 cast / pos-emb + mask prep."""
    feat = params['fc_w'].shape[0]
    hidden = int(MLP_RATIO * feat)
    L = len(params['blocks'])
    B, T = batch, num_frames
    N = T + 1
    bf16 = jnp.bfloat16

    def stk(name):
        return jnp.stack([blk[name] for blk in params['blocks']], axis=0)

    # conv1: 1/255 folded in; columns ordered (cin, kh, kw) to match patches.
    w1 = (params['conv1_w'] / 255.0).reshape(NUM_FILTERS, -1).T.astype(bf16)
    # conv2: per-tap (cin, cout) matrices, tap index p = kh*3 + kw.
    w2 = params['conv2_w'].transpose(2, 3, 1, 0)
    w2 = w2.reshape(NUM_PLANES, NUM_FILTERS, NUM_FILTERS).astype(bf16)
    # fc: per-site (cin, feat) matrices matching torch's (C,H,W) flatten order.
    wfc = params['fc_w'].reshape(feat, NUM_FILTERS, NUM_SITES)
    wfc = wfc.transpose(2, 1, 0).astype(bf16)

    pos = jnp.tile(sinusoidal_position_embedding(N, feat), (B, 1))   # (B*N, feat)
    ids = jnp.repeat(jnp.arange(B), N)
    attn_bias = jnp.where(ids[:, None] == ids[None, :], 0.0, -1e30)
    attn_bias = attn_bias.astype(jnp.float32)

    return {
        'w1': w1, 'b1': params['conv1_b'].reshape(1, NUM_FILTERS),
        'w2': w2, 'b2': params['conv2_b'].reshape(1, NUM_FILTERS),
        'wfc': wfc, 'bfc': params['fc_b'].reshape(1, feat),
        'lng': params['ln_g'].reshape(1, feat),
        'lnb': params['ln_b'].reshape(1, feat),
        'cls': params['cls_token'].reshape(1, feat),
        'pos': pos,
        'attn_bias': attn_bias,
        'ln1g': stk('ln1_g').reshape(L, 1, feat),
        'ln1b': stk('ln1_b').reshape(L, 1, feat),
        'wqkv': jnp.concatenate([stk('w_q'), stk('w_k'), stk('w_v')],
                                axis=-1).astype(bf16),
        'wproj': stk('w_proj').astype(bf16),
        'bproj': stk('b_proj').reshape(L, 1, feat),
        'ln2g': stk('ln2_g').reshape(L, 1, feat),
        'ln2b': stk('ln2_b').reshape(L, 1, feat),
        'wfc1': stk('w_fc1').astype(bf16),
        'bfc1': stk('b_fc1').reshape(L, 1, hidden),
        'wfc2': stk('w_fc2').astype(bf16),
        'bfc2': stk('b_fc2').reshape(L, 1, feat),
    }


# --------------------------------- forward ------------------------------------

def _conv_patch_planes(x):
    """x: (BT, C, S, S) pixels -> (9*NUM_SITES*BT, C*9) conv1 input patches.

    Row = (conv2_tap, conv2_site, frame); column = (cin, conv1_kh, conv1_kw).
    Gathered once from the raw input so both convs run as VMEM-resident
    matmuls with no inter-conv relayout; the leading row-group axis (9 conv2
    taps of NUM_SITES*BT rows each) lets conv1 run as a single MXU pass.
    """
    BT, C, _, _ = x.shape
    site = jnp.arange(OUT_HW)
    tap = jnp.arange(CONV_K)
    # input index = 2*(2*site + conv2_tap) + conv1_tap   (both convs stride 2)
    rows = 4 * site[:, None, None] + 2 * tap[None, :, None] + tap[None, None, :]
    cols = rows  # same formula along width
    patches = x[:, :, rows[:, :, :, None, None, None],
                cols[None, None, None, :, :, :]]
    # (BT, C, h2, ki, kh, w2, kj, kw) -> (ki, kj, h2, w2, BT, C, kh, kw)
    patches = patches.transpose(3, 6, 2, 5, 0, 1, 4, 7)
    return patches.reshape(NUM_PLANES * NUM_SITES * BT, C * CONV_K * CONV_K)


def pixel_encoder_forward(obs, kp):
    """obs: (B, F, S, T*S) float32 pixels in [0, 255] -> (B, feat)."""
    B, F, S, ST = obs.shape
    T = ST // S
    N = T + 1
    BT = B * T
    feat = kp['bfc'].shape[-1]
    L = kp['wqkv'].shape[0]
    assert S >= 4 * (OUT_HW - 1) + 2 * (CONV_K - 1) + CONV_K, "spatial too small"

    # frame unstack: (B, F, S, T*S) -> (B*T, F, S, S), as in the PyTorch forward.
    x = obs.reshape(B, F, S, T, S).transpose(0, 3, 1, 2, 4).reshape(BT, F, S, S)
    p1 = _conv_patch_planes(x).astype(jnp.bfloat16)

    kern = functools.partial(_encoder_kernel, batch=B, frames=T,
                             feat=feat, layers=L)
    args = (p1, kp['w1'], kp['b1'], kp['w2'], kp['b2'], kp['wfc'], kp['bfc'],
            kp['lng'], kp['lnb'], kp['cls'], kp['pos'], kp['attn_bias'],
            kp['ln1g'], kp['ln1b'], kp['wqkv'], kp['wproj'], kp['bproj'],
            kp['ln2g'], kp['ln2b'], kp['wfc1'], kp['bfc1'],
            kp['wfc2'], kp['bfc2'])
    return pl.pallas_call(
        kern,
        out_shape=jax.ShapeDtypeStruct((B, feat), jnp.float32),
        in_specs=[_VMEM] * len(args),
        out_specs=_VMEM,
        scratch_shapes=[pltpu.VMEM((B * N, feat), jnp.float32)],
    )(*args)


if __name__ == "__main__":
    key = jax.random.PRNGKey(0)
    k_obs, k_par = jax.random.split(key)

    # S=20 -> conv trunk yields 32*4*4 = 512 features, matching Linear(512, feat).
    B, F, S, T = 2, 3, 20, 4
    obs = 255.0 * jax.random.uniform(k_obs, (B, F, S, T * S), jnp.float32)

    params = init_params(k_par, F, FEATURE_DIM)
    kparams = prepare_params(params, batch=B, num_frames=T)

    fwd = jax.jit(pixel_encoder_forward)
    out = fwd(obs, kparams)
    jax.block_until_ready(out)
    assert out.shape == (B, FEATURE_DIM)
    assert bool(jnp.all(jnp.isfinite(out)))
    print("KERNEL_OK")
</pallas_src>

<mosaic_0001>
module attributes {stable_mosaic.version = 11 : i64} {
  func.func @_encoder_kernel(%arg0: memref<1152x27xbf16, #tpu.memory_space<vmem>>, %arg1: memref<27x32xbf16, #tpu.memory_space<vmem>>, %arg2: memref<1x32xf32, #tpu.memory_space<vmem>>, %arg3: memref<9x32x32xbf16, #tpu.memory_space<vmem>>, %arg4: memref<1x32xf32, #tpu.memory_space<vmem>>, %arg5: memref<16x32x64xbf16, #tpu.memory_space<vmem>>, %arg6: memref<1x64xf32, #tpu.memory_space<vmem>>, %arg7: memref<1x64xf32, #tpu.memory_space<vmem>>, %arg8: memref<1x64xf32, #tpu.memory_space<vmem>>, %arg9: memref<1x64xf32, #tpu.memory_space<vmem>>, %arg10: memref<10x64xf32, #tpu.memory_space<vmem>>, %arg11: memref<10x10xf32, #tpu.memory_space<vmem>>, %arg12: memref<2x1x64xf32, #tpu.memory_space<vmem>>, %arg13: memref<2x1x64xf32, #tpu.memory_space<vmem>>, %arg14: memref<2x64x192xbf16, #tpu.memory_space<vmem>>, %arg15: memref<2x64x64xbf16, #tpu.memory_space<vmem>>, %arg16: memref<2x1x64xf32, #tpu.memory_space<vmem>>, %arg17: memref<2x1x64xf32, #tpu.memory_space<vmem>>, %arg18: memref<2x1x64xf32, #tpu.memory_space<vmem>>, %arg19: memref<2x64x128xbf16, #tpu.memory_space<vmem>>, %arg20: memref<2x1x128xf32, #tpu.memory_space<vmem>>, %arg21: memref<2x128x64xbf16, #tpu.memory_space<vmem>>, %arg22: memref<2x1x64xf32, #tpu.memory_space<vmem>>, %arg23: memref<2x64xf32, #tpu.memory_space<vmem>>, %arg24: memref<10x64xf32, #tpu.memory_space<vmem>>) attributes {dimension_semantics = [], scalar_prefetch = 0 : i64, scratch_operands = 1 : i64, tpu.core_type = #tpu.core_type<tc>} {
    %c0 = arith.constant 0 : index
    %c0_0 = arith.constant 0 : index
    %0 = vector.load %arg0[%c0, %c0_0] : memref<1152x27xbf16, #tpu.memory_space<vmem>>, vector<1152x27xbf16>
    %c0_1 = arith.constant 0 : index
    %c0_2 = arith.constant 0 : index
    %1 = vector.load %arg1[%c0_1, %c0_2] : memref<27x32xbf16, #tpu.memory_space<vmem>>, vector<27x32xbf16>
    %cst = arith.constant dense<0.000000e+00> : vector<1152x32xf32>
    %2 = tpu.matmul %0, %1, %cst {dimension_numbers = #tpu.dot_dimension_numbers<[1], [0], [0], [1], [0, 0, 1, 1], [], []>} : vector<1152x27xbf16>, vector<27x32xbf16>, vector<1152x32xf32> -> vector<1152x32xf32>
    %c0_3 = arith.constant 0 : index
    %c0_4 = arith.constant 0 : index
    %3 = vector.load %arg2[%c0_3, %c0_4] : memref<1x32xf32, #tpu.memory_space<vmem>>, vector<1x32xf32>
    %4 = vector.broadcast %3 : vector<1x32xf32> to vector<1152x32xf32>
    %5 = arith.addf %2, %4 : vector<1152x32xf32>
    %cst_5 = arith.constant 0.000000e+00 : f32
    %6 = vector.broadcast %cst_5 : f32 to vector<1152x32xf32>
    %7 = arith.maximumf %5, %6 : vector<1152x32xf32>
    %8 = arith.truncf %7 : vector<1152x32xf32> to vector<1152x32xbf16>
    %9 = vector.extract_strided_slice %8 {offsets = [0, 0], sizes = [128, 32], strides = [1, 1]} : vector<1152x32xbf16> to vector<128x32xbf16>
    %c0_6 = arith.constant 0 : index
    %c0_7 = arith.constant 0 : index
    %c0_8 = arith.constant 0 : index
    %10 = vector.load %arg3[%c0_6, %c0_7, %c0_8] : memref<9x32x32xbf16, #tpu.memory_space<vmem>>, vector<1x32x32xbf16>
    %11 = vector.shape_cast %10 : vector<1x32x32xbf16> to vector<32x32xbf16>
    %cst_9 = arith.constant dense<0.000000e+00> : vector<128x32xf32>
    %12 = tpu.matmul %9, %11, %cst_9 {dimension_numbers = #tpu.dot_dimension_numbers<[1], [0], [0], [1], [0, 0, 1, 1], [], []>} : vector<128x32xbf16>, vector<32x32xbf16>, vector<128x32xf32> -> vector<128x32xf32>
    %13 = vector.extract_strided_slice %8 {offsets = [128, 0], sizes = [128, 32], strides = [1, 1]} : vector<1152x32xbf16> to vector<128x32xbf16>
    %c1 = arith.constant 1 : index
    %c0_10 = arith.constant 0 : index
    %c0_11 = arith.constant 0 : index
    %14 = vector.load %arg3[%c1, %c0_10, %c0_11] : memref<9x32x32xbf16, #tpu.memory_space<vmem>>, vector<1x32x32xbf16>
    %15 = vector.shape_cast %14 : vector<1x32x32xbf16> to vector<32x32xbf16>
    %cst_12 = arith.constant dense<0.000000e+00> : vector<128x32xf32>
    %16 = tpu.matmul %13, %15, %cst_12 {dimension_numbers = #tpu.dot_dimension_numbers<[1], [0], [0], [1], [0, 0, 1, 1], [], []>} : vector<128x32xbf16>, vector<32x32xbf16>, vector<128x32xf32> -> vector<128x32xf32>
    %17 = arith.addf %12, %16 : vector<128x32xf32>
    %18 = vector.extract_strided_slice %8 {offsets = [256, 0], sizes = [128, 32], strides = [1, 1]} : vector<1152x32xbf16> to vector<128x32xbf16>
    %c2 = arith.constant 2 : index
    %c0_13 = arith.constant 0 : index
    %c0_14 = arith.constant 0 : index
    %19 = vector.load %arg3[%c2, %c0_13, %c0_14] : memref<9x32x32xbf16, #tpu.memory_space<vmem>>, vector<1x32x32xbf16>
    %20 = vector.shape_cast %19 : vector<1x32x32xbf16> to vector<32x32xbf16>
    %cst_15 = arith.constant dense<0.000000e+00> : vector<128x32xf32>
    %21 = tpu.matmul %18, %20, %cst_15 {dimension_numbers = #tpu.dot_dimension_numbers<[1], [0], [0], [1], [0, 0, 1, 1], [], []>} : vector<128x32xbf16>, vector<32x32xbf16>, vector<128x32xf32> -> vector<128x32xf32>
    %22 = arith.addf %17, %21 : vector<128x32xf32>
    %23 = vector.extract_strided_slice %8 {offsets = [384, 0], sizes = [128, 32], strides = [1, 1]} : vector<1152x32xbf16> to vector<128x32xbf16>
    %c3 = arith.constant 3 : index
    %c0_16 = arith.constant 0 : index
    %c0_17 = arith.constant 0 : index
    %24 = vector.load %arg3[%c3, %c0_16, %c0_17] : memref<9x32x32xbf16, #tpu.memory_space<vmem>>, vector<1x32x32xbf16>
    %25 = vector.shape_cast %24 : vector<1x32x32xbf16> to vector<32x32xbf16>
    %cst_18 = arith.constant dense<0.000000e+00> : vector<128x32xf32>
    %26 = tpu.matmul %23, %25, %cst_18 {dimension_numbers = #tpu.dot_dimension_numbers<[1], [0], [0], [1], [0, 0, 1, 1], [], []>} : vector<128x32xbf16>, vector<32x32xbf16>, vector<128x32xf32> -> vector<128x32xf32>
    %27 = arith.addf %22, %26 : vector<128x32xf32>
    %28 = vector.extract_strided_slice %8 {offsets = [512, 0], sizes = [128, 32], strides = [1, 1]} : vector<1152x32xbf16> to vector<128x32xbf16>
    %c4 = arith.constant 4 : index
    %c0_19 = arith.constant 0 : index
    %c0_20 = arith.constant 0 : index
    %29 = vector.load %arg3[%c4, %c0_19, %c0_20] : memref<9x32x32xbf16, #tpu.memory_space<vmem>>, vector<1x32x32xbf16>
    %30 = vector.shape_cast %29 : vector<1x32x32xbf16> to vector<32x32xbf16>
    %cst_21 = arith.constant dense<0.000000e+00> : vector<128x32xf32>
    %31 = tpu.matmul %28, %30, %cst_21 {dimension_numbers = #tpu.dot_dimension_numbers<[1], [0], [0], [1], [0, 0, 1, 1], [], []>} : vector<128x32xbf16>, vector<32x32xbf16>, vector<128x32xf32> -> vector<128x32xf32>
    %32 = arith.addf %27, %31 : vector<128x32xf32>
    %33 = vector.extract_strided_slice %8 {offsets = [640, 0], sizes = [128, 32], strides = [1, 1]} : vector<1152x32xbf16> to vector<128x32xbf16>
    %c5 = arith.constant 5 : index
    %c0_22 = arith.constant 0 : index
    %c0_23 = arith.constant 0 : index
    %34 = vector.load %arg3[%c5, %c0_22, %c0_23] : memref<9x32x32xbf16, #tpu.memory_space<vmem>>, vector<1x32x32xbf16>
    %35 = vector.shape_cast %34 : vector<1x32x32xbf16> to vector<32x32xbf16>
    %cst_24 = arith.constant dense<0.000000e+00> : vector<128x32xf32>
    %36 = tpu.matmul %33, %35, %cst_24 {dimension_numbers = #tpu.dot_dimension_numbers<[1], [0], [0], [1], [0, 0, 1, 1], [], []>} : vector<128x32xbf16>, vector<32x32xbf16>, vector<128x32xf32> -> vector<128x32xf32>
    %37 = arith.addf %32, %36 : vector<128x32xf32>
    %38 = vector.extract_strided_slice %8 {offsets = [768, 0], sizes = [128, 32], strides = [1, 1]} : vector<1152x32xbf16> to vector<128x32xbf16>
    %c6 = arith.constant 6 : index
    %c0_25 = arith.constant 0 : index
    %c0_26 = arith.constant 0 : index
    %39 = vector.load %arg3[%c6, %c0_25, %c0_26] : memref<9x32x32xbf16, #tpu.memory_space<vmem>>, vector<1x32x32xbf16>
    %40 = vector.shape_cast %39 : vector<1x32x32xbf16> to vector<32x32xbf16>
    %cst_27 = arith.constant dense<0.000000e+00> : vector<128x32xf32>
    %41 = tpu.matmul %38, %40, %cst_27 {dimension_numbers = #tpu.dot_dimension_numbers<[1], [0], [0], [1], [0, 0, 1, 1], [], []>} : vector<128x32xbf16>, vector<32x32xbf16>, vector<128x32xf32> -> vector<128x32xf32>
    %42 = arith.addf %37, %41 : vector<128x32xf32>
    %43 = vector.extract_strided_slice %8 {offsets = [896, 0], sizes = [128, 32], strides = [1, 1]} : vector<1152x32xbf16> to vector<128x32xbf16>
    %c7 = arith.constant 7 : index
    %c0_28 = arith.constant 0 : index
    %c0_29 = arith.constant 0 : index
    %44 = vector.load %arg3[%c7, %c0_28, %c0_29] : memref<9x32x32xbf16, #tpu.memory_space<vmem>>, vector<1x32x32xbf16>
    %45 = vector.shape_cast %44 : vector<1x32x32xbf16> to vector<32x32xbf16>
    %cst_30 = arith.constant dense<0.000000e+00> : vector<128x32xf32>
    %46 = tpu.matmul %43, %45, %cst_30 {dimension_numbers = #tpu.dot_dimension_numbers<[1], [0], [0], [1], [0, 0, 1, 1], [], []>} : vector<128x32xbf16>, vector<32x32xbf16>, vector<128x32xf32> -> vector<128x32xf32>
    %47 = arith.addf %42, %46 : vector<128x32xf32>
    %48 = vector.extract_strided_slice %8 {offsets = [1024, 0], sizes = [128, 32], strides = [1, 1]} : vector<1152x32xbf16> to vector<128x32xbf16>
    %c8 = arith.constant 8 : index
    %c0_31 = arith.constant 0 : index
    %c0_32 = arith.constant 0 : index
    %49 = vector.load %arg3[%c8, %c0_31, %c0_32] : memref<9x32x32xbf16, #tpu.memory_space<vmem>>, vector<1x32x32xbf16>
    %50 = vector.shape_cast %49 : vector<1x32x32xbf16> to vector<32x32xbf16>
    %cst_33 = arith.constant dense<0.000000e+00> : vector<128x32xf32>
    %51 = tpu.matmul %48, %50, %cst_33 {dimension_numbers = #tpu.dot_dimension_numbers<[1], [0], [0], [1], [0, 0, 1, 1], [], []>} : vector<128x32xbf16>, vector<32x32xbf16>, vector<128x32xf32> -> vector<128x32xf32>
    %52 = arith.addf %47, %51 : vector<128x32xf32>
    %c0_34 = arith.constant 0 : index
    %c0_35 = arith.constant 0 : index
    %53 = vector.load %arg4[%c0_34, %c0_35] : memref<1x32xf32, #tpu.memory_space<vmem>>, vector<1x32xf32>
    %54 = vector.broadcast %53 : vector<1x32xf32> to vector<128x32xf32>
    %55 = arith.addf %52, %54 : vector<128x32xf32>
    %cst_36 = arith.constant 0.000000e+00 : f32
    %56 = vector.broadcast %cst_36 : f32 to vector<128x32xf32>
    %57 = arith.maximumf %55, %56 : vector<128x32xf32>
    %58 = vector.extract_strided_slice %57 {offsets = [0, 0], sizes = [8, 32], strides = [1, 1]} : vector<128x32xf32> to vector<8x32xf32>
    %59 = arith.truncf %58 : vector<8x32xf32> to vector<8x32xbf16>
    %c0_37 = arith.constant 0 : index
    %c0_38 = arith.constant 0 : index
    %c0_39 = arith.constant 0 : index
    %60 = vector.load %arg5[%c0_37, %c0_38, %c0_39] : memref<16x32x64xbf16, #tpu.memory_space<vmem>>, vector<1x32x64xbf16>
    %61 = vector.shape_cast %60 : vector<1x32x64xbf16> to vector<32x64xbf16>
    %cst_40 = arith.constant dense<0.000000e+00> : vector<8x64xf32>
    %62 = tpu.matmul %59, %61, %cst_40 {dimension_numbers = #tpu.dot_dimension_numbers<[1], [0], [0], [1], [0, 0, 1, 1], [], []>} : vector<8x32xbf16>, vector<32x64xbf16>, vector<8x64xf32> -> vector<8x64xf32>
    %63 = vector.extract_strided_slice %57 {offsets = [8, 0], sizes = [8, 32], strides = [1, 1]} : vector<128x32xf32> to vector<8x32xf32>
    %64 = arith.truncf %63 : vector<8x32xf32> to vector<8x32xbf16>
    %c1_41 = arith.constant 1 : index
    %c0_42 = arith.constant 0 : index
    %c0_43 = arith.constant 0 : index
    %65 = vector.load %arg5[%c1_41, %c0_42, %c0_43] : memref<16x32x64xbf16, #tpu.memory_space<vmem>>, vector<1x32x64xbf16>
    %66 = vector.shape_cast %65 : vector<1x32x64xbf16> to vector<32x64xbf16>
    %cst_44 = arith.constant dense<0.000000e+00> : vector<8x64xf32>
    %67 = tpu.matmul %64, %66, %cst_44 {dimension_numbers = #tpu.dot_dimension_numbers<[1], [0], [0], [1], [0, 0, 1, 1], [], []>} : vector<8x32xbf16>, vector<32x64xbf16>, vector<8x64xf32> -> vector<8x64xf32>
    %68 = arith.addf %62, %67 : vector<8x64xf32>
    %69 = vector.extract_strided_slice %57 {offsets = [16, 0], sizes = [8, 32], strides = [1, 1]} : vector<128x32xf32> to vector<8x32xf32>
    %70 = arith.truncf %69 : vector<8x32xf32> to vector<8x32xbf16>
    %c2_45 = arith.constant 2 : index
    %c0_46 = arith.constant 0 : index
    %c0_47 = arith.constant 0 : index
    %71 = vector.load %arg5[%c2_45, %c0_46, %c0_47] : memref<16x32x64xbf16, #tpu.memory_space<vmem>>, vector<1x32x64xbf16>
    %72 = vector.shape_cast %71 : vector<1x32x64xbf16> to vector<32x64xbf16>
    %cst_48 = arith.constant dense<0.000000e+00> : vector<8x64xf32>
    %73 = tpu.matmul %70, %72, %cst_48 {dimension_numbers = #tpu.dot_dimension_numbers<[1], [0], [0], [1], [0, 0, 1, 1], [], []>} : vector<8x32xbf16>, vector<32x64xbf16>, vector<8x64xf32> -> vector<8x64xf32>
    %74 = arith.addf %68, %73 : vector<8x64xf32>
    %75 = vector.extract_strided_slice %57 {offsets = [24, 0], sizes = [8, 32], strides = [1, 1]} : vector<128x32xf32> to vector<8x32xf32>
    %76 = arith.truncf %75 : vector<8x32xf32> to vector<8x32xbf16>
    %c3_49 = arith.constant 3 : index
    %c0_50 = arith.constant 0 : index
    %c0_51 = arith.constant 0 : index
    %77 = vector.load %arg5[%c3_49, %c0_50, %c0_51] : memref<16x32x64xbf16, #tpu.memory_space<vmem>>, vector<1x32x64xbf16>
    %78 = vector.shape_cast %77 : vector<1x32x64xbf16> to vector<32x64xbf16>
    %cst_52 = arith.constant dense<0.000000e+00> : vector<8x64xf32>
    %79 = tpu.matmul %76, %78, %cst_52 {dimension_numbers = #tpu.dot_dimension_numbers<[1], [0], [0], [1], [0, 0, 1, 1], [], []>} : vector<8x32xbf16>, vector<32x64xbf16>, vector<8x64xf32> -> vector<8x64xf32>
    %80 = arith.addf %74, %79 : vector<8x64xf32>
    %81 = vector.extract_strided_slice %57 {offsets = [32, 0], sizes = [8, 32], strides = [1, 1]} : vector<128x32xf32> to vector<8x32xf32>
    %82 = arith.truncf %81 : vector<8x32xf32> to vector<8x32xbf16>
    %c4_53 = arith.constant 4 : index
    %c0_54 = arith.constant 0 : index
    %c0_55 = arith.constant 0 : index
    %83 = vector.load %arg5[%c4_53, %c0_54, %c0_55] : memref<16x32x64xbf16, #tpu.memory_space<vmem>>, vector<1x32x64xbf16>
    %84 = vector.shape_cast %83 : vector<1x32x64xbf16> to vector<32x64xbf16>
    %cst_56 = arith.constant dense<0.000000e+00> : vector<8x64xf32>
    %85 = tpu.matmul %82, %84, %cst_56 {dimension_numbers = #tpu.dot_dimension_numbers<[1], [0], [0], [1], [0, 0, 1, 1], [], []>} : vector<8x32xbf16>, vector<32x64xbf16>, vector<8x64xf32> -> vector<8x64xf32>
    %86 = arith.addf %80, %85 : vector<8x64xf32>
    %87 = vector.extract_strided_slice %57 {offsets = [40, 0], sizes = [8, 32], strides = [1, 1]} : vector<128x32xf32> to vector<8x32xf32>
    %88 = arith.truncf %87 : vector<8x32xf32> to vector<8x32xbf16>
    %c5_57 = arith.constant 5 : index
    %c0_58 = arith.constant 0 : index
    %c0_59 = arith.constant 0 : index
    %89 = vector.load %arg5[%c5_57, %c0_58, %c0_59] : memref<16x32x64xbf16, #tpu.memory_space<vmem>>, vector<1x32x64xbf16>
    %90 = vector.shape_cast %89 : vector<1x32x64xbf16> to vector<32x64xbf16>
    %cst_60 = arith.constant dense<0.000000e+00> : vector<8x64xf32>
    %91 = tpu.matmul %88, %90, %cst_60 {dimension_numbers = #tpu.dot_dimension_numbers<[1], [0], [0], [1], [0, 0, 1, 1], [], []>} : vector<8x32xbf16>, vector<32x64xbf16>, vector<8x64xf32> -> vector<8x64xf32>
    %92 = arith.addf %86, %91 : vector<8x64xf32>
    %93 = vector.extract_strided_slice %57 {offsets = [48, 0], sizes = [8, 32], strides = [1, 1]} : vector<128x32xf32> to vector<8x32xf32>
    %94 = arith.truncf %93 : vector<8x32xf32> to vector<8x32xbf16>
    %c6_61 = arith.constant 6 : index
    %c0_62 = arith.constant 0 : index
    %c0_63 = arith.constant 0 : index
    %95 = vector.load %arg5[%c6_61, %c0_62, %c0_63] : memref<16x32x64xbf16, #tpu.memory_space<vmem>>, vector<1x32x64xbf16>
    %96 = vector.shape_cast %95 : vector<1x32x64xbf16> to vector<32x64xbf16>
    %cst_64 = arith.constant dense<0.000000e+00> : vector<8x64xf32>
    %97 = tpu.matmul %94, %96, %cst_64 {dimension_numbers = #tpu.dot_dimension_numbers<[1], [0], [0], [1], [0, 0, 1, 1], [], []>} : vector<8x32xbf16>, vector<32x64xbf16>, vector<8x64xf32> -> vector<8x64xf32>
    %98 = arith.addf %92, %97 : vector<8x64xf32>
    %99 = vector.extract_strided_slice %57 {offsets = [56, 0], sizes = [8, 32], strides = [1, 1]} : vector<128x32xf32> to vector<8x32xf32>
    %100 = arith.truncf %99 : vector<8x32xf32> to vector<8x32xbf16>
    %c7_65 = arith.constant 7 : index
    %c0_66 = arith.constant 0 : index
    %c0_67 = arith.constant 0 : index
    %101 = vector.load %arg5[%c7_65, %c0_66, %c0_67] : memref<16x32x64xbf16, #tpu.memory_space<vmem>>, vector<1x32x64xbf16>
    %102 = vector.shape_cast %101 : vector<1x32x64xbf16> to vector<32x64xbf16>
    %cst_68 = arith.constant dense<0.000000e+00> : vector<8x64xf32>
    %103 = tpu.matmul %100, %102, %cst_68 {dimension_numbers = #tpu.dot_dimension_numbers<[1], [0], [0], [1], [0, 0, 1, 1], [], []>} : vector<8x32xbf16>, vector<32x64xbf16>, vector<8x64xf32> -> vector<8x64xf32>
    %104 = arith.addf %98, %103 : vector<8x64xf32>
    %105 = vector.extract_strided_slice %57 {offsets = [64, 0], sizes = [8, 32], strides = [1, 1]} : vector<128x32xf32> to vector<8x32xf32>
    %106 = arith.truncf %105 : vector<8x32xf32> to vector<8x32xbf16>
    %c8_69 = arith.constant 8 : index
    %c0_70 = arith.constant 0 : index
    %c0_71 = arith.constant 0 : index
    %107 = vector.load %arg5[%c8_69, %c0_70, %c0_71] : memref<16x32x64xbf16, #tpu.memory_space<vmem>>, vector<1x32x64xbf16>
    %108 = vector.shape_cast %107 : vector<1x32x64xbf16> to vector<32x64xbf16>
    %cst_72 = arith.constant dense<0.000000e+00> : vector<8x64xf32>
    %109 = tpu.matmul %106, %108, %cst_72 {dimension_numbers = #tpu.dot_dimension_numbers<[1], [0], [0], [1], [0, 0, 1, 1], [], []>} : vector<8x32xbf16>, vector<32x64xbf16>, vector<8x64xf32> -> vector<8x64xf32>
    %110 = arith.addf %104, %109 : vector<8x64xf32>
    %111 = vector.extract_strided_slice %57 {offsets = [72, 0], sizes = [8, 32], strides = [1, 1]} : vector<128x32xf32> to vector<8x32xf32>
    %112 = arith.truncf %111 : vector<8x32xf32> to vector<8x32xbf16>
    %c9 = arith.constant 9 : index
    %c0_73 = arith.constant 0 : index
    %c0_74 = arith.constant 0 : index
    %113 = vector.load %arg5[%c9, %c0_73, %c0_74] : memref<16x32x64xbf16, #tpu.memory_space<vmem>>, vector<1x32x64xbf16>
    %114 = vector.shape_cast %113 : vector<1x32x64xbf16> to vector<32x64xbf16>
    %cst_75 = arith.constant dense<0.000000e+00> : vector<8x64xf32>
    %115 = tpu.matmul %112, %114, %cst_75 {dimension_numbers = #tpu.dot_dimension_numbers<[1], [0], [0], [1], [0, 0, 1, 1], [], []>} : vector<8x32xbf16>, vector<32x64xbf16>, vector<8x64xf32> -> vector<8x64xf32>
    %116 = arith.addf %110, %115 : vector<8x64xf32>
    %117 = vector.extract_strided_slice %57 {offsets = [80, 0], sizes = [8, 32], strides = [1, 1]} : vector<128x32xf32> to vector<8x32xf32>
    %118 = arith.truncf %117 : vector<8x32xf32> to vector<8x32xbf16>
    %c10 = arith.constant 10 : index
    %c0_76 = arith.constant 0 : index
    %c0_77 = arith.constant 0 : index
    %119 = vector.load %arg5[%c10, %c0_76, %c0_77] : memref<16x32x64xbf16, #tpu.memory_space<vmem>>, vector<1x32x64xbf16>
    %120 = vector.shape_cast %119 : vector<1x32x64xbf16> to vector<32x64xbf16>
    %cst_78 = arith.constant dense<0.000000e+00> : vector<8x64xf32>
    %121 = tpu.matmul %118, %120, %cst_78 {dimension_numbers = #tpu.dot_dimension_numbers<[1], [0], [0], [1], [0, 0, 1, 1], [], []>} : vector<8x32xbf16>, vector<32x64xbf16>, vector<8x64xf32> -> vector<8x64xf32>
    %122 = arith.addf %116, %121 : vector<8x64xf32>
    %123 = vector.extract_strided_slice %57 {offsets = [88, 0], sizes = [8, 32], strides = [1, 1]} : vector<128x32xf32> to vector<8x32xf32>
    %124 = arith.truncf %123 : vector<8x32xf32> to vector<8x32xbf16>
    %c11 = arith.constant 11 : index
    %c0_79 = arith.constant 0 : index
    %c0_80 = arith.constant 0 : index
    %125 = vector.load %arg5[%c11, %c0_79, %c0_80] : memref<16x32x64xbf16, #tpu.memory_space<vmem>>, vector<1x32x64xbf16>
    %126 = vector.shape_cast %125 : vector<1x32x64xbf16> to vector<32x64xbf16>
    %cst_81 = arith.constant dense<0.000000e+00> : vector<8x64xf32>
    %127 = tpu.matmul %124, %126, %cst_81 {dimension_numbers = #tpu.dot_dimension_numbers<[1], [0], [0], [1], [0, 0, 1, 1], [], []>} : vector<8x32xbf16>, vector<32x64xbf16>, vector<8x64xf32> -> vector<8x64xf32>
    %128 = arith.addf %122, %127 : vector<8x64xf32>
    %129 = vector.extract_strided_slice %57 {offsets = [96, 0], sizes = [8, 32], strides = [1, 1]} : vector<128x32xf32> to vector<8x32xf32>
    %130 = arith.truncf %129 : vector<8x32xf32> to vector<8x32xbf16>
    %c12 = arith.constant 12 : index
    %c0_82 = arith.constant 0 : index
    %c0_83 = arith.constant 0 : index
    %131 = vector.load %arg5[%c12, %c0_82, %c0_83] : memref<16x32x64xbf16, #tpu.memory_space<vmem>>, vector<1x32x64xbf16>
    %132 = vector.shape_cast %131 : vector<1x32x64xbf16> to vector<32x64xbf16>
    %cst_84 = arith.constant dense<0.000000e+00> : vector<8x64xf32>
    %133 = tpu.matmul %130, %132, %cst_84 {dimension_numbers = #tpu.dot_dimension_numbers<[1], [0], [0], [1], [0, 0, 1, 1], [], []>} : vector<8x32xbf16>, vector<32x64xbf16>, vector<8x64xf32> -> vector<8x64xf32>
    %134 = arith.addf %128, %133 : vector<8x64xf32>
    %135 = vector.extract_strided_slice %57 {offsets = [104, 0], sizes = [8, 32], strides = [1, 1]} : vector<128x32xf32> to vector<8x32xf32>
    %136 = arith.truncf %135 : vector<8x32xf32> to vector<8x32xbf16>
    %c13 = arith.constant 13 : index
    %c0_85 = arith.constant 0 : index
    %c0_86 = arith.constant 0 : index
    %137 = vector.load %arg5[%c13, %c0_85, %c0_86] : memref<16x32x64xbf16, #tpu.memory_space<vmem>>, vector<1x32x64xbf16>
    %138 = vector.shape_cast %137 : vector<1x32x64xbf16> to vector<32x64xbf16>
    %cst_87 = arith.constant dense<0.000000e+00> : vector<8x64xf32>
    %139 = tpu.matmul %136, %138, %cst_87 {dimension_numbers = #tpu.dot_dimension_numbers<[1], [0], [0], [1], [0, 0, 1, 1], [], []>} : vector<8x32xbf16>, vector<32x64xbf16>, vector<8x64xf32> -> vector<8x64xf32>
    %140 = arith.addf %134, %139 : vector<8x64xf32>
    %141 = vector.extract_strided_slice %57 {offsets = [112, 0], sizes = [8, 32], strides = [1, 1]} : vector<128x32xf32> to vector<8x32xf32>
    %142 = arith.truncf %141 : vector<8x32xf32> to vector<8x32xbf16>
    %c14 = arith.constant 14 : index
    %c0_88 = arith.constant 0 : index
    %c0_89 = arith.constant 0 : index
    %143 = vector.load %arg5[%c14, %c0_88, %c0_89] : memref<16x32x64xbf16, #tpu.memory_space<vmem>>, vector<1x32x64xbf16>
    %144 = vector.shape_cast %143 : vector<1x32x64xbf16> to vector<32x64xbf16>
    %cst_90 = arith.constant dense<0.000000e+00> : vector<8x64xf32>
    %145 = tpu.matmul %142, %144, %cst_90 {dimension_numbers = #tpu.dot_dimension_numbers<[1], [0], [0], [1], [0, 0, 1, 1], [], []>} : vector<8x32xbf16>, vector<32x64xbf16>, vector<8x64xf32> -> vector<8x64xf32>
    %146 = arith.addf %140, %145 : vector<8x64xf32>
    %147 = vector.extract_strided_slice %57 {offsets = [120, 0], sizes = [8, 32], strides = [1, 1]} : vector<128x32xf32> to vector<8x32xf32>
    %148 = arith.truncf %147 : vector<8x32xf32> to vector<8x32xbf16>
    %c15 = arith.constant 15 : index
    %c0_91 = arith.constant 0 : index
    %c0_92 = arith.constant 0 : index
    %149 = vector.load %arg5[%c15, %c0_91, %c0_92] : memref<16x32x64xbf16, #tpu.memory_space<vmem>>, vector<1x32x64xbf16>
    %150 = vector.shape_cast %149 : vector<1x32x64xbf16> to vector<32x64xbf16>
    %cst_93 = arith.constant dense<0.000000e+00> : vector<8x64xf32>
    %151 = tpu.matmul %148, %150, %cst_93 {dimension_numbers = #tpu.dot_dimension_numbers<[1], [0], [0], [1], [0, 0, 1, 1], [], []>} : vector<8x32xbf16>, vector<32x64xbf16>, vector<8x64xf32> -> vector<8x64xf32>
    %152 = arith.addf %146, %151 : vector<8x64xf32>
    %c0_94 = arith.constant 0 : index
    %c0_95 = arith.constant 0 : index
    %153 = vector.load %arg6[%c0_94, %c0_95] : memref<1x64xf32, #tpu.memory_space<vmem>>, vector<1x64xf32>
    %154 = vector.broadcast %153 : vector<1x64xf32> to vector<8x64xf32>
    %155 = arith.addf %152, %154 : vector<8x64xf32>
    %c0_96 = arith.constant 0 : index
    %c0_97 = arith.constant 0 : index
    %156 = vector.load %arg7[%c0_96, %c0_97] : memref<1x64xf32, #tpu.memory_space<vmem>>, vector<1x64xf32>
    %c0_98 = arith.constant 0 : index
    %c0_99 = arith.constant 0 : index
    %157 = vector.load %arg8[%c0_98, %c0_99] : memref<1x64xf32, #tpu.memory_space<vmem>>, vector<1x64xf32>
    %cst_100 = arith.constant dense<0.000000e+00> : vector<8xf32>
    %158 = vector.multi_reduction <add>, %155, %cst_100 [1] : vector<8x64xf32> to vector<8xf32>
    %159 = vector.shape_cast %158 : vector<8xf32> to vector<8x1xf32>
    %cst_101 = arith.constant 6.400000e+01 : f32
    %160 = vector.broadcast %cst_101 : f32 to vector<8x1xf32>
    %161 = arith.divf %159, %160 : vector<8x1xf32>
    %162 = vector.broadcast %161 : vector<8x1xf32> to vector<8x64xf32>
    %163 = arith.subf %155, %162 : vector<8x64xf32>
    %164 = arith.mulf %163, %163 : vector<8x64xf32>
    %cst_102 = arith.constant dense<0.000000e+00> : vector<8xf32>
    %165 = vector.multi_reduction <add>, %164, %cst_102 [1] : vector<8x64xf32> to vector<8xf32>
    %166 = vector.shape_cast %165 : vector<8xf32> to vector<8x1xf32>
    %cst_103 = arith.constant 6.400000e+01 : f32
    %167 = vector.broadcast %cst_103 : f32 to vector<8x1xf32>
    %168 = arith.divf %166, %167 : vector<8x1xf32>
    %169 = vector.broadcast %161 : vector<8x1xf32> to vector<8x64xf32>
    %170 = arith.subf %155, %169 : vector<8x64xf32>
    %cst_104 = arith.constant 9.99999974E-6 : f32
    %171 = vector.broadcast %cst_104 : f32 to vector<8x1xf32>
    %172 = arith.addf %168, %171 : vector<8x1xf32>
    %173 = math.rsqrt %172 : vector<8x1xf32>
    %174 = vector.broadcast %173 : vector<8x1xf32> to vector<8x64xf32>
    %175 = arith.mulf %170, %174 : vector<8x64xf32>
    %176 = vector.broadcast %156 : vector<1x64xf32> to vector<8x64xf32>
    %177 = arith.mulf %175, %176 : vector<8x64xf32>
    %178 = vector.broadcast %157 : vector<1x64xf32> to vector<8x64xf32>
    %179 = arith.addf %177, %178 : vector<8x64xf32>
    %c0_105 = arith.constant 0 : index
    %c0_106 = arith.constant 0 : index
    %180 = vector.load %arg9[%c0_105, %c0_106] : memref<1x64xf32, #tpu.memory_space<vmem>>, vector<1x64xf32>
    %c0_107 = arith.constant 0 : index
    %c0_108 = arith.constant 0 : index
    %181 = vector.load %arg24[%c0_107, %c0_108] : memref<10x64xf32, #tpu.memory_space<vmem>>, vector<1x64xf32>
    tpu.vector_store %arg24[%c0_107, %c0_108], %180 {strides = array<i32>} : memref<10x64xf32, #tpu.memory_space<vmem>>, vector<1x64xf32>,
    %182 = vector.extract_strided_slice %179 {offsets = [0, 0], sizes = [4, 64], strides = [1, 1]} : vector<8x64xf32> to vector<4x64xf32>
    %c1_109 = arith.constant 1 : index
    %c0_110 = arith.constant 0 : index
    %183 = vector.load %arg24[%c1_109, %c0_110] : memref<10x64xf32, #tpu.memory_space<vmem>>, vector<4x64xf32>
    tpu.vector_store %arg24[%c1_109, %c0_110], %182 {strides = array<i32>} : memref<10x64xf32, #tpu.memory_space<vmem>>, vector<4x64xf32>,
    %c0_111 = arith.constant 0 : index
    %c0_112 = arith.constant 0 : index
    %184 = vector.load %arg9[%c0_111, %c0_112] : memref<1x64xf32, #tpu.memory_space<vmem>>, vector<1x64xf32>
    %c5_113 = arith.constant 5 : index
    %c0_114 = arith.constant 0 : index
    %185 = vector.load %arg24[%c5_113, %c0_114] : memref<10x64xf32, #tpu.memory_space<vmem>>, vector<1x64xf32>
    tpu.vector_store %arg24[%c5_113, %c0_114], %184 {strides = array<i32>} : memref<10x64xf32, #tpu.memory_space<vmem>>, vector<1x64xf32>,
    %186 = vector.extract_strided_slice %179 {offsets = [4, 0], sizes = [4, 64], strides = [1, 1]} : vector<8x64xf32> to vector<4x64xf32>
    %c6_115 = arith.constant 6 : index
    %c0_116 = arith.constant 0 : index
    %187 = vector.load %arg24[%c6_115, %c0_116] : memref<10x64xf32, #tpu.memory_space<vmem>>, vector<4x64xf32>
    tpu.vector_store %arg24[%c6_115, %c0_116], %186 {strides = array<i32>} : memref<10x64xf32, #tpu.memory_space<vmem>>, vector<4x64xf32>,
    %c0_117 = arith.constant 0 : index
    %c0_118 = arith.constant 0 : index
    %188 = vector.load %arg24[%c0_117, %c0_118] : memref<10x64xf32, #tpu.memory_space<vmem>>, vector<10x64xf32>
    %c0_119 = arith.constant 0 : index
    %c0_120 = arith.constant 0 : index
    %189 = vector.load %arg10[%c0_119, %c0_120] : memref<10x64xf32, #tpu.memory_space<vmem>>, vector<10x64xf32>
    %190 = arith.addf %188, %189 : vector<10x64xf32>
    %c0_121 = arith.constant 0 : index
    %c0_122 = arith.constant 0 : index
    %191 = vector.load %arg11[%c0_121, %c0_122] : memref<10x10xf32, #tpu.memory_space<vmem>>, vector<10x10xf32>
    %c0_123 = arith.constant 0 : index
    %c0_124 = arith.constant 0 : index
    %c0_125 = arith.constant 0 : index
    %192 = vector.load %arg12[%c0_123, %c0_124, %c0_125] : memref<2x1x64xf32, #tpu.memory_space<vmem>>, vector<1x1x64xf32>
    %193 = vector.shape_cast %192 : vector<1x1x64xf32> to vector<1x64xf32>
    %c0_126 = arith.constant 0 : index
    %c0_127 = arith.constant 0 : index
    %c0_128 = arith.constant 0 : index
    %194 = vector.load %arg13[%c0_126, %c0_127, %c0_128] : memref<2x1x64xf32, #tpu.memory_space<vmem>>, vector<1x1x64xf32>
    %195 = vector.shape_cast %194 : vector<1x1x64xf32> to vector<1x64xf32>
    %cst_129 = arith.constant dense<0.000000e+00> : vector<10xf32>
    %196 = vector.multi_reduction <add>, %190, %cst_129 [1] : vector<10x64xf32> to vector<10xf32>
    %197 = vector.shape_cast %196 : vector<10xf32> to vector<10x1xf32>
    %cst_130 = arith.constant 6.400000e+01 : f32
    %198 = vector.broadcast %cst_130 : f32 to vector<10x1xf32>
    %199 = arith.divf %197, %198 : vector<10x1xf32>
    %200 = vector.broadcast %199 : vector<10x1xf32> to vector<10x64xf32>
    %201 = arith.subf %190, %200 : vector<10x64xf32>
    %202 = arith.mulf %201, %201 : vector<10x64xf32>
    %cst_131 = arith.constant dense<0.000000e+00> : vector<10xf32>
    %203 = vector.multi_reduction <add>, %202, %cst_131 [1] : vector<10x64xf32> to vector<10xf32>
    %204 = vector.shape_cast %203 : vector<10xf32> to vector<10x1xf32>
    %cst_132 = arith.constant 6.400000e+01 : f32
    %205 = vector.broadcast %cst_132 : f32 to vector<10x1xf32>
    %206 = arith.divf %204, %205 : vector<10x1xf32>
    %207 = vector.broadcast %199 : vector<10x1xf32> to vector<10x64xf32>
    %208 = arith.subf %190, %207 : vector<10x64xf32>
    %cst_133 = arith.constant 9.99999974E-6 : f32
    %209 = vector.broadcast %cst_133 : f32 to vector<10x1xf32>
    %210 = arith.addf %206, %209 : vector<10x1xf32>
    %211 = math.rsqrt %210 : vector<10x1xf32>
    %212 = vector.broadcast %211 : vector<10x1xf32> to vector<10x64xf32>
    %213 = arith.mulf %208, %212 : vector<10x64xf32>
    %214 = vector.broadcast %193 : vector<1x64xf32> to vector<10x64xf32>
    %215 = arith.mulf %213, %214 : vector<10x64xf32>
    %216 = vector.broadcast %195 : vector<1x64xf32> to vector<10x64xf32>
    %217 = arith.addf %215, %216 : vector<10x64xf32>
    %218 = arith.truncf %217 : vector<10x64xf32> to vector<10x64xbf16>
    %c0_134 = arith.constant 0 : index
    %c0_135 = arith.constant 0 : index
    %c0_136 = arith.constant 0 : index
    %219 = vector.load %arg14[%c0_134, %c0_135, %c0_136] : memref<2x64x192xbf16, #tpu.memory_space<vmem>>, vector<1x64x192xbf16>
    %220 = vector.shape_cast %219 : vector<1x64x192xbf16> to vector<64x192xbf16>
    %cst_137 = arith.constant dense<0.000000e+00> : vector<10x192xf32>
    %221 = tpu.matmul %218, %220, %cst_137 {dimension_numbers = #tpu.dot_dimension_numbers<[1], [0], [0], [1], [0, 0, 1, 1], [], []>} : vector<10x64xbf16>, vector<64x192xbf16>, vector<10x192xf32> -> vector<10x192xf32>
    %222 = vector.extract_strided_slice %221 {offsets = [0, 0], sizes = [10, 64], strides = [1, 1]} : vector<10x192xf32> to vector<10x64xf32>
    %cst_138 = arith.constant 1.250000e-01 : f32
    %223 = vector.broadcast %cst_138 : f32 to vector<10x64xf32>
    %224 = arith.mulf %222, %223 : vector<10x64xf32>
    %225 = vector.extract_strided_slice %221 {offsets = [0, 64], sizes = [10, 64], strides = [1, 1]} : vector<10x192xf32> to vector<10x64xf32>
    %226 = vector.extract_strided_slice %221 {offsets = [0, 128], sizes = [10, 64], strides = [1, 1]} : vector<10x192xf32> to vector<10x64xf32>
    %227 = tpu.transpose %225, [1, 0] : vector<10x64xf32> -> vector<64x10xf32>
    %cst_139 = arith.constant dense<0.000000e+00> : vector<10x10xf32>
    %228 = tpu.matmul %224, %227, %cst_139 {dimension_numbers = #tpu.dot_dimension_numbers<[1], [0], [0], [1], [0, 0, 1, 1], [], []>} : vector<10x64xf32>, vector<64x10xf32>, vector<10x10xf32> -> vector<10x10xf32>
    %229 = arith.addf %228, %191 : vector<10x10xf32>
    %cst_140 = arith.constant dense<0xFF800000> : vector<10xf32>
    %230 = vector.multi_reduction <maximumf>, %229, %cst_140 [1] : vector<10x10xf32> to vector<10xf32>
    %231 = vector.shape_cast %230 : vector<10xf32> to vector<10x1xf32>
    %232 = vector.broadcast %231 : vector<10x1xf32> to vector<10x10xf32>
    %233 = arith.subf %229, %232 : vector<10x10xf32>
    %234 = math.exp %233 : vector<10x10xf32>
    %cst_141 = arith.constant dense<0.000000e+00> : vector<10xf32>
    %235 = vector.multi_reduction <add>, %234, %cst_141 [1] : vector<10x10xf32> to vector<10xf32>
    %236 = vector.shape_cast %235 : vector<10xf32> to vector<10x1xf32>
    %237 = tpu.reciprocal %236 {approx = true} : vector<10x1xf32> -> vector<10x1xf32>
    %238 = vector.broadcast %237 : vector<10x1xf32> to vector<10x10xf32>
    %239 = arith.mulf %234, %238 : vector<10x10xf32>
    %240 = arith.truncf %239 : vector<10x10xf32> to vector<10x10xbf16>
    %241 = arith.truncf %226 : vector<10x64xf32> to vector<10x64xbf16>
    %cst_142 = arith.constant dense<0.000000e+00> : vector<10x64xf32>
    %242 = tpu.matmul %240, %241, %cst_142 {dimension_numbers = #tpu.dot_dimension_numbers<[1], [0], [0], [1], [0, 0, 1, 1], [], []>} : vector<10x10xbf16>, vector<10x64xbf16>, vector<10x64xf32> -> vector<10x64xf32>
    %243 = arith.truncf %242 : vector<10x64xf32> to vector<10x64xbf16>
    %c0_143 = arith.constant 0 : index
    %c0_144 = arith.constant 0 : index
    %c0_145 = arith.constant 0 : index
    %244 = vector.load %arg15[%c0_143, %c0_144, %c0_145] : memref<2x64x64xbf16, #tpu.memory_space<vmem>>, vector<1x64x64xbf16>
    %245 = vector.shape_cast %244 : vector<1x64x64xbf16> to vector<64x64xbf16>
    %cst_146 = arith.constant dense<0.000000e+00> : vector<10x64xf32>
    %246 = tpu.matmul %243, %245, %cst_146 {dimension_numbers = #tpu.dot_dimension_numbers<[1], [0], [0], [1], [0, 0, 1, 1], [], []>} : vector<10x64xbf16>, vector<64x64xbf16>, vector<10x64xf32> -> vector<10x64xf32>
    %247 = arith.addf %190, %246 : vector<10x64xf32>
    %c0_147 = arith.constant 0 : index
    %c0_148 = arith.constant 0 : index
    %c0_149 = arith.constant 0 : index
    %248 = vector.load %arg16[%c0_147, %c0_148, %c0_149] : memref<2x1x64xf32, #tpu.memory_space<vmem>>, vector<1x1x64xf32>
    %249 = vector.shape_cast %248 : vector<1x1x64xf32> to vector<1x64xf32>
    %250 = vector.broadcast %249 : vector<1x64xf32> to vector<10x64xf32>
    %251 = arith.addf %247, %250 : vector<10x64xf32>
    %c0_150 = arith.constant 0 : index
    %c0_151 = arith.constant 0 : index
    %c0_152 = arith.constant 0 : index
    %252 = vector.load %arg17[%c0_150, %c0_151, %c0_152] : memref<2x1x64xf32, #tpu.memory_space<vmem>>, vector<1x1x64xf32>
    %253 = vector.shape_cast %252 : vector<1x1x64xf32> to vector<1x64xf32>
    %c0_153 = arith.constant 0 : index
    %c0_154 = arith.constant 0 : index
    %c0_155 = arith.constant 0 : index
    %254 = vector.load %arg18[%c0_153, %c0_154, %c0_155] : memref<2x1x64xf32, #tpu.memory_space<vmem>>, vector<1x1x64xf32>
    %255 = vector.shape_cast %254 : vector<1x1x64xf32> to vector<1x64xf32>
    %cst_156 = arith.constant dense<0.000000e+00> : vector<10xf32>
    %256 = vector.multi_reduction <add>, %251, %cst_156 [1] : vector<10x64xf32> to vector<10xf32>
    %257 = vector.shape_cast %256 : vector<10xf32> to vector<10x1xf32>
    %cst_157 = arith.constant 6.400000e+01 : f32
    %258 = vector.broadcast %cst_157 : f32 to vector<10x1xf32>
    %259 = arith.divf %257, %258 : vector<10x1xf32>
    %260 = vector.broadcast %259 : vector<10x1xf32> to vector<10x64xf32>
    %261 = arith.subf %251, %260 : vector<10x64xf32>
    %262 = arith.mulf %261, %261 : vector<10x64xf32>
    %cst_158 = arith.constant dense<0.000000e+00> : vector<10xf32>
    %263 = vector.multi_reduction <add>, %262, %cst_158 [1] : vector<10x64xf32> to vector<10xf32>
    %264 = vector.shape_cast %263 : vector<10xf32> to vector<10x1xf32>
    %cst_159 = arith.constant 6.400000e+01 : f32
    %265 = vector.broadcast %cst_159 : f32 to vector<10x1xf32>
    %266 = arith.divf %264, %265 : vector<10x1xf32>
    %267 = vector.broadcast %259 : vector<10x1xf32> to vector<10x64xf32>
    %268 = arith.subf %251, %267 : vector<10x64xf32>
    %cst_160 = arith.constant 9.99999974E-6 : f32
    %269 = vector.broadcast %cst_160 : f32 to vector<10x1xf32>
    %270 = arith.addf %266, %269 : vector<10x1xf32>
    %271 = math.rsqrt %270 : vector<10x1xf32>
    %272 = vector.broadcast %271 : vector<10x1xf32> to vector<10x64xf32>
    %273 = arith.mulf %268, %272 : vector<10x64xf32>
    %274 = vector.broadcast %253 : vector<1x64xf32> to vector<10x64xf32>
    %275 = arith.mulf %273, %274 : vector<10x64xf32>
    %276 = vector.broadcast %255 : vector<1x64xf32> to vector<10x64xf32>
    %277 = arith.addf %275, %276 : vector<10x64xf32>
    %278 = arith.truncf %277 : vector<10x64xf32> to vector<10x64xbf16>
    %c0_161 = arith.constant 0 : index
    %c0_162 = arith.constant 0 : index
    %c0_163 = arith.constant 0 : index
    %279 = vector.load %arg19[%c0_161, %c0_162, %c0_163] : memref<2x64x128xbf16, #tpu.memory_space<vmem>>, vector<1x64x128xbf16>
    %280 = vector.shape_cast %279 : vector<1x64x128xbf16> to vector<64x128xbf16>
    %cst_164 = arith.constant dense<0.000000e+00> : vector<10x128xf32>
    %281 = tpu.matmul %278, %280, %cst_164 {dimension_numbers = #tpu.dot_dimension_numbers<[1], [0], [0], [1], [0, 0, 1, 1], [], []>} : vector<10x64xbf16>, vector<64x128xbf16>, vector<10x128xf32> -> vector<10x128xf32>
    %c0_165 = arith.constant 0 : index
    %c0_166 = arith.constant 0 : index
    %c0_167 = arith.constant 0 : index
    %282 = vector.load %arg20[%c0_165, %c0_166, %c0_167] : memref<2x1x128xf32, #tpu.memory_space<vmem>>, vector<1x1x128xf32>
    %283 = vector.shape_cast %282 : vector<1x1x128xf32> to vector<1x128xf32>
    %284 = vector.broadcast %283 : vector<1x128xf32> to vector<10x128xf32>
    %285 = arith.addf %281, %284 : vector<10x128xf32>
    %cst_168 = arith.constant 5.000000e-01 : f32
    %286 = vector.broadcast %cst_168 : f32 to vector<10x128xf32>
    %287 = arith.mulf %286, %285 : vector<10x128xf32>
    %cst_169 = arith.constant 0.707106769 : f32
    %288 = vector.broadcast %cst_169 : f32 to vector<10x128xf32>
    %289 = arith.mulf %285, %288 : vector<10x128xf32>
    %290 = math.erf %289 : vector<10x128xf32>
    %cst_170 = arith.constant 1.000000e+00 : f32
    %291 = vector.broadcast %cst_170 : f32 to vector<10x128xf32>
    %292 = arith.addf %291, %290 : vector<10x128xf32>
    %293 = arith.mulf %287, %292 : vector<10x128xf32>
    %294 = arith.truncf %293 : vector<10x128xf32> to vector<10x128xbf16>
    %c0_171 = arith.constant 0 : index
    %c0_172 = arith.constant 0 : index
    %c0_173 = arith.constant 0 : index
    %295 = vector.load %arg21[%c0_171, %c0_172, %c0_173] : memref<2x128x64xbf16, #tpu.memory_space<vmem>>, vector<1x128x64xbf16>
    %296 = vector.shape_cast %295 : vector<1x128x64xbf16> to vector<128x64xbf16>
    %cst_174 = arith.constant dense<0.000000e+00> : vector<10x64xf32>
    %297 = tpu.matmul %294, %296, %cst_174 {dimension_numbers = #tpu.dot_dimension_numbers<[1], [0], [0], [1], [0, 0, 1, 1], [], []>} : vector<10x128xbf16>, vector<128x64xbf16>, vector<10x64xf32> -> vector<10x64xf32>
    %298 = arith.addf %251, %297 : vector<10x64xf32>
    %c0_175 = arith.constant 0 : index
    %c0_176 = arith.constant 0 : index
    %c0_177 = arith.constant 0 : index
    %299 = vector.load %arg22[%c0_175, %c0_176, %c0_177] : memref<2x1x64xf32, #tpu.memory_space<vmem>>, vector<1x1x64xf32>
    %300 = vector.shape_cast %299 : vector<1x1x64xf32> to vector<1x64xf32>
    %301 = vector.broadcast %300 : vector<1x64xf32> to vector<10x64xf32>
    %302 = arith.addf %298, %301 : vector<10x64xf32>
    %c1_178 = arith.constant 1 : index
    %c0_179 = arith.constant 0 : index
    %c0_180 = arith.constant 0 : index
    %303 = vector.load %arg12[%c1_178, %c0_179, %c0_180] : memref<2x1x64xf32, #tpu.memory_space<vmem>>, vector<1x1x64xf32>
    %304 = vector.shape_cast %303 : vector<1x1x64xf32> to vector<1x64xf32>
    %c1_181 = arith.constant 1 : index
    %c0_182 = arith.constant 0 : index
    %c0_183 = arith.constant 0 : index
    %305 = vector.load %arg13[%c1_181, %c0_182, %c0_183] : memref<2x1x64xf32, #tpu.memory_space<vmem>>, vector<1x1x64xf32>
    %306 = vector.shape_cast %305 : vector<1x1x64xf32> to vector<1x64xf32>
    %cst_184 = arith.constant dense<0.000000e+00> : vector<10xf32>
    %307 = vector.multi_reduction <add>, %302, %cst_184 [1] : vector<10x64xf32> to vector<10xf32>
    %308 = vector.shape_cast %307 : vector<10xf32> to vector<10x1xf32>
    %cst_185 = arith.constant 6.400000e+01 : f32
    %309 = vector.broadcast %cst_185 : f32 to vector<10x1xf32>
    %310 = arith.divf %308, %309 : vector<10x1xf32>
    %311 = vector.broadcast %310 : vector<10x1xf32> to vector<10x64xf32>
    %312 = arith.subf %302, %311 : vector<10x64xf32>
    %313 = arith.mulf %312, %312 : vector<10x64xf32>
    %cst_186 = arith.constant dense<0.000000e+00> : vector<10xf32>
    %314 = vector.multi_reduction <add>, %313, %cst_186 [1] : vector<10x64xf32> to vector<10xf32>
    %315 = vector.shape_cast %314 : vector<10xf32> to vector<10x1xf32>
    %cst_187 = arith.constant 6.400000e+01 : f32
    %316 = vector.broadcast %cst_187 : f32 to vector<10x1xf32>
    %317 = arith.divf %315, %316 : vector<10x1xf32>
    %318 = vector.broadcast %310 : vector<10x1xf32> to vector<10x64xf32>
    %319 = arith.subf %302, %318 : vector<10x64xf32>
    %cst_188 = arith.constant 9.99999974E-6 : f32
    %320 = vector.broadcast %cst_188 : f32 to vector<10x1xf32>
    %321 = arith.addf %317, %320 : vector<10x1xf32>
    %322 = math.rsqrt %321 : vector<10x1xf32>
    %323 = vector.broadcast %322 : vector<10x1xf32> to vector<10x64xf32>
    %324 = arith.mulf %319, %323 : vector<10x64xf32>
    %325 = vector.broadcast %304 : vector<1x64xf32> to vector<10x64xf32>
    %326 = arith.mulf %324, %325 : vector<10x64xf32>
    %327 = vector.broadcast %306 : vector<1x64xf32> to vector<10x64xf32>
    %328 = arith.addf %326, %327 : vector<10x64xf32>
    %329 = arith.truncf %328 : vector<10x64xf32> to vector<10x64xbf16>
    %c1_189 = arith.constant 1 : index
    %c0_190 = arith.constant 0 : index
    %c0_191 = arith.constant 0 : index
    %330 = vector.load %arg14[%c1_189, %c0_190, %c0_191] : memref<2x64x192xbf16, #tpu.memory_space<vmem>>, vector<1x64x192xbf16>
    %331 = vector.shape_cast %330 : vector<1x64x192xbf16> to vector<64x192xbf16>
    %cst_192 = arith.constant dense<0.000000e+00> : vector<10x192xf32>
    %332 = tpu.matmul %329, %331, %cst_192 {dimension_numbers = #tpu.dot_dimension_numbers<[1], [0], [0], [1], [0, 0, 1, 1], [], []>} : vector<10x64xbf16>, vector<64x192xbf16>, vector<10x192xf32> -> vector<10x192xf32>
    %333 = vector.extract_strided_slice %332 {offsets = [0, 0], sizes = [10, 64], strides = [1, 1]} : vector<10x192xf32> to vector<10x64xf32>
    %cst_193 = arith.constant 1.250000e-01 : f32
    %334 = vector.broadcast %cst_193 : f32 to vector<10x64xf32>
    %335 = arith.mulf %333, %334 : vector<10x64xf32>
    %336 = vector.extract_strided_slice %332 {offsets = [0, 64], sizes = [10, 64], strides = [1, 1]} : vector<10x192xf32> to vector<10x64xf32>
    %337 = vector.extract_strided_slice %332 {offsets = [0, 128], sizes = [10, 64], strides = [1, 1]} : vector<10x192xf32> to vector<10x64xf32>
    %338 = tpu.transpose %336, [1, 0] : vector<10x64xf32> -> vector<64x10xf32>
    %cst_194 = arith.constant dense<0.000000e+00> : vector<10x10xf32>
    %339 = tpu.matmul %335, %338, %cst_194 {dimension_numbers = #tpu.dot_dimension_numbers<[1], [0], [0], [1], [0, 0, 1, 1], [], []>} : vector<10x64xf32>, vector<64x10xf32>, vector<10x10xf32> -> vector<10x10xf32>
    %340 = arith.addf %339, %191 : vector<10x10xf32>
    %cst_195 = arith.constant dense<0xFF800000> : vector<10xf32>
    %341 = vector.multi_reduction <maximumf>, %340, %cst_195 [1] : vector<10x10xf32> to vector<10xf32>
    %342 = vector.shape_cast %341 : vector<10xf32> to vector<10x1xf32>
    %343 = vector.broadcast %342 : vector<10x1xf32> to vector<10x10xf32>
    %344 = arith.subf %340, %343 : vector<10x10xf32>
    %345 = math.exp %344 : vector<10x10xf32>
    %cst_196 = arith.constant dense<0.000000e+00> : vector<10xf32>
    %346 = vector.multi_reduction <add>, %345, %cst_196 [1] : vector<10x10xf32> to vector<10xf32>
    %347 = vector.shape_cast %346 : vector<10xf32> to vector<10x1xf32>
    %348 = tpu.reciprocal %347 {approx = true} : vector<10x1xf32> -> vector<10x1xf32>
    %349 = vector.broadcast %348 : vector<10x1xf32> to vector<10x10xf32>
    %350 = arith.mulf %345, %349 : vector<10x10xf32>
    %351 = arith.truncf %350 : vector<10x10xf32> to vector<10x10xbf16>
    %352 = arith.truncf %337 : vector<10x64xf32> to vector<10x64xbf16>
    %cst_197 = arith.constant dense<0.000000e+00> : vector<10x64xf32>
    %353 = tpu.matmul %351, %352, %cst_197 {dimension_numbers = #tpu.dot_dimension_numbers<[1], [0], [0], [1], [0, 0, 1, 1], [], []>} : vector<10x10xbf16>, vector<10x64xbf16>, vector<10x64xf32> -> vector<10x64xf32>
    %354 = arith.truncf %353 : vector<10x64xf32> to vector<10x64xbf16>
    %c1_198 = arith.constant 1 : index
    %c0_199 = arith.constant 0 : index
    %c0_200 = arith.constant 0 : index
    %355 = vector.load %arg15[%c1_198, %c0_199, %c0_200] : memref<2x64x64xbf16, #tpu.memory_space<vmem>>, vector<1x64x64xbf16>
    %356 = vector.shape_cast %355 : vector<1x64x64xbf16> to vector<64x64xbf16>
    %cst_201 = arith.constant dense<0.000000e+00> : vector<10x64xf32>
    %357 = tpu.matmul %354, %356, %cst_201 {dimension_numbers = #tpu.dot_dimension_numbers<[1], [0], [0], [1], [0, 0, 1, 1], [], []>} : vector<10x64xbf16>, vector<64x64xbf16>, vector<10x64xf32> -> vector<10x64xf32>
    %358 = arith.addf %302, %357 : vector<10x64xf32>
    %c1_202 = arith.constant 1 : index
    %c0_203 = arith.constant 0 : index
    %c0_204 = arith.constant 0 : index
    %359 = vector.load %arg16[%c1_202, %c0_203, %c0_204] : memref<2x1x64xf32, #tpu.memory_space<vmem>>, vector<1x1x64xf32>
    %360 = vector.shape_cast %359 : vector<1x1x64xf32> to vector<1x64xf32>
    %361 = vector.broadcast %360 : vector<1x64xf32> to vector<10x64xf32>
    %362 = arith.addf %358, %361 : vector<10x64xf32>
    %c1_205 = arith.constant 1 : index
    %c0_206 = arith.constant 0 : index
    %c0_207 = arith.constant 0 : index
    %363 = vector.load %arg17[%c1_205, %c0_206, %c0_207] : memref<2x1x64xf32, #tpu.memory_space<vmem>>, vector<1x1x64xf32>
    %364 = vector.shape_cast %363 : vector<1x1x64xf32> to vector<1x64xf32>
    %c1_208 = arith.constant 1 : index
    %c0_209 = arith.constant 0 : index
    %c0_210 = arith.constant 0 : index
    %365 = vector.load %arg18[%c1_208, %c0_209, %c0_210] : memref<2x1x64xf32, #tpu.memory_space<vmem>>, vector<1x1x64xf32>
    %366 = vector.shape_cast %365 : vector<1x1x64xf32> to vector<1x64xf32>
    %cst_211 = arith.constant dense<0.000000e+00> : vector<10xf32>
    %367 = vector.multi_reduction <add>, %362, %cst_211 [1] : vector<10x64xf32> to vector<10xf32>
    %368 = vector.shape_cast %367 : vector<10xf32> to vector<10x1xf32>
    %cst_212 = arith.constant 6.400000e+01 : f32
    %369 = vector.broadcast %cst_212 : f32 to vector<10x1xf32>
    %370 = arith.divf %368, %369 : vector<10x1xf32>
    %371 = vector.broadcast %370 : vector<10x1xf32> to vector<10x64xf32>
    %372 = arith.subf %362, %371 : vector<10x64xf32>
    %373 = arith.mulf %372, %372 : vector<10x64xf32>
    %cst_213 = arith.constant dense<0.000000e+00> : vector<10xf32>
    %374 = vector.multi_reduction <add>, %373, %cst_213 [1] : vector<10x64xf32> to vector<10xf32>
    %375 = vector.shape_cast %374 : vector<10xf32> to vector<10x1xf32>
    %cst_214 = arith.constant 6.400000e+01 : f32
    %376 = vector.broadcast %cst_214 : f32 to vector<10x1xf32>
    %377 = arith.divf %375, %376 : vector<10x1xf32>
    %378 = vector.broadcast %370 : vector<10x1xf32> to vector<10x64xf32>
    %379 = arith.subf %362, %378 : vector<10x64xf32>
    %cst_215 = arith.constant 9.99999974E-6 : f32
    %380 = vector.broadcast %cst_215 : f32 to vector<10x1xf32>
    %381 = arith.addf %377, %380 : vector<10x1xf32>
    %382 = math.rsqrt %381 : vector<10x1xf32>
    %383 = vector.broadcast %382 : vector<10x1xf32> to vector<10x64xf32>
    %384 = arith.mulf %379, %383 : vector<10x64xf32>
    %385 = vector.broadcast %364 : vector<1x64xf32> to vector<10x64xf32>
    %386 = arith.mulf %384, %385 : vector<10x64xf32>
    %387 = vector.broadcast %366 : vector<1x64xf32> to vector<10x64xf32>
    %388 = arith.addf %386, %387 : vector<10x64xf32>
    %389 = arith.truncf %388 : vector<10x64xf32> to vector<10x64xbf16>
    %c1_216 = arith.constant 1 : index
    %c0_217 = arith.constant 0 : index
    %c0_218 = arith.constant 0 : index
    %390 = vector.load %arg19[%c1_216, %c0_217, %c0_218] : memref<2x64x128xbf16, #tpu.memory_space<vmem>>, vector<1x64x128xbf16>
    %391 = vector.shape_cast %390 : vector<1x64x128xbf16> to vector<64x128xbf16>
    %cst_219 = arith.constant dense<0.000000e+00> : vector<10x128xf32>
    %392 = tpu.matmul %389, %391, %cst_219 {dimension_numbers = #tpu.dot_dimension_numbers<[1], [0], [0], [1], [0, 0, 1, 1], [], []>} : vector<10x64xbf16>, vector<64x128xbf16>, vector<10x128xf32> -> vector<10x128xf32>
    %c1_220 = arith.constant 1 : index
    %c0_221 = arith.constant 0 : index
    %c0_222 = arith.constant 0 : index
    %393 = vector.load %arg20[%c1_220, %c0_221, %c0_222] : memref<2x1x128xf32, #tpu.memory_space<vmem>>, vector<1x1x128xf32>
    %394 = vector.shape_cast %393 : vector<1x1x128xf32> to vector<1x128xf32>
    %395 = vector.broadcast %394 : vector<1x128xf32> to vector<10x128xf32>
    %396 = arith.addf %392, %395 : vector<10x128xf32>
    %cst_223 = arith.constant 5.000000e-01 : f32
    %397 = vector.broadcast %cst_223 : f32 to vector<10x128xf32>
    %398 = arith.mulf %397, %396 : vector<10x128xf32>
    %cst_224 = arith.constant 0.707106769 : f32
    %399 = vector.broadcast %cst_224 : f32 to vector<10x128xf32>
    %400 = arith.mulf %396, %399 : vector<10x128xf32>
    %401 = math.erf %400 : vector<10x128xf32>
    %cst_225 = arith.constant 1.000000e+00 : f32
    %402 = vector.broadcast %cst_225 : f32 to vector<10x128xf32>
    %403 = arith.addf %402, %401 : vector<10x128xf32>
    %404 = arith.mulf %398, %403 : vector<10x128xf32>
    %405 = arith.truncf %404 : vector<10x128xf32> to vector<10x128xbf16>
    %c1_226 = arith.constant 1 : index
    %c0_227 = arith.constant 0 : index
    %c0_228 = arith.constant 0 : index
    %406 = vector.load %arg21[%c1_226, %c0_227, %c0_228] : memref<2x128x64xbf16, #tpu.memory_space<vmem>>, vector<1x128x64xbf16>
    %407 = vector.shape_cast %406 : vector<1x128x64xbf16> to vector<128x64xbf16>
    %cst_229 = arith.constant dense<0.000000e+00> : vector<10x64xf32>
    %408 = tpu.matmul %405, %407, %cst_229 {dimension_numbers = #tpu.dot_dimension_numbers<[1], [0], [0], [1], [0, 0, 1, 1], [], []>} : vector<10x128xbf16>, vector<128x64xbf16>, vector<10x64xf32> -> vector<10x64xf32>
    %409 = arith.addf %362, %408 : vector<10x64xf32>
    %c1_230 = arith.constant 1 : index
    %c0_231 = arith.constant 0 : index
    %c0_232 = arith.constant 0 : index
    %410 = vector.load %arg22[%c1_230, %c0_231, %c0_232] : memref<2x1x64xf32, #tpu.memory_space<vmem>>, vector<1x1x64xf32>
    %411 = vector.shape_cast %410 : vector<1x1x64xf32> to vector<1x64xf32>
    %412 = vector.broadcast %411 : vector<1x64xf32> to vector<10x64xf32>
    %413 = arith.addf %409, %412 : vector<10x64xf32>
    %414 = vector.extract_strided_slice %413 {offsets = [0, 0], sizes = [1, 64], strides = [1, 1]} : vector<10x64xf32> to vector<1x64xf32>
    %c0_233 = arith.constant 0 : index
    %c0_234 = arith.constant 0 : index
    %415 = vector.load %arg23[%c0_233, %c0_234] : memref<2x64xf32, #tpu.memory_space<vmem>>, vector<1x64xf32>
    tpu.vector_store %arg23[%c0_233, %c0_234], %414 {strides = array<i32>} : memref<2x64xf32, #tpu.memory_space<vmem>>, vector<1x64xf32>,
    %416 = vector.extract_strided_slice %413 {offsets = [5, 0], sizes = [1, 64], strides = [1, 1]} : vector<10x64xf32> to vector<1x64xf32>
    %c1_235 = arith.constant 1 : index
    %c0_236 = arith.constant 0 : index
    %417 = vector.load %arg23[%c1_235, %c0_236] : memref<2x64xf32, #tpu.memory_space<vmem>>, vector<1x64xf32>
    tpu.vector_store %arg23[%c1_235, %c0_236], %416 {strides = array<i32>} : memref<2x64xf32, #tpu.memory_space<vmem>>, vector<1x64xf32>,
    return
  }
}

</mosaic_0001>

<bundles_post_ra>
// kernel: pixel_encoder_forward.1
= control target key start
LH: loop header
LB: loop body
LE: loop exit
PB: predicated region body
PF: predicated region fallthrough
CT: control target
= control target key end

     0   :  { %s8631_s0 = inlined_call_operand.vmem [shape: bf16[1152,27], index: 0, kind: input, shape index: {}]   ;;  %s8632_s1 = inlined_call_operand.vmem [shape: bf16[27,32], index: 1, kind: input, shape index: {}]   ;;  %s8633_s2 = inlined_call_operand.vmem [shape: f32[1,32], index: 2, kind: input, shape index: {}]   ;;  %s8634_s3 = inlined_call_operand.vmem [shape: bf16[9,32,32], index: 3, kind: input, shape index: {}]   ;;  %s8635_s4 = inlined_call_operand.vmem [shape: f32[1,32], index: 4, kind: input, shape index: {}]   ;;  %s8636_s5 = inlined_call_operand.vmem [shape: bf16[16,32,64], index: 5, kind: input, shape index: {}]   ;;  %s8637_s6 = inlined_call_operand.vmem [shape: f32[1,64], index: 6, kind: input, shape index: {}]   ;;  %s8638_s7 = inlined_call_operand.vmem [shape: f32[1,64], index: 7, kind: input, shape index: {}]   ;;  %s8639_s8 = inlined_call_operand.vmem [shape: f32[1,64], index: 8, kind: input, shape index: {}]   ;;  %s8640_s9 = inlined_call_operand.vmem [shape: f32[1,64], index: 9, kind: input, shape index: {}]   ;;  %s8641_s10 = inlined_call_operand.vmem [shape: f32[10,64], index: 10, kind: input, shape index: {}]   ;;  %s8642_s11 = inlined_call_operand.vmem [shape: f32[10,10], index: 11, kind: input, shape index: {}]   ;;  %s8643_s12 = inlined_call_operand.vmem [shape: f32[2,1,64], index: 12, kind: input, shape index: {}]   ;;  %s8644_s13 = inlined_call_operand.vmem [shape: f32[2,1,64], index: 13, kind: input, shape index: {}]   ;;  %s8645_s14 = inlined_call_operand.vmem [shape: bf16[2,64,192], index: 14, kind: input, shape index: {}]   ;;  %s8646_s15 = inlined_call_operand.vmem [shape: bf16[2,64,64], index: 15, kind: input, shape index: {}]   ;;  %s8647_s16 = inlined_call_operand.vmem [shape: f32[2,1,64], index: 16, kind: input, shape index: {}]   ;;  %s8648_s17 = inlined_call_operand.vmem [shape: f32[2,1,64], index: 17, kind: input, shape index: {}]   ;;  %s8649_s18 = inlined_call_operand.vmem [shape: f32[2,1,64], index: 18, kind: input, shape index: {}]   ;;  %s8650_s19 = inlined_call_operand.vmem [shape: bf16[2,64,128], index: 19, kind: input, shape index: {}]   ;;  %s8651_s20 = inlined_call_operand.vmem [shape: f32[2,1,128], index: 20, kind: input, shape index: {}]   ;;  %s8652_s21 = inlined_call_operand.vmem [shape: bf16[2,128,64], index: 21, kind: input, shape index: {}]   ;;  %s8653_s22 = inlined_call_operand.vmem [shape: f32[2,1,64], index: 22, kind: input, shape index: {}]   ;;  %s8654_s23 = inlined_call_operand.hbm [shape: f32[2,64], index: 23, kind: output, shape index: {}]  }
   0x1   :  { %8660 = sst [smem:[#allocation6_spill]] %s8631_s0 }
   0x2   :  { %8661 = sst [smem:[#allocation7_spill]] %s8632_s1 }
   0x3   :  { %8662 = sst [smem:[#allocation8_spill]] %s8633_s2 }
   0x4   :  { %8663 = sst [smem:[#allocation9_spill]] %s8634_s3 }
   0x5   :  { %8664 = sst [smem:[#allocation10_spill]] %s8635_s4 }
   0x6   :  { %8665 = sst [smem:[#allocation11_spill]] %s8636_s5 }
   0x7   :  { %8666 = sst [smem:[#allocation12_spill]] %s8637_s6 }
   0x8   :  { %8667 = sst [smem:[#allocation13_spill]] %s8638_s7 }
   0x9   :  { %s8668_s24 = sld [smem:[#allocation7_spill]]  ;;  %vm819_vm0 = vcmask 1044480   ;;  %vm820_vm1 = vcmask 1045504   ;;  %v7154_v2 = vmov 65535   ;;  %s8669_s2 = sld [smem:[#allocation6_spill]]  ;;  %vm602_vm2 = vcmask 220160  }
   0xa   :  { %v821_v3 = vsel %vm819_vm0, 4294967295, %v7154_v2  ;;  %s8670_s29 = sld [smem:[#allocation9_spill]] }
   0xb   :  { %v822_v5 = vsel %vm820_vm1, %v821_v3, 0 }
   0xf   :  { %v6907_v0 = vld [vmem:[%s8668_s24] sm:$0xff]   ;;  %v6908_v1 = vld [vmem:[%s8668_s24 + $0x8] sm:$0x3f]   ;;  %v6911_v8 = vld [vmem:[%s8669_s2 + $0x10] sm:$0xff]  }
  0x10   :  { %6177 = vmatprep.subr.bf16.mxu0 %v6907_v0  ;;  %6759 = vmatprep.subr.bf16.mxu1 %v6907_v0  ;;  %v6909_v4 = vld [vmem:[%s8669_s2] sm:$0xff]   ;;  %v824_v6 = vand.u32 %v6908_v1, %v822_v5  ;;  %v6910_v7 = vld [vmem:[%s8669_s2 + $0x8] sm:$0xff]   ;;  %v6912_v9 = vld [vmem:[%s8669_s2 + $0x18] sm:$0xff]  }
  0x11   :  { %6178 = vmatpush3.bf16.msra.mxu0 %v6907_v0  ;;  %6761 = vmatpush3.bf16.msra.mxu1 %v6907_v0  ;;  %v6913_v10 = vld [vmem:[%s8669_s2 + $0x20] sm:$0xff]   ;;  %v6914_v11 = vld [vmem:[%s8669_s2 + $0x28] sm:$0xff]   ;;  %v6915_v12 = vld [vmem:[%s8669_s2 + $0x30] sm:$0xff]  }
  0x12   :  { %6181 = vmatprep.mubr.msk.bf16.mxu0 %vm602_vm2, %v6909_v4  ;;  %6179 = vmatprep.subr.bf16.mxu0 %v824_v6  ;;  %v6916_v13 = vld [vmem:[%s8669_s2 + $0x38] sm:$0xff]   ;;  %v6917_v14 = vld [vmem:[%s8669_s2 + $0x40] sm:$0xff]   ;;  %v6918_v15 = vld [vmem:[%s8669_s2 + $0x48] sm:$0xff]  }
  0x13   :  { %6760 = vmatprep.subr.bf16.mxu1 %v824_v6  ;;  %v6919_v16 = vld [vmem:[%s8669_s2 + $0x50] sm:$0xff]   ;;  %v6920_v17 = vld [vmem:[%s8669_s2 + $0x58] sm:$0xff]   ;;  %v6921_v18 = vld [vmem:[%s8669_s2 + $0x60] sm:$0xff]  }
  0x14   :  { %v6922_v19 = vld [vmem:[%s8669_s2 + $0x68] sm:$0xff]   ;;  %v6923_v20 = vld [vmem:[%s8669_s2 + $0x70] sm:$0xff]   ;;  %v6924_v21 = vld [vmem:[%s8669_s2 + $0x78] sm:$0xff]  }
  0x15   :  { %6180 = vmatpush3.bf16.msra.mxu0 %v824_v6  ;;  %6762 = vmatpush3.bf16.msra.mxu1 %v824_v6  ;;  %v6925_v22 = vld [vmem:[%s8669_s2 + $0x80] sm:$0xff]   ;;  %v6926_v23 = vld [vmem:[%s8669_s2 + $0x88] sm:$0xff]   ;;  %v6927_v24 = vld [vmem:[%s8669_s2 + $0x90] sm:$0xff]  }
  0x16   :  { %v6928_v25 = vld [vmem:[%s8669_s2 + $0x98] sm:$0xff]   ;;  %v6929_v26 = vld [vmem:[%s8669_s2 + $0xa0] sm:$0xff]   ;;  %v6930_v27 = vld [vmem:[%s8669_s2 + $0xa8] sm:$0xff]  }
  0x17   :  { %v6931_v28 = vld [vmem:[%s8669_s2 + $0xb0] sm:$0xff]   ;;  %v6932_v29 = vld [vmem:[%s8669_s2 + $0xb8] sm:$0xff]   ;;  %v6933_v30 = vld [vmem:[%s8669_s2 + $0xc0] sm:$0xff]  }
  0x18   :  { %6182 = vmatmul.mubr.msk.bf16.vlgmr.msra.gmra.mrb[0].mxu0 %vm602_vm2, %v6910_v7  ;;  %v6934_v31 = vld [vmem:[%s8669_s2 + $0xc8] sm:$0xff]   ;;  %v6935_v32 = vld [vmem:[%s8669_s2 + $0xd0] sm:$0xff]   ;;  %v6936_v33 = vld [vmem:[%s8669_s2 + $0xd8] sm:$0xff]  }
  0x19   :  { %6185 = vmatprep.mubr.msk.bf16.mxu0 %vm602_vm2, %v6911_v8  ;;  %v6937_v34 = vld [vmem:[%s8669_s2 + $0xe0] sm:$0xff]   ;;  %v6962_v36 = vld [vmem:[%s8669_s2 + $0x228] sm:$0xff]   ;;  %v6939_v38 = vld [vmem:[%s8669_s2 + $0xf0] sm:$0xff]  }
  0x1a   :  { %v6961_v35 = vld [vmem:[%s8669_s2 + $0x220] sm:$0xff]   ;;  %v6938_v37 = vld [vmem:[%s8669_s2 + $0xe8] sm:$0xff]   ;;  %v6966_v39 = vld [vmem:[%s8669_s2 + $0x230] sm:$0xff]  }
  0x1b   :  { %6317 = vmatprep.mubr.msk.bf16.mxu1 %vm602_vm2, %v6961_v35  ;;  %v6967_v40 = vld [vmem:[%s8669_s2 + $0x238] sm:$0xff]   ;;  %v6941_v42 = vld [vmem:[%s8669_s2 + $0x100] sm:$0xff]   ;;  %v6965_v43 = vld [vmem:[%s8670_s29 + $0x10] sm:$0xff]  }
  0x1c   :  { %6318 = vmatmul.mubr.msk.bf16.vlgmr.msra.gmra.mrb[0].mxu1 %vm602_vm2, %v6962_v36  ;;  %v6940_v41 = vld [vmem:[%s8669_s2 + $0xf8] sm:$0xff]   ;;  %6325 = vmatprep.subr.bf16.mxu1 %v6965_v43 }
  0x1d   :  { %6321 = vmatprep.mubr.msk.bf16.mxu1 %vm602_vm2, %v6966_v39  ;;  %6326 = vmatpush3.bf16.msra.mxu1 %v6965_v43  ;;  %v6970_v44 = vld [vmem:[%s8670_s29 + $0x18] sm:$0xff]  }
  0x20   :  { %6186 = vmatmul.mubr.msk.bf16.gmra.mrb[4].mxu0 %vm602_vm2, %v6912_v9 }
  0x21   :  { %6189 = vmatprep.mubr.msk.bf16.mxu0 %vm602_vm2, %v6913_v10 }
  0x24   :  { %6322 = vmatmul.mubr.msk.bf16.gmra.mrb[4].mxu1 %vm602_vm2, %v6967_v40 }
  0x28   :  { %6190 = vmatmul.mubr.msk.bf16.gmra.mrb[8].mxu0 %vm602_vm2, %v6914_v11 }
  0x29   :  { %6193 = vmatprep.mubr.msk.bf16.mxu0 %vm602_vm2, %v6915_v12 }
  0x30   :  { %6194 = vmatmul.mubr.msk.bf16.gmra.mrb[12].mxu0 %vm602_vm2, %v6916_v13 }
  0x31   :  { %6197 = vmatprep.mubr.msk.bf16.mxu0 %vm602_vm2, %v6917_v14 }
  0x38   :  { %6198 = vmatmul.mubr.msk.bf16.gmra.mrb[16].mxu0 %vm602_vm2, %v6918_v15 }
  0x39   :  { %6201 = vmatprep.mubr.msk.bf16.mxu0 %vm602_vm2, %v6919_v16 }
  0x40   :  { %6202 = vmatmul.mubr.msk.bf16.gmra.mrb[20].mxu0 %vm602_vm2, %v6920_v17 }
  0x41   :  { %6205 = vmatprep.mubr.msk.bf16.mxu0 %vm602_vm2, %v6921_v18 }
  0x48   :  { %6206 = vmatmul.mubr.msk.bf16.gmra.mrb[24].mxu0 %vm602_vm2, %v6922_v19 }
  0x49   :  { %6209 = vmatprep.mubr.msk.bf16.mxu0 %vm602_vm2, %v6923_v20 }
  0x50   :  { %6210 = vmatmul.mubr.msk.bf16.gmra.mrb[28].mxu0 %vm602_vm2, %v6924_v21 }
  0x51   :  { %6213 = vmatprep.mubr.msk.bf16.mxu0 %vm602_vm2, %v6925_v22 }
  0x58   :  { %6214 = vmatmul.mubr.msk.bf16.gmra.mrb[32].mxu0 %vm602_vm2, %v6926_v23 }
  0x59   :  { %6217 = vmatprep.mubr.msk.bf16.mxu0 %vm602_vm2, %v6927_v24 }
  0x60   :  { %6218 = vmatmul.mubr.msk.bf16.gmra.mrb[36].mxu0 %vm602_vm2, %v6928_v25 }
  0x61   :  { %6221 = vmatprep.mubr.msk.bf16.mxu0 %vm602_vm2, %v6929_v26 }
  0x68   :  { %6222 = vmatmul.mubr.msk.bf16.gmra.mrb[40].mxu0 %vm602_vm2, %v6930_v27 }
  0x69   :  { %6225 = vmatprep.mubr.msk.bf16.mxu0 %vm602_vm2, %v6931_v28 }
  0x70   :  { %6226 = vmatmul.mubr.msk.bf16.gmra.mrb[44].mxu0 %vm602_vm2, %v6932_v29 }
  0x71   :  { %6229 = vmatprep.mubr.msk.bf16.mxu0 %vm602_vm2, %v6933_v30 }
  0x78   :  { %6230 = vmatmul.mubr.msk.bf16.gmra.mrb[48].mxu0 %vm602_vm2, %v6934_v31 }
  0x79   :  { %6233 = vmatprep.mubr.msk.bf16.mxu0 %vm602_vm2, %v6935_v32 }
  0x80   :  { %6234 = vmatmul.mubr.msk.bf16.gmra.mrb[52].mxu0 %vm602_vm2, %v6936_v33 }
  0x81   :  { %6237 = vmatprep.mubr.msk.bf16.mxu0 %vm602_vm2, %v6937_v34 }
  0x88   :  { %6238 = vmatmul.mubr.msk.bf16.gmra.mrb[56].mxu0 %vm602_vm2, %v6938_v37 }
  0x89   :  { %6241 = vmatprep.mubr.msk.bf16.mxu0 %vm602_vm2, %v6939_v38 }
  0x90   :  { %6242 = vmatmul.mubr.msk.bf16.gmra.mrb[60].mxu0 %vm602_vm2, %v6940_v41 }
  0x91   :  { %28 = vsyncpa [#allocation4], 0  ;;  %6245 = vmatprep.mubr.msk.bf16.mxu0 %vm602_vm2, %v6941_v42  ;;  %6327 = vmatprep.subr.bf16.mxu1 %v6970_v44  ;;  %v6942_v45 = vld [vmem:[%s8669_s2 + $0x108] sm:$0xff]   ;;  %v6943_v46 = vld [vmem:[%s8669_s2 + $0x110] sm:$0xff]   ;;  %s8671_s7 = sld [smem:[#allocation8_spill]]  ;;  %vm1672_vm3 = vcmask 261120  }
  0x92   :  { %6328 = vmatpush3.bf16.msra.mxu1 %v6970_v44  ;;  %v7452_v47 = vld [vmem:[%s8670_s29] sm:$0xff]   ;;  %v6944_v48 = vld [vmem:[%s8669_s2 + $0x118] sm:$0xff]   ;;  %v6946_v50 = vld [vmem:[%s8669_s2 + $0x128] sm:$0xff]   ;;  %s8672_s4 = sld [smem:[#allocation11_spill]]  ;;  %vm7156_vm4 = vmmov 0   ;;  %vm4043_vm5 = vcmask 523264  }
  0x93   :  { %v6945_v49 = vld [vmem:[%s8669_s2 + $0x120] sm:$0xff]   ;;  %6345 = vmatprep.subr.bf16.mxu1 %v7452_v47  ;;  %v6947_v51 = vld [vmem:[%s8669_s2 + $0x130] sm:$0xff]   ;;  %v6948_v52 = vld [vmem:[%s8669_s2 + $0x138] sm:$0xff]   ;;  %vm4073_vm6 = vcmask 516096   ;;  %s8675_s28 = sld [smem:[#allocation13_spill]]  ;;  %vm4075_vm7 = vcmask 519168  }
  0x94   :  { %v6949_v53 = vld [vmem:[%s8669_s2 + $0x140] sm:$0xff]   ;;  %v6950_v54 = vld [vmem:[%s8669_s2 + $0x148] sm:$0xff]   ;;  %v6951_v55 = vld [vmem:[%s8669_s2 + $0x150] sm:$0xff]   ;;  %vm4079_vm8 = vcmask 523268   ;;  %vm4094_vm9 = vcmask 517120   ;;  %vm4322_vm11 = vcmask 80896  }
  0x95   :  { %v6952_v56 = vld [vmem:[%s8669_s2 + $0x158] sm:$0xff]   ;;  %v6953_v57 = vld [vmem:[%s8669_s2 + $0x160] sm:$0xff]   ;;  %v6954_v58 = vld [vmem:[%s8669_s2 + $0x168] sm:$0xff]   ;;  %vm4326_vm12 = vcmask 74752   ;;  %vm5393_vm13 = vcmask 521221  }
  0x96   :  { %v6955_v59 = vld [vmem:[%s8669_s2 + $0x170] sm:$0xff]   ;;  %v6956_v60 = vld [vmem:[%s8669_s2 + $0x178] sm:$0xff]   ;;  %v6957_v61 = vld [vmem:[%s8669_s2 + $0x180] sm:$0xff]  }
  0x97   :  { %v6958_v62 = vld [vmem:[%s8669_s2 + $0x188] sm:$0xff]   ;;  %v6959_v63 = vld [vmem:[%s8669_s2 + $0x190] sm:$0xff]   ;;  %v6960_v0 = vld [vmem:[%s8669_s2 + $0x198] sm:$0xff]  }
  0x98   :  { %6246 = vmatmul.mubr.msk.bf16.gmra.mrb[64].mxu0 %vm602_vm2, %v6942_v45  ;;  %v6963_v1 = vld [vmem:[%s8669_s2 + $0x1a0] sm:$0xff]   ;;  %v6964_v2 = vld [vmem:[%s8669_s2 + $0x1a8] sm:$0xff]   ;;  %v6968_v3 = vld [vmem:[%s8669_s2 + $0x1b0] sm:$0xff]  }
  0x99   :  { %6249 = vmatprep.mubr.msk.bf16.mxu0 %vm602_vm2, %v6943_v46  ;;  %v7537_v4 = vld [vmem:[%s8671_s7] ss:$0 sm:$0xff]  ;;  %v6969_v8 = vld [vmem:[%s8669_s2 + $0x1b8] sm:$0xff]   ;;  %v6972_v24 = vld [vmem:[%s8669_s2 + $0x1c8] sm:$0xff]  }
  0x9a   :  { %v6971_v11 = vld [vmem:[%s8669_s2 + $0x1c0] sm:$0xff]   ;;  %v6974_v27 = vld [vmem:[%s8669_s2 + $0x1d0] sm:$0xff]   ;;  %v6975_v40 = vld [vmem:[%s8669_s2 + $0x1d8] sm:$0xff]  }
  0x9b   :  { %v6976_v43 = vld [vmem:[%s8669_s2 + $0x1e0] sm:$0xff]   ;;  %vm8328_vm10 = vmpackc.low %vm4043_vm5, %vm4043_vm5 }
  0xa0   :  { %6250 = vmatmul.mubr.msk.bf16.gmra.mrb[68].mxu0 %vm602_vm2, %v6944_v48 }
  0xa1   :  { %6253 = vmatprep.mubr.msk.bf16.mxu0 %vm602_vm2, %v6945_v49 }
  0xa8   :  { %6254 = vmatmul.mubr.msk.bf16.gmra.mrb[72].mxu0 %vm602_vm2, %v6946_v50 }
  0xa9   :  { %6257 = vmatprep.mubr.msk.bf16.mxu0 %vm602_vm2, %v6947_v51 }
  0xb0   :  { %6258 = vmatmul.mubr.msk.bf16.gmra.mrb[76].mxu0 %vm602_vm2, %v6948_v52 }
  0xb1   :  { %6261 = vmatprep.mubr.msk.bf16.mxu0 %vm602_vm2, %v6949_v53 }
  0xb8   :  { %6262 = vmatmul.mubr.msk.bf16.gmra.mrb[80].mxu0 %vm602_vm2, %v6950_v54 }
  0xb9   :  { %6265 = vmatprep.mubr.msk.bf16.mxu0 %vm602_vm2, %v6951_v55 }
  0xc0   :  { %6266 = vmatmul.mubr.msk.bf16.gmra.mrb[84].mxu0 %vm602_vm2, %v6952_v56 }
  0xc1   :  { %6269 = vmatprep.mubr.msk.bf16.mxu0 %vm602_vm2, %v6953_v57  ;;  %v6977_v57 = vld [vmem:[%s8669_s2 + $0x1e8] sm:$0xff]  }
  0xc8   :  { %6270 = vmatmul.mubr.msk.bf16.gmra.mrb[88].mxu0 %vm602_vm2, %v6954_v58 }
  0xc9   :  { %6273 = vmatprep.mubr.msk.bf16.mxu0 %vm602_vm2, %v6955_v59 }
  0xd0   :  { %6274 = vmatmul.mubr.msk.bf16.gmra.mrb[92].mxu0 %vm602_vm2, %v6956_v60  ;;  %v6979_v60 = vld [vmem:[%s8669_s2 + $0x1f0] sm:$0xff]  }
  0xd1   :  { %6277 = vmatprep.mubr.msk.bf16.mxu0 %vm602_vm2, %v6957_v61 }
  0xd8   :  { %6278 = vmatmul.mubr.msk.bf16.gmra.mrb[96].mxu0 %vm602_vm2, %v6958_v62 }
  0xd9   :  { %6281 = vmatprep.mubr.msk.bf16.mxu0 %vm602_vm2, %v6959_v63 }
  0xe0   :  { %6282 = vmatmul.mubr.msk.bf16.gmra.mrb[100].mxu0 %vm602_vm2, %v6960_v0 }
  0xe1   :  { %6285 = vmatprep.mubr.msk.bf16.mxu0 %vm602_vm2, %v6963_v1 }
  0xe8   :  { %6286 = vmatmul.mubr.msk.bf16.gmra.mrb[104].mxu0 %vm602_vm2, %v6964_v2 }
  0xe9   :  { %6289 = vmatprep.mubr.msk.bf16.mxu0 %vm602_vm2, %v6968_v3 }
  0xeb   :  { %v6183_v5 = vpop.f32.mrb[0].mxu0 }
  0xec   :  { %v869_v6 = vadd.f32 %v6183_v5, %v7537_v4  ;;  %v860_v7 = vpop.f32.mrb[1].mxu0 }
  0xed   :  { %v861_v9 = vadd.f32 %v7537_v4, %v860_v7  ;;  %v6184_v10 = vpop.f32.mrb[2].mxu0 }
  0xee   :  { %v872_v12 = vadd.f32 %v6184_v10, %v7537_v4  ;;  %v863_v13 = vpop.f32.mrb[3].mxu0  ;;  %v1437_v15 = vmax.f32 %v869_v6, 0.0  ;;  %v6980_v10 = vld [vmem:[%s8669_s2 + $0x1f8] sm:$0xff]  }
  0xef   :  { %v864_v14 = vadd.f32 %v7537_v4, %v863_v13  ;;  %v1435_v17 = vmax.f32 %v861_v9, 0.0  ;;  %v6981_v13 = vld [vmem:[%s8669_s2 + $0x200] sm:$0xff]  }
  0xf0   :  { %v1438_v16 = vmax.f32 %v872_v12, 0.0  ;;  %6290 = vmatmul.mubr.msk.bf16.gmra.mrb[108].mxu0 %vm602_vm2, %v6969_v8 }
  0xf1   :  { %v1436_v18 = vmax.f32 %v864_v14, 0.0  ;;  %6293 = vmatprep.mubr.msk.bf16.mxu0 %vm602_vm2, %v6971_v11 }
  0xf2   :  { %v7552_v19 = vpack.c.bf16 %v1438_v16, %v1437_v15 }
  0xf3   :  { %v7554_v20 = vpack.c.bf16 %v1436_v18, %v1435_v17  ;;  %v6187_v21 = vpop.f32.mrb[4].mxu0 }
  0xf4   :  { %v885_v22 = vadd.f32 %v6187_v21, %v7537_v4  ;;  %v876_v23 = vpop.f32.mrb[5].mxu0 }
  0xf5   :  { %v877_v25 = vadd.f32 %v7537_v4, %v876_v23  ;;  %v6188_v26 = vpop.f32.mrb[6].mxu0 }
  0xf6   :  { %v888_v28 = vadd.f32 %v6188_v26, %v7537_v4  ;;  %v879_v29 = vpop.f32.mrb[7].mxu0  ;;  %v1441_v31 = vmax.f32 %v885_v22, 0.0 }
  0xf7   :  { %v880_v30 = vadd.f32 %v7537_v4, %v879_v29  ;;  %v1439_v33 = vmax.f32 %v877_v25, 0.0  ;;  %v6982_v29 = vld [vmem:[%s8669_s2 + $0x208] sm:$0xff]  }
  0xf8   :  { %v1442_v32 = vmax.f32 %v888_v28, 0.0  ;;  %6294 = vmatmul.mubr.msk.bf16.gmra.mrb[112].mxu0 %vm602_vm2, %v6972_v24  ;;  %v6978_v28 = vld [vmem:[%s8670_s29 + $0x8] sm:$0xff]  }
  0xf9   :  { %v1440_v34 = vmax.f32 %v880_v30, 0.0  ;;  %6297 = vmatprep.mubr.msk.bf16.mxu0 %vm602_vm2, %v6974_v27 }
  0xfa   :  { %v7568_v35 = vpack.c.bf16 %v1442_v32, %v1441_v31  ;;  %v6984_v32 = vld [vmem:[%s8669_s2 + $0x210] sm:$0xff]  }
  0xfb   :  { %v7570_v36 = vpack.c.bf16 %v1440_v34, %v1439_v33  ;;  %v6191_v37 = vpop.f32.mrb[8].mxu0 }
  0xfc   :  { %v901_v38 = vadd.f32 %v6191_v37, %v7537_v4  ;;  %v892_v39 = vpop.f32.mrb[9].mxu0 }
  0xfd   :  { %v893_v41 = vadd.f32 %v7537_v4, %v892_v39  ;;  %v6192_v42 = vpop.f32.mrb[10].mxu0 }
  0xfe   :  { %v904_v44 = vadd.f32 %v6192_v42, %v7537_v4  ;;  %v895_v45 = vpop.f32.mrb[11].mxu0  ;;  %v1445_v48 = vmax.f32 %v901_v38, 0.0 }
  0xff   :  { %v896_v46 = vadd.f32 %v7537_v4, %v895_v45  ;;  %v1443_v50 = vmax.f32 %v893_v41, 0.0 }
 0x100   :  { %v1446_v49 = vmax.f32 %v904_v44, 0.0  ;;  %6298 = vmatmul.mubr.msk.bf16.gmra.mrb[116].mxu0 %vm602_vm2, %v6975_v40  ;;  %v7636_v40 = vld [vmem:[%s8670_s29 + $0x20] sm:$0xff]  }
 0x101   :  { %v1444_v51 = vmax.f32 %v896_v46, 0.0  ;;  %6301 = vmatprep.mubr.msk.bf16.mxu0 %vm602_vm2, %v6976_v43 }
 0x102   :  { %v7584_v52 = vpack.c.bf16 %v1446_v49, %v1445_v48  ;;  %v6985_v48 = vld [vmem:[%s8669_s2 + $0x218] sm:$0xff]   ;;  %s8673_s2 = sld [smem:[#allocation10_spill]] }
 0x103   :  { %v7586_v53 = vpack.c.bf16 %v1444_v51, %v1443_v50  ;;  %v6195_v54 = vpop.f32.mrb[12].mxu0 }
 0x104   :  { %v917_v55 = vadd.f32 %v6195_v54, %v7537_v4  ;;  %v908_v56 = vpop.f32.mrb[13].mxu0 }
 0x105   :  { %v909_v58 = vadd.f32 %v7537_v4, %v908_v56  ;;  %v6196_v59 = vpop.f32.mrb[14].mxu0 }
 0x106   :  { %v920_v61 = vadd.f32 %v6196_v59, %v7537_v4  ;;  %v911_v62 = vpop.f32.mrb[15].mxu0  ;;  %v1449_v0 = vmax.f32 %v917_v55, 0.0 }
 0x107   :  { %v912_v63 = vadd.f32 %v7537_v4, %v911_v62  ;;  %v1447_v2 = vmax.f32 %v909_v58, 0.0 }
 0x108   :  { %v1450_v1 = vmax.f32 %v920_v61, 0.0  ;;  %6302 = vmatmul.mubr.msk.bf16.gmra.mrb[120].mxu0 %vm602_vm2, %v6977_v57 }
 0x109   :  { %v1448_v3 = vmax.f32 %v912_v63, 0.0  ;;  %6305 = vmatprep.mubr.msk.bf16.mxu0 %vm602_vm2, %v6979_v60 }
 0x10a   :  { %v7600_v5 = vpack.c.bf16 %v1450_v1, %v1449_v0 }
 0x10b   :  { %v7602_v6 = vpack.c.bf16 %v1448_v3, %v1447_v2  ;;  %v6199_v7 = vpop.f32.mrb[16].mxu0 }
 0x10c   :  { %v933_v8 = vadd.f32 %v6199_v7, %v7537_v4  ;;  %v924_v9 = vpop.f32.mrb[17].mxu0 }
 0x10d   :  { %v925_v11 = vadd.f32 %v7537_v4, %v924_v9  ;;  %v6200_v12 = vpop.f32.mrb[18].mxu0 }
 0x10e   :  { %v936_v14 = vadd.f32 %v6200_v12, %v7537_v4  ;;  %v927_v15 = vpop.f32.mrb[19].mxu0  ;;  %v1453_v17 = vmax.f32 %v933_v8, 0.0 }
 0x10f   :  { %v928_v16 = vadd.f32 %v7537_v4, %v927_v15  ;;  %v1451_v21 = vmax.f32 %v925_v11, 0.0 }
 0x110   :  { %v1454_v18 = vmax.f32 %v936_v14, 0.0  ;;  %6306 = vmatmul.mubr.msk.bf16.gmra.mrb[124].mxu0 %vm602_vm2, %v6980_v10 }
 0x111   :  { %v1452_v22 = vmax.f32 %v928_v16, 0.0  ;;  %6309 = vmatprep.mubr.msk.bf16.mxu0 %vm602_vm2, %v6981_v13 }
 0x112   :  { %v1588_v23 = vpack.c.bf16 %v1454_v18, %v1453_v17 }
 0x113   :  { %v1587_v24 = vpack.c.bf16 %v1452_v22, %v1451_v21  ;;  %v6203_v25 = vpop.f32.mrb[20].mxu0 }
 0x114   :  { %v949_v26 = vadd.f32 %v6203_v25, %v7537_v4  ;;  %v940_v27 = vpop.f32.mrb[21].mxu0 }
 0x115   :  { %v941_v30 = vadd.f32 %v7537_v4, %v940_v27  ;;  %v6204_v31 = vpop.f32.mrb[22].mxu0  ;;  %6329 = vmatprep.mubr.msk.bf16.mxu1 %vm1672_vm3, %v1587_v24 }
 0x116   :  { %v952_v33 = vadd.f32 %v6204_v31, %v7537_v4  ;;  %v943_v34 = vpop.f32.mrb[23].mxu0  ;;  %6330 = vmatmul.mubr.msk.bf16.vlgmr.msra.gmra.mrb[8].mxu1 %vm1672_vm3, %v1588_v23  ;;  %v1457_v38 = vmax.f32 %v949_v26, 0.0 }
 0x117   :  { %v944_v37 = vadd.f32 %v7537_v4, %v943_v34  ;;  %6346 = vmatpush3.bf16.msra.mxu1 %v7452_v47  ;;  %v1455_v41 = vmax.f32 %v941_v30, 0.0 }
 0x118   :  { %v1458_v39 = vmax.f32 %v952_v33, 0.0  ;;  %6347 = vmatprep.subr.bf16.mxu1 %v6978_v28  ;;  %6310 = vmatmul.mubr.msk.bf16.gmra.mrb[128].mxu0 %vm602_vm2, %v6982_v29 }
 0x119   :  { %v1456_v42 = vmax.f32 %v944_v37, 0.0  ;;  %6313 = vmatprep.mubr.msk.bf16.mxu0 %vm602_vm2, %v6984_v32  ;;  %v6986_v32 = vld [vmem:[%s8670_s29 + $0x28] sm:$0xff]  }
 0x11a   :  { %v1590_v43 = vpack.c.bf16 %v1458_v39, %v1457_v38 }
 0x11b   :  { %v1589_v44 = vpack.c.bf16 %v1456_v42, %v1455_v41  ;;  %v6207_v45 = vpop.f32.mrb[24].mxu0  ;;  %6348 = vmatpush3.bf16.msra.mxu1 %v6978_v28 }
 0x11c   :  { %v965_v47 = vadd.f32 %v6207_v45, %v7537_v4  ;;  %v956_v46 = vpop.f32.mrb[25].mxu0  ;;  %6365 = vmatprep.subr.bf16.mxu1 %v7636_v40  ;;  %v7683_v45 = vld [vmem:[%s8670_s29 + $0x30] sm:$0xff]  }
 0x11d   :  { %v957_v49 = vadd.f32 %v7537_v4, %v956_v46  ;;  %v6208_v50 = vpop.f32.mrb[26].mxu0  ;;  %6333 = vmatprep.mubr.msk.bf16.mxu1 %vm1672_vm3, %v1589_v44 }
 0x11e   :  { %v968_v51 = vadd.f32 %v6208_v50, %v7537_v4  ;;  %v959_v54 = vpop.f32.mrb[27].mxu0  ;;  %6334 = vmatmul.mubr.msk.bf16.gmra.mrb[12].mxu1 %vm1672_vm3, %v1590_v43  ;;  %v1461_v56 = vmax.f32 %v965_v47, 0.0 }
 0x11f   :  { %v960_v55 = vadd.f32 %v7537_v4, %v959_v54  ;;  %v1459_v58 = vmax.f32 %v957_v49, 0.0 }
 0x120   :  { %v1462_v57 = vmax.f32 %v968_v51, 0.0  ;;  %6314 = vmatmul.mubr.msk.bf16.gmra.mrb[132].mxu0 %vm602_vm2, %v6985_v48 }
 0x121   :  { %v1460_v59 = vmax.f32 %v960_v55, 0.0 }
 0x122   :  { %v1592_v60 = vpack.c.bf16 %v1462_v57, %v1461_v56 }
 0x123   :  { %v1591_v61 = vpack.c.bf16 %v1460_v59, %v1459_v58  ;;  %v6211_v62 = vpop.f32.mrb[28].mxu0 }
 0x124   :  { %v981_v63 = vadd.f32 %v6211_v62, %v7537_v4  ;;  %v972_v0 = vpop.f32.mrb[29].mxu0 }
 0x125   :  { %v973_v1 = vadd.f32 %v7537_v4, %v972_v0  ;;  %v6212_v2 = vpop.f32.mrb[30].mxu0  ;;  %6337 = vmatprep.mubr.msk.bf16.mxu1 %vm1672_vm3, %v1591_v61 }
 0x126   :  { %v984_v3 = vadd.f32 %v6212_v2, %v7537_v4  ;;  %v975_v7 = vpop.f32.mrb[31].mxu0  ;;  %6338 = vmatmul.mubr.msk.bf16.gmra.mrb[16].mxu1 %vm1672_vm3, %v1592_v60  ;;  %v1465_v9 = vmax.f32 %v981_v63, 0.0 }
 0x127   :  { %v976_v8 = vadd.f32 %v7537_v4, %v975_v7  ;;  %v1463_v11 = vmax.f32 %v973_v1, 0.0 }
 0x128   :  { %v1466_v10 = vmax.f32 %v984_v3, 0.0 }
 0x129   :  { %v1464_v12 = vmax.f32 %v976_v8, 0.0 }
 0x12a   :  { %v1594_v13 = vpack.c.bf16 %v1466_v10, %v1465_v9 }
 0x12b   :  { %v1593_v14 = vpack.c.bf16 %v1464_v12, %v1463_v11  ;;  %v6215_v15 = vpop.f32.mrb[32].mxu0 }
 0x12c   :  { %v997_v16 = vadd.f32 %v6215_v15, %v7537_v4  ;;  %v988_v17 = vpop.f32.mrb[33].mxu0 }
 0x12d   :  { %6341 = vmatprep.mubr.msk.bf16.mxu1 %vm1672_vm3, %v1593_v14  ;;  %v989_v18 = vadd.f32 %v7537_v4, %v988_v17  ;;  %v6216_v21 = vpop.f32.mrb[34].mxu0 }
 0x12e   :  { %6342 = vmatmul.mubr.msk.bf16.gmra.mrb[20].mxu1 %vm1672_vm3, %v1594_v13  ;;  %v1469_v22 = vmax.f32 %v997_v16, 0.0  ;;  %v1000_v23 = vadd.f32 %v6216_v21, %v7537_v4  ;;  %v991_v24 = vpop.f32.mrb[35].mxu0 }
 0x12f   :  { %6349 = vmatprep.mubr.msk.bf16.mxu1 %vm1672_vm3, %v7554_v20  ;;  %v1467_v25 = vmax.f32 %v989_v18, 0.0  ;;  %v992_v26 = vadd.f32 %v7537_v4, %v991_v24 }
 0x130   :  { %v1470_v27 = vmax.f32 %v1000_v23, 0.0 }
 0x131   :  { %v1468_v28 = vmax.f32 %v992_v26, 0.0 }
 0x132   :  { %v7664_v29 = vpack.c.bf16 %v1470_v27, %v1469_v22 }
 0x133   :  { %v7666_v30 = vpack.c.bf16 %v1468_v28, %v1467_v25  ;;  %v6219_v31 = vpop.f32.mrb[36].mxu0 }
 0x134   :  { %v1013_v33 = vadd.f32 %v6219_v31, %v7537_v4  ;;  %v1004_v34 = vpop.f32.mrb[37].mxu0 }
 0x135   :  { %v1005_v37 = vadd.f32 %v7537_v4, %v1004_v34  ;;  %v6220_v20 = vpop.f32.mrb[38].mxu0 }
 0x136   :  { %6350 = vmatmul.mubr.msk.bf16.vlgmr.msra.gmra.mrb[8].mxu1 %vm1672_vm3, %v7552_v19  ;;  %v1473_v38 = vmax.f32 %v1013_v33, 0.0  ;;  %v1016_v39 = vadd.f32 %v6220_v20, %v7537_v4  ;;  %v1007_v41 = vpop.f32.mrb[39].mxu0  ;;  %v6319_v20 = vpop.f32.mrb[0].mxu1 }
 0x137   :  { %6353 = vmatprep.mubr.msk.bf16.mxu1 %vm1672_vm3, %v7570_v36  ;;  %6366 = vmatpush3.bf16.msra.mxu1 %v7636_v40  ;;  %v1471_v42 = vmax.f32 %v1005_v37, 0.0  ;;  %v1008_v43 = vadd.f32 %v7537_v4, %v1007_v41  ;;  %v1413_v41 = vadd.f32 %v6319_v20, %v7537_v4 }
 0x138   :  { %6367 = vmatprep.subr.bf16.mxu1 %v6986_v32  ;;  %v1474_v44 = vmax.f32 %v1016_v39, 0.0 }
 0x139   :  { %v1472_v19 = vmax.f32 %v1008_v43, 0.0 }
 0x13a   :  { %v7685_v47 = vpack.c.bf16 %v1474_v44, %v1473_v38 }
 0x13b   :  { %6368 = vmatpush3.bf16.msra.mxu1 %v6986_v32  ;;  %v1597_v46 = vpack.c.bf16 %v1472_v19, %v1471_v42  ;;  %v6223_v48 = vpop.f32.mrb[40].mxu0  ;;  %v1404_v42 = vpop.f32.mrb[1].mxu1 }
 0x13c   :  { %6385 = vmatprep.subr.bf16.mxu1 %v7683_v45  ;;  %v1029_v36 = vadd.f32 %v6223_v48, %v7537_v4  ;;  %v1020_v40 = vpop.f32.mrb[41].mxu0  ;;  %v1405_v44 = vadd.f32 %v7537_v4, %v1404_v42  ;;  %v6320_v19 = vpop.f32.mrb[2].mxu1 }
 0x13d   :  { %v1021_v49 = vadd.f32 %v7537_v4, %v1020_v40  ;;  %v6224_v50 = vpop.f32.mrb[42].mxu0 }
 0x13e   :  { %6354 = vmatmul.mubr.msk.bf16.gmra.mrb[12].mxu1 %vm1672_vm3, %v7568_v35  ;;  %v1477_v51 = vmax.f32 %v1029_v36, 0.0  ;;  %v1032_v54 = vadd.f32 %v6224_v50, %v7537_v4  ;;  %v1023_v55 = vpop.f32.mrb[43].mxu0  ;;  %v1407_v36 = vpop.f32.mrb[3].mxu1 }
 0x13f   :  { %6357 = vmatprep.mubr.msk.bf16.mxu1 %vm1672_vm3, %v7586_v53  ;;  %v1475_v56 = vmax.f32 %v1021_v49, 0.0  ;;  %v1024_v57 = vadd.f32 %v7537_v4, %v1023_v55  ;;  %v1571_v49 = vmax.f32 %v1405_v44, 0.0  ;;  %v1408_v50 = vadd.f32 %v7537_v4, %v1407_v36 }
 0x140   :  { %v1478_v58 = vmax.f32 %v1032_v54, 0.0 }
 0x141   :  { %v1476_v59 = vmax.f32 %v1024_v57, 0.0 }
 0x142   :  { %v7696_v60 = vpack.c.bf16 %v1478_v58, %v1477_v51  ;;  %v1572_v58 = vmax.f32 %v1408_v50, 0.0 }
 0x143   :  { %v7698_v61 = vpack.c.bf16 %v1476_v59, %v1475_v56  ;;  %v6227_v62 = vpop.f32.mrb[44].mxu0 }
 0x144   :  { %v1045_v63 = vadd.f32 %v6227_v62, %v7537_v4  ;;  %v1036_v35 = vpop.f32.mrb[45].mxu0 }
 0x145   :  { %v1037_v0 = vadd.f32 %v7537_v4, %v1036_v35  ;;  %v6228_v1 = vpop.f32.mrb[46].mxu0 }
 0x146   :  { %6358 = vmatmul.mubr.msk.bf16.gmra.mrb[16].mxu1 %vm1672_vm3, %v7584_v52  ;;  %v1481_v53 = vmax.f32 %v1045_v63, 0.0  ;;  %v1048_v2 = vadd.f32 %v6228_v1, %v7537_v4  ;;  %v1039_v3 = vpop.f32.mrb[47].mxu0 }
 0x147   :  { %6361 = vmatprep.mubr.msk.bf16.mxu1 %vm1672_vm3, %v7602_v6  ;;  %v1479_v7 = vmax.f32 %v1037_v0, 0.0  ;;  %v1040_v8 = vadd.f32 %v7537_v4, %v1039_v3 }
 0x148   :  { %v1482_v9 = vmax.f32 %v1048_v2, 0.0  ;;  %v6323_v2 = vpop.f32.mrb[4].mxu1 }
 0x149   :  { %v1480_v10 = vmax.f32 %v1040_v8, 0.0  ;;  %v1429_v8 = vadd.f32 %v6323_v2, %v7537_v4 }
 0x14a   :  { %v7708_v11 = vpack.c.bf16 %v1482_v9, %v1481_v53  ;;  %v7756_v53 = vpack.c.bf16 %v1572_v58, %v1571_v49  ;;  %v1420_v9 = vpop.f32.mrb[5].mxu1 }
 0x14b   :  { %v7710_v12 = vpack.c.bf16 %v1480_v10, %v1479_v7  ;;  %v6231_v13 = vpop.f32.mrb[48].mxu0 }
 0x14c   :  { %v1061_v14 = vadd.f32 %v6231_v13, %v7537_v4  ;;  %v1052_v52 = vpop.f32.mrb[49].mxu0  ;;  %v1421_v13 = vadd.f32 %v7537_v4, %v1420_v9 }
 0x14d   :  { %v1053_v15 = vadd.f32 %v7537_v4, %v1052_v52  ;;  %v6232_v16 = vpop.f32.mrb[50].mxu0  ;;  %v7155_v52 = vmov 0.0  }
 0x14e   :  { %6362 = vmatmul.mubr.msk.bf16.gmra.mrb[20].mxu1 %vm1672_vm3, %v7600_v5  ;;  %v1485_v6 = vmax.f32 %v1061_v14, 0.0  ;;  %v1064_v17 = vadd.f32 %v6232_v16, %v7537_v4  ;;  %v1055_v18 = vpop.f32.mrb[51].mxu0  ;;  %v6988_v5 = vld [vmem:[%s8670_s29 + $0x38] sm:$0xff]   ;;  %v6324_v14 = vpop.f32.mrb[6].mxu1  ;;  %6505 = vmatprep.subr.bf16.mxu0 %v7155_v52  ;;  %v1577_v16 = vmax.f32 %v1429_v8, 0.0 }
 0x14f   :  { %6369 = vmatprep.mubr.msk.bf16.mxu1 %vm1672_vm3, %v7666_v30  ;;  %v1483_v21 = vmax.f32 %v1053_v15, 0.0  ;;  %v1056_v22 = vadd.f32 %v7537_v4, %v1055_v18  ;;  %v1575_v18 = vmax.f32 %v1421_v13, 0.0  ;;  %6509 = vmatprep.mubr.msk.bf16.mxu0 %vm7156_vm4, %v7155_v52 }
 0x150   :  { %v1486_v23 = vmax.f32 %v1064_v17, 0.0 }
 0x151   :  { %v1484_v24 = vmax.f32 %v1056_v22, 0.0 }
 0x152   :  { %v7720_v25 = vpack.c.bf16 %v1486_v23, %v1485_v6  ;;  %v1423_v6 = vpop.f32.mrb[7].mxu1 }
 0x153   :  { %v7722_v26 = vpack.c.bf16 %v1484_v24, %v1483_v21  ;;  %v6235_v27 = vpop.f32.mrb[52].mxu0  ;;  %v1424_v21 = vadd.f32 %v7537_v4, %v1423_v6 }
 0x154   :  { %v1077_v28 = vadd.f32 %v6235_v27, %v7537_v4  ;;  %v1068_v31 = vpop.f32.mrb[53].mxu0 }
 0x155   :  { %v1069_v32 = vadd.f32 %v7537_v4, %v1068_v31  ;;  %v6236_v30 = vpop.f32.mrb[54].mxu0 }
 0x156   :  { %6370 = vmatmul.mubr.msk.bf16.vlgmr.msra.gmra.mrb[8].mxu1 %vm1672_vm3, %v7664_v29  ;;  %v1489_v33 = vmax.f32 %v1077_v28, 0.0  ;;  %v1080_v34 = vadd.f32 %v6236_v30, %v7537_v4  ;;  %v1071_v37 = vpop.f32.mrb[55].mxu0  ;;  %v7739_v29 = vld [vmem:[%s8670_s29 + $0x40] sm:$0xff]   ;;  %v1576_v28 = vmax.f32 %v1424_v21, 0.0 }
 0x157   :  { %6386 = vmatpush3.bf16.msra.mxu1 %v7683_v45  ;;  %6373 = vmatprep.mubr.msk.bf16.mxu1 %vm1672_vm3, %v1597_v46  ;;  %v1487_v38 = vmax.f32 %v1069_v32, 0.0  ;;  %v1072_v39 = vadd.f32 %v7537_v4, %v1071_v37  ;;  %v1573_v45 = vmax.f32 %v1413_v41, 0.0  ;;  %v1416_v46 = vadd.f32 %v6320_v19, %v7537_v4 }
 0x158   :  { %6387 = vmatprep.subr.bf16.mxu1 %v6988_v5  ;;  %v1490_v43 = vmax.f32 %v1080_v34, 0.0  ;;  %v7781_v20 = vpack.c.bf16 %v1576_v28, %v1575_v18 }
 0x159   :  { %v1488_v48 = vmax.f32 %v1072_v39, 0.0  ;;  %v1574_v55 = vmax.f32 %v1416_v46, 0.0 }
 0x15a   :  { %v7743_v40 = vpack.c.bf16 %v1490_v43, %v1489_v33 }
 0x15b   :  { %6388 = vmatpush3.bf16.msra.mxu1 %v6988_v5  ;;  %v7746_v51 = vpack.c.bf16 %v1488_v48, %v1487_v38  ;;  %v6239_v54 = vpop.f32.mrb[56].mxu0  ;;  %v7751_v63 = vpack.c.bf16 %v1574_v55, %v1573_v45 }
 0x15c   :  { %6405 = vmatprep.subr.bf16.mxu1 %v7739_v29  ;;  %v1093_v56 = vadd.f32 %v6239_v54, %v7537_v4  ;;  %v1084_v57 = vpop.f32.mrb[57].mxu0 }
 0x15d   :  { %v1085_v59 = vadd.f32 %v7537_v4, %v1084_v57  ;;  %v6240_v62 = vpop.f32.mrb[58].mxu0 }
 0x15e   :  { %6374 = vmatmul.mubr.msk.bf16.gmra.mrb[12].mxu1 %vm1672_vm3, %v7685_v47  ;;  %v1493_v35 = vmax.f32 %v1093_v56, 0.0  ;;  %v1096_v0 = vadd.f32 %v6240_v62, %v7537_v4  ;;  %v1087_v1 = vpop.f32.mrb[59].mxu0  ;;  %v6996_v47 = vld [vmem:[%s8672_s4 + $0x10] sm:$0xff]  }
 0x15f   :  { %6377 = vmatprep.mubr.msk.bf16.mxu1 %vm1672_vm3, %v7698_v61  ;;  %v1491_v3 = vmax.f32 %v1085_v59, 0.0  ;;  %v1088_v7 = vadd.f32 %v7537_v4, %v1087_v1  ;;  %v1432_v61 = vadd.f32 %v6324_v14, %v7537_v4  ;;  %6506 = vmatpush3.bf16.msra.mxu0 %v6996_v47  ;;  %v7817_v47 = vld [vmem:[%s8670_s29 + $0x50] sm:$0xff]  }
 0x160   :  { %v1494_v10 = vmax.f32 %v1096_v0, 0.0  ;;  %6507 = vmatprep.subr.bf16.mxu0 %v7155_v52 }
 0x161   :  { %v1492_v15 = vmax.f32 %v1088_v7, 0.0  ;;  %v1578_v24 = vmax.f32 %v1432_v61, 0.0 }
 0x162   :  { %v7768_v17 = vpack.c.bf16 %v1494_v10, %v1493_v35 }
 0x163   :  { %v7772_v22 = vpack.c.bf16 %v1492_v15, %v1491_v3  ;;  %v6243_v23 = vpop.f32.mrb[60].mxu0  ;;  %v7776_v30 = vpack.c.bf16 %v1578_v24, %v1577_v16 }
 0x164   :  { %v1109_v27 = vadd.f32 %v6243_v23, %v7537_v4  ;;  %v1100_v5 = vpop.f32.mrb[61].mxu0 }
 0x165   :  { %v1101_v31 = vadd.f32 %v7537_v4, %v1100_v5  ;;  %v6244_v32 = vpop.f32.mrb[62].mxu0 }
 0x166   :  { %6378 = vmatmul.mubr.msk.bf16.gmra.mrb[16].mxu1 %vm1672_vm3, %v7696_v60  ;;  %v1497_v33 = vmax.f32 %v1109_v27, 0.0  ;;  %v1112_v34 = vadd.f32 %v6244_v32, %v7537_v4  ;;  %v1103_v37 = vpop.f32.mrb[63].mxu0 }
 0x167   :  { %6381 = vmatprep.mubr.msk.bf16.mxu1 %vm1672_vm3, %v7710_v12  ;;  %v1495_v38 = vmax.f32 %v1101_v31, 0.0  ;;  %v1104_v39 = vadd.f32 %v7537_v4, %v1103_v37 }
 0x168   :  { %v1498_v41 = vmax.f32 %v1112_v34, 0.0 }
 0x169   :  { %v1496_v42 = vmax.f32 %v1104_v39, 0.0 }
 0x16a   :  { %v7786_v43 = vpack.c.bf16 %v1498_v41, %v1497_v33 }
 0x16b   :  { %v7788_v44 = vpack.c.bf16 %v1496_v42, %v1495_v38  ;;  %v6247_v19 = vpop.f32.mrb[64].mxu0 }
 0x16c   :  { %v1125_v60 = vadd.f32 %v6247_v19, %v7537_v4  ;;  %v1116_v48 = vpop.f32.mrb[65].mxu0 }
 0x16d   :  { %v1117_v45 = vadd.f32 %v7537_v4, %v1116_v48  ;;  %v6248_v46 = vpop.f32.mrb[66].mxu0 }
 0x16e   :  { %6382 = vmatmul.mubr.msk.bf16.gmra.mrb[20].mxu1 %vm1672_vm3, %v7708_v11  ;;  %v1501_v12 = vmax.f32 %v1125_v60, 0.0  ;;  %v1128_v36 = vadd.f32 %v6248_v46, %v7537_v4  ;;  %v1119_v49 = vpop.f32.mrb[67].mxu0  ;;  %v6990_v11 = vld [vmem:[%s8670_s29 + $0x48] sm:$0xff]  }
 0x16f   :  { %6389 = vmatprep.mubr.msk.bf16.mxu1 %vm1672_vm3, %v7722_v26  ;;  %v1499_v50 = vmax.f32 %v1117_v45, 0.0  ;;  %v1120_v54 = vadd.f32 %v7537_v4, %v1119_v49 }
 0x170   :  { %v1502_v55 = vmax.f32 %v1128_v36, 0.0 }
 0x171   :  { %v1500_v56 = vmax.f32 %v1120_v54, 0.0 }
 0x172   :  { %v7798_v57 = vpack.c.bf16 %v1502_v55, %v1501_v12 }
 0x173   :  { %v7800_v58 = vpack.c.bf16 %v1500_v56, %v1499_v50  ;;  %v6251_v59 = vpop.f32.mrb[68].mxu0 }
 0x174   :  { %v1141_v62 = vadd.f32 %v6251_v59, %v7537_v4  ;;  %v1132_v35 = vpop.f32.mrb[69].mxu0 }
 0x175   :  { %v1133_v0 = vadd.f32 %v7537_v4, %v1132_v35  ;;  %v6252_v26 = vpop.f32.mrb[70].mxu0 }
 0x176   :  { %6390 = vmatmul.mubr.msk.bf16.vlgmr.msra.gmra.mrb[8].mxu1 %vm1672_vm3, %v7720_v25  ;;  %v1505_v1 = vmax.f32 %v1141_v62, 0.0  ;;  %v1144_v2 = vadd.f32 %v6252_v26, %v7537_v4  ;;  %v1135_v3 = vpop.f32.mrb[71].mxu0 }
 0x177   :  { %6406 = vmatpush3.bf16.msra.mxu1 %v7739_v29  ;;  %6393 = vmatprep.mubr.msk.bf16.mxu1 %vm1672_vm3, %v7746_v51  ;;  %v1503_v7 = vmax.f32 %v1133_v0, 0.0  ;;  %v1136_v8 = vadd.f32 %v7537_v4, %v1135_v3 }
 0x178   :  { %6407 = vmatprep.subr.bf16.mxu1 %v6990_v11  ;;  %v1506_v9 = vmax.f32 %v1144_v2, 0.0 }
 0x179   :  { %v1504_v25 = vmax.f32 %v1136_v8, 0.0 }
 0x17a   :  { %v7819_v10 = vpack.c.bf16 %v1506_v9, %v1505_v1 }
 0x17b   :  { %6408 = vmatpush3.bf16.msra.mxu1 %v6990_v11  ;;  %v1613_v13 = vpack.c.bf16 %v1504_v25, %v1503_v7  ;;  %v6255_v14 = vpop.f32.mrb[72].mxu0 }
 0x17c   :  { %6425 = vmatprep.subr.bf16.mxu1 %v7817_v47  ;;  %v1157_v29 = vadd.f32 %v6255_v14, %v7537_v4  ;;  %v1148_v51 = vpop.f32.mrb[73].mxu0  ;;  %v7872_v14 = vld [vmem:[%s8670_s29 + $0x60] sm:$0xff]  }
 0x17d   :  { %v1149_v15 = vadd.f32 %v7537_v4, %v1148_v51  ;;  %v6256_v16 = vpop.f32.mrb[74].mxu0 }
 0x17e   :  { %6394 = vmatmul.mubr.msk.bf16.gmra.mrb[12].mxu1 %vm1672_vm3, %v7743_v40  ;;  %v1509_v61 = vmax.f32 %v1157_v29, 0.0  ;;  %v1160_v6 = vadd.f32 %v6256_v16, %v7537_v4  ;;  %v1151_v18 = vpop.f32.mrb[75].mxu0 }
 0x17f   :  { %6397 = vmatprep.mubr.msk.bf16.mxu1 %vm1672_vm3, %v7772_v22  ;;  %v1507_v21 = vmax.f32 %v1149_v15, 0.0  ;;  %v1152_v23 = vadd.f32 %v7537_v4, %v1151_v18 }
 0x180   :  { %v1510_v24 = vmax.f32 %v1160_v6, 0.0 }
 0x181   :  { %v1508_v27 = vmax.f32 %v1152_v23, 0.0 }
 0x182   :  { %v7830_v5 = vpack.c.bf16 %v1510_v24, %v1509_v61 }
 0x183   :  { %v7832_v28 = vpack.c.bf16 %v1508_v27, %v1507_v21  ;;  %v6259_v31 = vpop.f32.mrb[76].mxu0 }
 0x184   :  { %v1173_v32 = vadd.f32 %v6259_v31, %v7537_v4  ;;  %v1164_v40 = vpop.f32.mrb[77].mxu0 }
 0x185   :  { %v1165_v33 = vadd.f32 %v7537_v4, %v1164_v40  ;;  %v6260_v34 = vpop.f32.mrb[78].mxu0 }
 0x186   :  { %6398 = vmatmul.mubr.msk.bf16.gmra.mrb[16].mxu1 %vm1672_vm3, %v7768_v17  ;;  %v1513_v22 = vmax.f32 %v1173_v32, 0.0  ;;  %v1176_v37 = vadd.f32 %v6260_v34, %v7537_v4  ;;  %v1167_v38 = vpop.f32.mrb[79].mxu0 }
 0x187   :  { %6401 = vmatprep.mubr.msk.bf16.mxu1 %vm1672_vm3, %v7788_v44  ;;  %v1511_v39 = vmax.f32 %v1165_v33, 0.0  ;;  %v1168_v41 = vadd.f32 %v7537_v4, %v1167_v38 }
 0x188   :  { %v1514_v42 = vmax.f32 %v1176_v37, 0.0 }
 0x189   :  { %v1512_v19 = vmax.f32 %v1168_v41, 0.0 }
 0x18a   :  { %v7842_v60 = vpack.c.bf16 %v1514_v42, %v1513_v22 }
 0x18b   :  { %v7844_v48 = vpack.c.bf16 %v1512_v19, %v1511_v39  ;;  %v6263_v45 = vpop.f32.mrb[80].mxu0 }
 0x18c   :  { %v1189_v46 = vadd.f32 %v6263_v45, %v7537_v4  ;;  %v1180_v17 = vpop.f32.mrb[81].mxu0 }
 0x18d   :  { %v1181_v12 = vadd.f32 %v7537_v4, %v1180_v17  ;;  %v6264_v36 = vpop.f32.mrb[82].mxu0 }
 0x18e   :  { %6402 = vmatmul.mubr.msk.bf16.gmra.mrb[20].mxu1 %vm1672_vm3, %v7786_v43  ;;  %v1517_v44 = vmax.f32 %v1189_v46, 0.0  ;;  %v1192_v49 = vadd.f32 %v6264_v36, %v7537_v4  ;;  %v1183_v50 = vpop.f32.mrb[83].mxu0  ;;  %v6992_v43 = vld [vmem:[%s8670_s29 + $0x58] sm:$0xff]  }
 0x18f   :  { %6409 = vmatprep.mubr.msk.bf16.mxu1 %vm1672_vm3, %v7800_v58  ;;  %v1515_v54 = vmax.f32 %v1181_v12, 0.0  ;;  %v1184_v55 = vadd.f32 %v7537_v4, %v1183_v50 }
 0x190   :  { %v1518_v56 = vmax.f32 %v1192_v49, 0.0 }
 0x191   :  { %v1516_v59 = vmax.f32 %v1184_v55, 0.0  ;;  %v7000_v55 = vld [vmem:[%s8672_s4 + $0x18] sm:$0xff]  }
 0x192   :  { %v7854_v11 = vpack.c.bf16 %v1518_v56, %v1517_v44  ;;  %6508 = vmatpush3.bf16.msra.mxu0 %v7000_v55 }
 0x193   :  { %v7856_v62 = vpack.c.bf16 %v1516_v59, %v1515_v54  ;;  %v6267_v35 = vpop.f32.mrb[84].mxu0  ;;  %6521 = vmatprep.subr.bf16.mxu0 %v7155_v52 }
 0x194   :  { %v1205_v0 = vadd.f32 %v6267_v35, %v7537_v4  ;;  %v1196_v26 = vpop.f32.mrb[85].mxu0 }
 0x195   :  { %v1197_v1 = vadd.f32 %v7537_v4, %v1196_v26  ;;  %v6268_v58 = vpop.f32.mrb[86].mxu0 }
 0x196   :  { %6410 = vmatmul.mubr.msk.bf16.vlgmr.msra.gmra.mrb[8].mxu1 %vm1672_vm3, %v7798_v57  ;;  %v1521_v2 = vmax.f32 %v1205_v0, 0.0  ;;  %v1208_v3 = vadd.f32 %v6268_v58, %v7537_v4  ;;  %v1199_v7 = vpop.f32.mrb[87].mxu0 }
 0x197   :  { %6426 = vmatpush3.bf16.msra.mxu1 %v7817_v47  ;;  %6413 = vmatprep.mubr.msk.bf16.mxu1 %vm1672_vm3, %v1613_v13  ;;  %v1519_v8 = vmax.f32 %v1197_v1, 0.0  ;;  %v1200_v9 = vadd.f32 %v7537_v4, %v1199_v7  ;;  %v6994_v1 = vld [vmem:[%s8670_s29 + $0x68] sm:$0xff]  }
 0x198   :  { %6427 = vmatprep.subr.bf16.mxu1 %v6992_v43  ;;  %v1522_v25 = vmax.f32 %v1208_v3, 0.0 }
 0x199   :  { %v1520_v29 = vmax.f32 %v1200_v9, 0.0 }
 0x19a   :  { %v7874_v57 = vpack.c.bf16 %v1522_v25, %v1521_v2 }
 0x19b   :  { %6428 = vmatpush3.bf16.msra.mxu1 %v6992_v43  ;;  %v7876_v51 = vpack.c.bf16 %v1520_v29, %v1519_v8  ;;  %v6271_v15 = vpop.f32.mrb[88].mxu0 }
 0x19c   :  { %6445 = vmatprep.subr.bf16.mxu1 %v7872_v14  ;;  %v1221_v47 = vadd.f32 %v6271_v15, %v7537_v4  ;;  %v1212_v13 = vpop.f32.mrb[89].mxu0 }
 0x19d   :  { %v1213_v16 = vadd.f32 %v7537_v4, %v1212_v13  ;;  %v6272_v61 = vpop.f32.mrb[90].mxu0 }
 0x19e   :  { %6414 = vmatmul.mubr.msk.bf16.gmra.mrb[12].mxu1 %vm1672_vm3, %v7819_v10  ;;  %v1525_v6 = vmax.f32 %v1221_v47, 0.0  ;;  %v1224_v18 = vadd.f32 %v6272_v61, %v7537_v4  ;;  %v1215_v21 = vpop.f32.mrb[91].mxu0  ;;  %v7934_v47 = vld [vmem:[%s8670_s29 + $0x70] sm:$0xff]  }
 0x19f   :  { %6417 = vmatprep.mubr.msk.bf16.mxu1 %vm1672_vm3, %v7832_v28  ;;  %v1523_v23 = vmax.f32 %v1213_v16, 0.0  ;;  %v1216_v24 = vadd.f32 %v7537_v4, %v1215_v21 }
 0x1a0   :  { %v1526_v27 = vmax.f32 %v1224_v18, 0.0 }
 0x1a1   :  { %v1524_v31 = vmax.f32 %v1216_v24, 0.0 }
 0x1a2   :  { %v7887_v32 = vpack.c.bf16 %v1526_v27, %v1525_v6 }
 0x1a3   :  { %v7889_v40 = vpack.c.bf16 %v1524_v31, %v1523_v23  ;;  %v6275_v33 = vpop.f32.mrb[92].mxu0  ;;  %v7946_v23 = vld [vmem:[%s8671_s7] ss:$0 sm:$0xff]  ;;  %s8674_s7 = sld [smem:[#allocation12_spill]] }
 0x1a4   :  { %v1237_v34 = vadd.f32 %v6275_v33, %v7537_v4  ;;  %v1228_v10 = vpop.f32.mrb[93].mxu0 }
 0x1a5   :  { %v1229_v22 = vadd.f32 %v7537_v4, %v1228_v10  ;;  %v6276_v37 = vpop.f32.mrb[94].mxu0 }
 0x1a6   :  { %6418 = vmatmul.mubr.msk.bf16.gmra.mrb[16].mxu1 %vm1672_vm3, %v7830_v5  ;;  %v1529_v28 = vmax.f32 %v1237_v34, 0.0  ;;  %v1240_v38 = vadd.f32 %v6276_v37, %v7537_v4  ;;  %v1231_v39 = vpop.f32.mrb[95].mxu0 }
 0x1a7   :  { %6421 = vmatprep.mubr.msk.bf16.mxu1 %vm1672_vm3, %v7844_v48  ;;  %v1527_v41 = vmax.f32 %v1229_v22, 0.0  ;;  %v1232_v42 = vadd.f32 %v7537_v4, %v1231_v39 }
 0x1a8   :  { %v1530_v19 = vmax.f32 %v1240_v38, 0.0 }
 0x1a9   :  { %v1528_v45 = vmax.f32 %v1232_v42, 0.0 }
 0x1aa   :  { %v7899_v46 = vpack.c.bf16 %v1530_v19, %v1529_v28 }
 0x1ab   :  { %v7901_v17 = vpack.c.bf16 %v1528_v45, %v1527_v41  ;;  %v6279_v12 = vpop.f32.mrb[96].mxu0 }
 0x1ac   :  { %v1253_v36 = vadd.f32 %v6279_v12, %v7537_v4  ;;  %v1244_v5 = vpop.f32.mrb[97].mxu0 }
 0x1ad   :  { %v1245_v44 = vadd.f32 %v7537_v4, %v1244_v5  ;;  %v6280_v49 = vpop.f32.mrb[98].mxu0 }
 0x1ae   :  { %6422 = vmatmul.mubr.msk.bf16.gmra.mrb[20].mxu1 %vm1672_vm3, %v7842_v60  ;;  %v1533_v48 = vmax.f32 %v1253_v36, 0.0  ;;  %v1256_v50 = vadd.f32 %v6280_v49, %v7537_v4  ;;  %v1247_v54 = vpop.f32.mrb[99].mxu0 }
 0x1af   :  { %6429 = vmatprep.mubr.msk.bf16.mxu1 %vm1672_vm3, %v7856_v62  ;;  %v1531_v56 = vmax.f32 %v1245_v44, 0.0  ;;  %v1248_v59 = vadd.f32 %v7537_v4, %v1247_v54 }
 0x1b0   :  { %v1534_v35 = vmax.f32 %v1256_v50, 0.0 }
 0x1b1   :  { %v1532_v43 = vmax.f32 %v1248_v59, 0.0 }
 0x1b2   :  { %v7915_v60 = vpack.c.bf16 %v1534_v35, %v1533_v48 }
 0x1b3   :  { %v7917_v0 = vpack.c.bf16 %v1532_v43, %v1531_v56  ;;  %v6283_v26 = vpop.f32.mrb[100].mxu0 }
 0x1b4   :  { %v1269_v58 = vadd.f32 %v6283_v26, %v7537_v4  ;;  %v1260_v62 = vpop.f32.mrb[101].mxu0 }
 0x1b5   :  { %v1261_v2 = vadd.f32 %v7537_v4, %v1260_v62  ;;  %v6284_v3 = vpop.f32.mrb[102].mxu0 }
 0x1b6   :  { %6430 = vmatmul.mubr.msk.bf16.vlgmr.msra.gmra.mrb[8].mxu1 %vm1672_vm3, %v7854_v11  ;;  %v1537_v7 = vmax.f32 %v1269_v58, 0.0  ;;  %v1272_v8 = vadd.f32 %v6284_v3, %v7537_v4  ;;  %v1263_v9 = vpop.f32.mrb[103].mxu0 }
 0x1b7   :  { %6446 = vmatpush3.bf16.msra.mxu1 %v7872_v14  ;;  %6433 = vmatprep.mubr.msk.bf16.mxu1 %vm1672_vm3, %v7876_v51  ;;  %v1535_v25 = vmax.f32 %v1261_v2, 0.0  ;;  %v1264_v29 = vadd.f32 %v7537_v4, %v1263_v9 }
 0x1b8   :  { %6447 = vmatprep.subr.bf16.mxu1 %v6994_v1  ;;  %v1538_v15 = vmax.f32 %v1272_v8, 0.0 }
 0x1b9   :  { %v1536_v11 = vmax.f32 %v1264_v29, 0.0 }
 0x1ba   :  { %v7936_v13 = vpack.c.bf16 %v1538_v15, %v1537_v7 }
 0x1bb   :  { %6448 = vmatpush3.bf16.msra.mxu1 %v6994_v1  ;;  %v1629_v16 = vpack.c.bf16 %v1536_v11, %v1535_v25  ;;  %v6287_v61 = vpop.f32.mrb[104].mxu0 }
 0x1bc   :  { %6465 = vmatprep.subr.bf16.mxu1 %v7934_v47  ;;  %v1285_v14 = vadd.f32 %v6287_v61, %v7537_v4  ;;  %v1276_v51 = vpop.f32.mrb[105].mxu0  ;;  %v7994_v61 = vld [vmem:[%s8670_s29 + $0x80] sm:$0xff]  }
 0x1bd   :  { %v1277_v6 = vadd.f32 %v7537_v4, %v1276_v51  ;;  %v6288_v18 = vpop.f32.mrb[106].mxu0 }
 0x1be   :  { %6434 = vmatmul.mubr.msk.bf16.gmra.mrb[12].mxu1 %vm1672_vm3, %v7874_v57  ;;  %v1541_v21 = vmax.f32 %v1285_v14, 0.0  ;;  %v1288_v24 = vadd.f32 %v7946_v23, %v6288_v18  ;;  %v1279_v27 = vpop.f32.mrb[107].mxu0 }
 0x1bf   :  { %6437 = vmatprep.mubr.msk.bf16.mxu1 %vm1672_vm3, %v7889_v40  ;;  %v1539_v31 = vmax.f32 %v1277_v6, 0.0  ;;  %v1280_v33 = vadd.f32 %v7946_v23, %v1279_v27 }
 0x1c0   :  { %v1542_v4 = vmax.f32 %v1288_v24, 0.0 }
 0x1c1   :  { %v1540_v34 = vmax.f32 %v1280_v33, 0.0 }
 0x1c2   :  { %v7952_v10 = vpack.c.bf16 %v1542_v4, %v1541_v21 }
 0x1c3   :  { %v7954_v57 = vpack.c.bf16 %v1540_v34, %v1539_v31  ;;  %v6291_v22 = vpop.f32.mrb[108].mxu0 }
 0x1c4   :  { %v1301_v37 = vadd.f32 %v7946_v23, %v6291_v22  ;;  %v1292_v28 = vpop.f32.mrb[109].mxu0 }
 0x1c5   :  { %v1293_v38 = vadd.f32 %v7946_v23, %v1292_v28  ;;  %v6292_v39 = vpop.f32.mrb[110].mxu0 }
 0x1c6   :  { %6438 = vmatmul.mubr.msk.bf16.gmra.mrb[16].mxu1 %vm1672_vm3, %v7887_v32  ;;  %v1545_v40 = vmax.f32 %v1301_v37, 0.0  ;;  %v1304_v41 = vadd.f32 %v7946_v23, %v6292_v39  ;;  %v1295_v42 = vpop.f32.mrb[111].mxu0 }
 0x1c7   :  { %6441 = vmatprep.mubr.msk.bf16.mxu1 %vm1672_vm3, %v7901_v17  ;;  %v1543_v19 = vmax.f32 %v1293_v38, 0.0  ;;  %v1296_v45 = vadd.f32 %v7946_v23, %v1295_v42 }
 0x1c8   :  { %v1546_v12 = vmax.f32 %v1304_v41, 0.0 }
 0x1c9   :  { %v1544_v36 = vmax.f32 %v1296_v45, 0.0 }
 0x1ca   :  { %v7964_v5 = vpack.c.bf16 %v1546_v12, %v1545_v40 }
 0x1cb   :  { %v7966_v44 = vpack.c.bf16 %v1544_v36, %v1543_v19  ;;  %v6295_v49 = vpop.f32.mrb[112].mxu0 }
 0x1cc   :  { %v1317_v48 = vadd.f32 %v7946_v23, %v6295_v49  ;;  %v1308_v32 = vpop.f32.mrb[113].mxu0 }
 0x1cd   :  { %v1309_v50 = vadd.f32 %v7946_v23, %v1308_v32  ;;  %v6296_v54 = vpop.f32.mrb[114].mxu0 }
 0x1ce   :  { %6442 = vmatmul.mubr.msk.bf16.gmra.mrb[20].mxu1 %vm1672_vm3, %v7899_v46  ;;  %v1549_v17 = vmax.f32 %v1317_v48, 0.0  ;;  %v1320_v55 = vadd.f32 %v7946_v23, %v6296_v54  ;;  %v1311_v56 = vpop.f32.mrb[115].mxu0  ;;  %v6997_v46 = vld [vmem:[%s8670_s29 + $0x78] sm:$0xff]  }
 0x1cf   :  { %6449 = vmatprep.mubr.msk.bf16.mxu1 %vm1672_vm3, %v7917_v0  ;;  %v1547_v59 = vmax.f32 %v1309_v50, 0.0  ;;  %v1312_v35 = vadd.f32 %v7946_v23, %v1311_v56 }
 0x1d0   :  { %v1550_v43 = vmax.f32 %v1320_v55, 0.0 }
 0x1d1   :  { %v1548_v26 = vmax.f32 %v1312_v35, 0.0 }
 0x1d2   :  { %v7976_v1 = vpack.c.bf16 %v1550_v43, %v1549_v17 }
 0x1d3   :  { %v7978_v58 = vpack.c.bf16 %v1548_v26, %v1547_v59  ;;  %v6299_v62 = vpop.f32.mrb[116].mxu0 }
 0x1d4   :  { %v1333_v2 = vadd.f32 %v7946_v23, %v6299_v62  ;;  %v1324_v3 = vpop.f32.mrb[117].mxu0 }
 0x1d5   :  { %v1325_v7 = vadd.f32 %v7946_v23, %v1324_v3  ;;  %v6300_v0 = vpop.f32.mrb[118].mxu0 }
 0x1d6   :  { %6450 = vmatmul.mubr.msk.bf16.vlgmr.msra.gmra.mrb[8].mxu1 %vm1672_vm3, %v7915_v60  ;;  %v1553_v8 = vmax.f32 %v1333_v2, 0.0  ;;  %v1336_v9 = vadd.f32 %v7946_v23, %v6300_v0  ;;  %v1327_v25 = vpop.f32.mrb[119].mxu0 }
 0x1d7   :  { %6466 = vmatpush3.bf16.msra.mxu1 %v7934_v47  ;;  %6453 = vmatprep.mubr.msk.bf16.mxu1 %vm1672_vm3, %v1629_v16  ;;  %v1551_v29 = vmax.f32 %v1325_v7, 0.0  ;;  %v1328_v15 = vadd.f32 %v7946_v23, %v1327_v25  ;;  %v6999_v7 = vld [vmem:[%s8670_s29 + $0x88] sm:$0xff]  }
 0x1d8   :  { %6467 = vmatprep.subr.bf16.mxu1 %v6997_v46  ;;  %v1554_v11 = vmax.f32 %v1336_v9, 0.0 }
 0x1d9   :  { %v1552_v14 = vmax.f32 %v1328_v15, 0.0 }
 0x1da   :  { %v7996_v60 = vpack.c.bf16 %v1554_v11, %v1553_v8 }
 0x1db   :  { %6468 = vmatpush3.bf16.msra.mxu1 %v6997_v46  ;;  %v1637_v51 = vpack.c.bf16 %v1552_v14, %v1551_v29  ;;  %v6303_v6 = vpop.f32.mrb[120].mxu0 }
 0x1dc   :  { %6485 = vmatprep.subr.bf16.mxu1 %v7994_v61  ;;  %v1349_v47 = vadd.f32 %v7946_v23, %v6303_v6  ;;  %v1340_v16 = vpop.f32.mrb[121].mxu0 }
 0x1dd   :  { %v1341_v18 = vadd.f32 %v7946_v23, %v1340_v16  ;;  %v6304_v21 = vpop.f32.mrb[122].mxu0 }
 0x1de   :  { %6454 = vmatmul.mubr.msk.bf16.gmra.mrb[12].mxu1 %vm1672_vm3, %v7936_v13  ;;  %v1557_v24 = vmax.f32 %v1349_v47, 0.0  ;;  %v1352_v27 = vadd.f32 %v7946_v23, %v6304_v21  ;;  %v1343_v31 = vpop.f32.mrb[123].mxu0  ;;  %v7003_v21 = vld [vmem:[%s8672_s4 + $0x30] sm:$0xff]  }
 0x1df   :  { %6457 = vmatprep.mubr.msk.bf16.mxu1 %vm1672_vm3, %v7954_v57  ;;  %v1555_v33 = vmax.f32 %v1341_v18, 0.0  ;;  %v1344_v4 = vadd.f32 %v7946_v23, %v1343_v31 }
 0x1e0   :  { %v1558_v34 = vmax.f32 %v1352_v27, 0.0 }
 0x1e1   :  { %v1556_v22 = vmax.f32 %v1344_v4, 0.0 }
 0x1e2   :  { %v1640_v37 = vpack.c.bf16 %v1558_v34, %v1557_v24 }
 0x1e3   :  { %v1639_v28 = vpack.c.bf16 %v1556_v22, %v1555_v33  ;;  %v6307_v38 = vpop.f32.mrb[124].mxu0  ;;  %v7004_v33 = vld [vmem:[%s8672_s4 + $0x20] sm:$0xff]  }
 0x1e4   :  { %v1365_v39 = vadd.f32 %v7946_v23, %v6307_v38  ;;  %v1356_v40 = vpop.f32.mrb[125].mxu0 }
 0x1e5   :  { %v1357_v13 = vadd.f32 %v7946_v23, %v1356_v40  ;;  %v6308_v41 = vpop.f32.mrb[126].mxu0 }
 0x1e6   :  { %6458 = vmatmul.mubr.msk.bf16.gmra.mrb[16].mxu1 %vm1672_vm3, %v7952_v10  ;;  %v1561_v42 = vmax.f32 %v1365_v39, 0.0  ;;  %v1368_v57 = vadd.f32 %v7946_v23, %v6308_v41  ;;  %v1359_v19 = vpop.f32.mrb[127].mxu0 }
 0x1e7   :  { %6461 = vmatprep.mubr.msk.bf16.mxu1 %vm1672_vm3, %v7966_v44  ;;  %v1559_v45 = vmax.f32 %v1357_v13, 0.0  ;;  %v1360_v12 = vadd.f32 %v7946_v23, %v1359_v19  ;;  %v7006_v13 = vld [vmem:[%s8672_s4 + $0x28] sm:$0xff]  }
 0x1e8   :  { %v1562_v36 = vmax.f32 %v1368_v57, 0.0 }
 0x1e9   :  { %v1560_v49 = vmax.f32 %v1360_v12, 0.0 }
 0x1ea   :  { %v1642_v48 = vpack.c.bf16 %v1562_v36, %v1561_v42  ;;  %v7007_v42 = vld [vmem:[%s8672_s4 + $0x50] sm:$0xff]  }
 0x1eb   :  { %v1641_v32 = vpack.c.bf16 %v1560_v49, %v1559_v45  ;;  %v6311_v50 = vpop.f32.mrb[128].mxu0  ;;  %v7008_v45 = vld [vmem:[%s8672_s4 + $0x40] sm:$0xff]  }
 0x1ec   :  { %v1381_v54 = vadd.f32 %v7946_v23, %v6311_v50  ;;  %v1372_v17 = vpop.f32.mrb[129].mxu0 }
 0x1ed   :  { %v1373_v10 = vadd.f32 %v7946_v23, %v1372_v17  ;;  %v6312_v55 = vpop.f32.mrb[130].mxu0 }
 0x1ee   :  { %6462 = vmatmul.mubr.msk.bf16.gmra.mrb[20].mxu1 %vm1672_vm3, %v7964_v5  ;;  %v1565_v56 = vmax.f32 %v1381_v54, 0.0  ;;  %v1384_v44 = vadd.f32 %v7946_v23, %v6312_v55  ;;  %v1375_v59 = vpop.f32.mrb[131].mxu0 }
 0x1ef   :  { %6469 = vmatprep.mubr.msk.bf16.mxu1 %vm1672_vm3, %v7978_v58  ;;  %v1563_v35 = vmax.f32 %v1373_v10, 0.0  ;;  %v1376_v43 = vadd.f32 %v7946_v23, %v1375_v59  ;;  %v7010_v10 = vld [vmem:[%s8672_s4 + $0x48] sm:$0xff]  }
 0x1f0   :  { %v1566_v26 = vmax.f32 %v1384_v44, 0.0 }
 0x1f1   :  { %v1564_v62 = vmax.f32 %v1376_v43, 0.0 }
 0x1f2   :  { %v1644_v46 = vpack.c.bf16 %v1566_v26, %v1565_v56  ;;  %v7011_v56 = vld [vmem:[%s8672_s4 + $0x70] sm:$0xff]  }
 0x1f3   :  { %v1643_v2 = vpack.c.bf16 %v1564_v62, %v1563_v35  ;;  %v6315_v3 = vpop.f32.mrb[132].mxu0  ;;  %v7012_v35 = vld [vmem:[%s8672_s4 + $0x60] sm:$0xff]  }
 0x1f4   :  { %v1397_v5 = vadd.f32 %v7946_v23, %v6315_v3  ;;  %v1388_v0 = vpop.f32.mrb[133].mxu0 }
 0x1f5   :  { %v1389_v8 = vadd.f32 %v7946_v23, %v1388_v0  ;;  %v6316_v9 = vpop.f32.mrb[134].mxu0  ;;  %v7014_v0 = vld [vmem:[%s8672_s4 + $0x68] sm:$0xff]  }
 0x1f6   :  { %6470 = vmatmul.mubr.msk.bf16.vlgmr.msra.gmra.mrb[8].mxu1 %vm1672_vm3, %v7976_v1  ;;  %v1569_v58 = vmax.f32 %v1397_v5, 0.0  ;;  %v1400_v25 = vadd.f32 %v7946_v23, %v6316_v9  ;;  %v1391_v29 = vpop.f32.mrb[135].mxu0  ;;  %v7002_v1 = vld [vmem:[%s8672_s4 + $0x8] sm:$0xff]   ;;  %v7015_v9 = vld [vmem:[%s8672_s4 + $0x90] sm:$0xff]  }
 0x1f7   :  { %6486 = vmatpush3.bf16.msra.mxu1 %v7994_v61  ;;  %6473 = vmatprep.mubr.msk.bf16.mxu1 %vm1672_vm3, %v1637_v51  ;;  %v1567_v15 = vmax.f32 %v1389_v8, 0.0  ;;  %v1392_v11 = vadd.f32 %v7946_v23, %v1391_v29  ;;  %v7001_v23 = vld [vmem:[%s8672_s4] sm:$0xff]  }
 0x1f8   :  { %6487 = vmatprep.subr.bf16.mxu1 %v6999_v7  ;;  %v1570_v14 = vmax.f32 %v1400_v25, 0.0  ;;  %v7016_v29 = vld [vmem:[%s8672_s4 + $0x80] sm:$0xff]  }
 0x1f9   :  { %v1568_v6 = vmax.f32 %v1392_v11, 0.0 }
 0x1fa   :  { %v1646_v47 = vpack.c.bf16 %v1570_v14, %v1569_v58  ;;  %v7017_v14 = vld [vmem:[%s8672_s4 + $0x98] sm:$0xff]  }
 0x1fb   :  { %6488 = vmatpush3.bf16.msra.mxu1 %v6999_v7  ;;  %v1645_v16 = vpack.c.bf16 %v1568_v6, %v1567_v15 }
 0x1fc   :  { %6513 = vmatprep.subr.bf16.mxu1 %v7155_v52 }
 0x1fe   :  { %6474 = vmatmul.mubr.msk.bf16.gmra.mrb[12].mxu1 %vm1672_vm3, %v7996_v60 }
 0x1ff   :  { %6477 = vmatprep.mubr.msk.bf16.mxu1 %vm1672_vm3, %v1639_v28  ;;  %v7005_v28 = vld [vmem:[%s8672_s4 + $0x38] sm:$0xff]  }
 0x206   :  { %6478 = vmatmul.mubr.msk.bf16.gmra.mrb[16].mxu1 %vm1672_vm3, %v1640_v37 }
 0x207   :  { %6481 = vmatprep.mubr.msk.bf16.mxu1 %vm1672_vm3, %v1641_v32  ;;  %v7009_v32 = vld [vmem:[%s8672_s4 + $0x58] sm:$0xff]  }
 0x20e   :  { %6482 = vmatmul.mubr.msk.bf16.gmra.mrb[20].mxu1 %vm1672_vm3, %v1642_v48 }
 0x20f   :  { %6489 = vmatprep.mubr.msk.bf16.mxu1 %vm1672_vm3, %v1643_v2  ;;  %v7013_v2 = vld [vmem:[%s8672_s4 + $0x78] sm:$0xff]  }
 0x216   :  { %6490 = vmatmul.mubr.msk.bf16.vlgmr.msra.gmra.mrb[8].mxu1 %vm1672_vm3, %v1644_v46 }
 0x217   :  { %6493 = vmatprep.mubr.msk.bf16.mxu1 %vm1672_vm3, %v1645_v16  ;;  %6514 = vmatpush3.bf16.msra.mxu1 %v7001_v23  ;;  %v7019_v23 = vld [vmem:[%s8672_s4 + $0xb0] sm:$0xff]  }
 0x218   :  { %6515 = vmatprep.subr.bf16.mxu1 %v7155_v52 }
 0x21b   :  { %6516 = vmatpush3.bf16.msra.mxu1 %v7002_v1 }
 0x21c   :  { %6529 = vmatprep.subr.bf16.mxu1 %v7155_v52 }
 0x21e   :  { %6494 = vmatmul.mubr.msk.bf16.gmra.mrb[12].mxu1 %vm1672_vm3, %v1646_v47  ;;  %v7018_v47 = vld [vmem:[%s8672_s4 + $0x88] sm:$0xff]  }
 0x21f   :  { %6497 = vmatprep.mubr.msk.bf16.mxu1 %vm1672_vm3, %v7756_v53  ;;  %v8068_v53 = vld [vmem:[%s8673_s2] ss:$0 sm:$0xff] }
 0x226   :  { %6498 = vmatmul.mubr.msk.bf16.gmra.mrb[16].mxu1 %vm1672_vm3, %v7751_v63 }
 0x227   :  { %6501 = vmatprep.mubr.msk.bf16.mxu1 %vm1672_vm3, %v7781_v20 }
 0x22e   :  { %6502 = vmatmul.mubr.msk.bf16.gmra.mrb[20].mxu1 %vm1672_vm3, %v7776_v30 }
 0x22f   :  { %6517 = vmatprep.mubr.msk.bf16.mxu1 %vm7156_vm4, %v7155_v52 }
 0x2e9   :  { %v6491_v61 = vpop.f32.mrb[8].mxu1 }
 0x2ea   :  { %v2926_v63 = vpop.f32.mrb[9].mxu1  ;;  %v3014_v4 = vadd.f32 %v6491_v61, %v8068_v53 }
 0x2eb   :  { %v3012_v60 = vadd.f32 %v8068_v53, %v2926_v63  ;;  %v6492_v20 = vpop.f32.mrb[10].mxu1  ;;  %v7020_v63 = vld [vmem:[%s8672_s4 + $0xa0] sm:$0xff]  }
 0x2ec   :  { %v2929_v51 = vpop.f32.mrb[11].mxu1  ;;  %v3015_v27 = vadd.f32 %v6492_v20, %v8068_v53  ;;  %v3030_v41 = vmax.f32 %v3014_v4, 0.0 }
 0x2ed   :  { %v3028_v18 = vmax.f32 %v3012_v60, 0.0  ;;  %v3013_v30 = vadd.f32 %v8068_v53, %v2929_v51  ;;  %v7021_v51 = vld [vmem:[%s8672_s4 + $0xb8] sm:$0xff]  }
 0x2ee   :  { %v3031_v38 = vmax.f32 %v3015_v27, 0.0  ;;  %v3165_v12 = vpack.c.bf16 %v3030_v41, %v3030_v41  ;;  %v7028_v41 = vld [vmem:[%s8672_s4 + $0xe0] sm:$0xff]  }
 0x2ef   :  { %v3044_v24 = vpack.c.bf16 %v3028_v18, %v3028_v18  ;;  %v3029_v31 = vmax.f32 %v3013_v30, 0.0  ;;  %v7022_v30 = vld [vmem:[%s8672_s4 + $0xa8] sm:$0xff]  }
 0x2f0   :  { %v3227_v57 = vpack.c.bf16 %v3031_v38, %v3031_v38 }
 0x2f1   :  { %v3049_v34 = vpack.c.bf16 %v3029_v31, %v3029_v31  ;;  %v6495_v22 = vpop.f32.mrb[12].mxu1  ;;  %6518 = vmatmul.mubr.msk.bf16.vlgmr.msra.gmra.mrb[24].mxu1 %vm1672_vm3, %v3044_v24  ;;  %v7023_v24 = vld [vmem:[%s8672_s4 + $0xd0] sm:$0xff]  }
 0x2f2   :  { %v2942_v37 = vpop.f32.mrb[13].mxu1  ;;  %6530 = vmatpush3.bf16.msra.mxu1 %v7003_v21  ;;  %6533 = vmatprep.mubr.msk.bf16.mxu1 %vm7156_vm4, %v7155_v52  ;;  %v3018_v43 = vadd.f32 %v6495_v22, %v8068_v53  ;;  %v7025_v22 = vld [vmem:[%s8672_s4 + $0xd8] sm:$0xff]  }
 0x2f3   :  { %v6496_v39 = vpop.f32.mrb[14].mxu1  ;;  %6510 = vmatmul.mubr.msk.bf16.vlgmr.msra.gmra.mrb[136].mxu0 %vm1672_vm3, %v3049_v34  ;;  %6531 = vmatprep.subr.bf16.mxu1 %v7155_v52  ;;  %v3016_v36 = vadd.f32 %v8068_v53, %v2942_v37 }
 0x2f4   :  { %v2945_v40 = vpop.f32.mrb[15].mxu1  ;;  %6522 = vmatpush3.bf16.msra.mxu0 %v7004_v33  ;;  %6525 = vmatprep.mubr.msk.bf16.mxu0 %vm7156_vm4, %v7155_v52  ;;  %v3019_v44 = vadd.f32 %v6496_v39, %v8068_v53  ;;  %v3034_v8 = vmax.f32 %v3018_v43, 0.0  ;;  %v7024_v33 = vld [vmem:[%s8672_s4 + $0xc0] sm:$0xff]   ;;  %v7027_v39 = vld [vmem:[%s8672_s4 + $0xf0] sm:$0xff]  }
 0x2f5   :  { %6523 = vmatprep.subr.bf16.mxu0 %v7155_v52  ;;  %v3017_v19 = vadd.f32 %v8068_v53, %v2945_v40  ;;  %v3032_v55 = vmax.f32 %v3016_v36, 0.0 }
 0x2f6   :  { %6532 = vmatpush3.bf16.msra.mxu1 %v7005_v28  ;;  %v3035_v3 = vmax.f32 %v3019_v44, 0.0  ;;  %v3413_v15 = vpack.c.bf16 %v3034_v8, %v3034_v8  ;;  %v7026_v28 = vld [vmem:[%s8672_s4 + $0xc8] sm:$0xff]  }
 0x2f7   :  { %6545 = vmatprep.subr.bf16.mxu1 %v7155_v52  ;;  %v3033_v50 = vmax.f32 %v3017_v19, 0.0  ;;  %v3289_v26 = vpack.c.bf16 %v3032_v55, %v3032_v55  ;;  %v7029_v19 = vld [vmem:[%s8672_s4 + $0xf8] sm:$0xff]  }
 0x2f8   :  { %6524 = vmatpush3.bf16.msra.mxu0 %v7006_v13  ;;  %v3475_v58 = vpack.c.bf16 %v3035_v3, %v3035_v3 }
 0x2f9   :  { %v8103_v49 = vpop.f32.mrb[16].mxu1  ;;  %6534 = vmatmul.mubr.msk.bf16.vlgmr.msra.gmra.mrb[28].mxu1 %vm1672_vm3, %v3227_v57  ;;  %6537 = vmatprep.subr.bf16.mxu0 %v7155_v52  ;;  %v3351_v59 = vpack.c.bf16 %v3033_v50, %v3033_v50 }
 0x2fa   :  { %v2958_v48 = vpop.f32.mrb[17].mxu1  ;;  %6546 = vmatpush3.bf16.msra.mxu1 %v7007_v42  ;;  %6549 = vmatprep.mubr.msk.bf16.mxu1 %vm7156_vm4, %v7155_v52  ;;  %v3022_v60 = vadd.f32 %v8103_v49, %v8068_v53 }
 0x2fb   :  { %v6500_v54 = vpop.f32.mrb[18].mxu1  ;;  %6526 = vmatmul.mubr.msk.bf16.vlgmr.msra.gmra.mrb[140].mxu0 %vm1672_vm3, %v3165_v12  ;;  %6547 = vmatprep.subr.bf16.mxu1 %v7155_v52  ;;  %v3020_v11 = vadd.f32 %v8068_v53, %v2958_v48 }
 0x2fc   :  { %v2961_v17 = vpop.f32.mrb[19].mxu1  ;;  %6538 = vmatpush3.bf16.msra.mxu0 %v7008_v45  ;;  %6541 = vmatprep.mubr.msk.bf16.mxu0 %vm7156_vm4, %v7155_v52  ;;  %v3023_v1 = vadd.f32 %v6500_v54, %v8068_v53  ;;  %v3038_v21 = vmax.f32 %v3022_v60, 0.0 }
 0x2fd   :  { %6539 = vmatprep.subr.bf16.mxu0 %v7155_v52  ;;  %v3021_v25 = vadd.f32 %v8068_v53, %v2961_v17  ;;  %v3036_v16 = vmax.f32 %v3020_v11, 0.0 }
 0x2fe   :  { %6548 = vmatpush3.bf16.msra.mxu1 %v7009_v32  ;;  %v3039_v18 = vmax.f32 %v3023_v1, 0.0  ;;  %v3661_v4 = vpack.c.bf16 %v3038_v21, %v3038_v21 }
 0x2ff   :  { %6561 = vmatprep.subr.bf16.mxu1 %v7155_v52  ;;  %v3037_v6 = vmax.f32 %v3021_v25, 0.0  ;;  %v3537_v20 = vpack.c.bf16 %v3036_v16, %v3036_v16 }
 0x300   :  { %6540 = vmatpush3.bf16.msra.mxu0 %v7010_v10  ;;  %v3723_v27 = vpack.c.bf16 %v3039_v18, %v3039_v18 }
 0x301   :  { %v8129_v62 = vpop.f32.mrb[20].mxu1  ;;  %6550 = vmatmul.mubr.msk.bf16.vlgmr.msra.gmra.mrb[32].mxu1 %vm1672_vm3, %v3351_v59  ;;  %6553 = vmatprep.subr.bf16.mxu0 %v7155_v52  ;;  %v3599_v61 = vpack.c.bf16 %v3037_v6, %v3037_v6 }
 0x302   :  { %v8133_v46 = vpop.f32.mrb[21].mxu1  ;;  %6562 = vmatpush3.bf16.msra.mxu1 %v7011_v56  ;;  %6565 = vmatprep.mubr.msk.bf16.mxu1 %vm7156_vm4, %v7155_v52  ;;  %v3026_v42 = vadd.f32 %v8129_v62, %v8068_v53 }
 0x303   :  { %v8140_v7 = vpop.f32.mrb[22].mxu1  ;;  %6542 = vmatmul.mubr.msk.bf16.vlgmr.msra.gmra.mrb[144].mxu0 %vm1672_vm3, %v3289_v26  ;;  %6563 = vmatprep.subr.bf16.mxu1 %v7155_v52  ;;  %v3024_v34 = vadd.f32 %v8068_v53, %v8133_v46 }
 0x304   :  { %v2977_v5 = vpop.f32.mrb[23].mxu1  ;;  %6554 = vmatpush3.bf16.msra.mxu0 %v7012_v35  ;;  %6557 = vmatprep.mubr.msk.bf16.mxu0 %vm7156_vm4, %v7155_v52  ;;  %v3027_v40 = vadd.f32 %v8140_v7, %v8068_v53  ;;  %v3042_v12 = vmax.f32 %v3026_v42, 0.0 }
 0x305   :  { %6555 = vmatprep.subr.bf16.mxu0 %v7155_v52  ;;  %v3025_v31 = vadd.f32 %v8068_v53, %v2977_v5  ;;  %v3040_v38 = vmax.f32 %v3024_v34, 0.0  ;;  %v7030_v53 = vld [vmem:[%s8672_s4 + $0xe8] sm:$0xff]   ;;  %s7158_s4 = smov 64  }
 0x306   :  { %6564 = vmatpush3.bf16.msra.mxu1 %v7013_v2  ;;  %v3043_v45 = vmax.f32 %v3027_v40, 0.0  ;;  %v3909_v49 = vpack.c.bf16 %v3042_v12, %v3042_v12 }
 0x307   :  { %6577 = vmatprep.subr.bf16.mxu1 %v7155_v52  ;;  %v3041_v37 = vmax.f32 %v3025_v31, 0.0  ;;  %v3785_v57 = vpack.c.bf16 %v3040_v38, %v3040_v38 }
 0x308   :  { %6556 = vmatpush3.bf16.msra.mxu0 %v7014_v0  ;;  %v3971_v36 = vpack.c.bf16 %v3043_v45, %v3043_v45 }
 0x309   :  { %6566 = vmatmul.mubr.msk.bf16.vlgmr.msra.gmra.mrb[36].mxu1 %vm1672_vm3, %v3475_v58  ;;  %6569 = vmatprep.subr.bf16.mxu0 %v7155_v52  ;;  %v3847_v13 = vpack.c.bf16 %v3041_v37, %v3041_v37 }
 0x30a   :  { %6578 = vmatpush3.bf16.msra.mxu1 %v7015_v9  ;;  %6581 = vmatprep.mubr.msk.bf16.mxu1 %vm7156_vm4, %v7155_v52 }
 0x30b   :  { %6558 = vmatmul.mubr.msk.bf16.vlgmr.msra.gmra.mrb[148].mxu0 %vm1672_vm3, %v3413_v15  ;;  %6579 = vmatprep.subr.bf16.mxu1 %v7155_v52 }
 0x30c   :  { %6570 = vmatpush3.bf16.msra.mxu0 %v7016_v29  ;;  %6573 = vmatprep.mubr.msk.bf16.mxu0 %vm7156_vm4, %v7155_v52 }
 0x30d   :  { %6571 = vmatprep.subr.bf16.mxu0 %v7155_v52 }
 0x30e   :  { %6580 = vmatpush3.bf16.msra.mxu1 %v7017_v14 }
 0x30f   :  { %6593 = vmatprep.subr.bf16.mxu1 %v7155_v52 }
 0x310   :  { %6572 = vmatpush3.bf16.msra.mxu0 %v7018_v47 }
 0x311   :  { %6582 = vmatmul.mubr.msk.bf16.vlgmr.msra.gmra.mrb[40].mxu1 %vm1672_vm3, %v3599_v61  ;;  %6585 = vmatprep.subr.bf16.mxu0 %v7155_v52 }
 0x312   :  { %6594 = vmatpush3.bf16.msra.mxu1 %v7019_v23  ;;  %6597 = vmatprep.mubr.msk.bf16.mxu1 %vm7156_vm4, %v7155_v52 }
 0x313   :  { %6574 = vmatmul.mubr.msk.bf16.vlgmr.msra.gmra.mrb[152].mxu0 %vm1672_vm3, %v3537_v20  ;;  %6595 = vmatprep.subr.bf16.mxu1 %v7155_v52 }
 0x314   :  { %6586 = vmatpush3.bf16.msra.mxu0 %v7020_v63  ;;  %6589 = vmatprep.mubr.msk.bf16.mxu0 %vm7156_vm4, %v7155_v52 }
 0x315   :  { %6587 = vmatprep.subr.bf16.mxu0 %v7155_v52 }
 0x316   :  { %6596 = vmatpush3.bf16.msra.mxu1 %v7021_v51 }
 0x317   :  { %6609 = vmatprep.subr.bf16.mxu1 %v7155_v52 }
 0x318   :  { %6588 = vmatpush3.bf16.msra.mxu0 %v7022_v30 }
 0x319   :  { %6598 = vmatmul.mubr.msk.bf16.vlgmr.msra.gmra.mrb[44].mxu1 %vm1672_vm3, %v3723_v27  ;;  %6601 = vmatprep.subr.bf16.mxu0 %v7155_v52 }
 0x31a   :  { %6610 = vmatpush3.bf16.msra.mxu1 %v7023_v24  ;;  %6613 = vmatprep.mubr.msk.bf16.mxu1 %vm7156_vm4, %v7155_v52 }
 0x31b   :  { %6590 = vmatmul.mubr.msk.bf16.vlgmr.msra.gmra.mrb[156].mxu0 %vm1672_vm3, %v3661_v4  ;;  %6611 = vmatprep.subr.bf16.mxu1 %v7155_v52 }
 0x31c   :  { %6602 = vmatpush3.bf16.msra.mxu0 %v7024_v33  ;;  %6605 = vmatprep.mubr.msk.bf16.mxu0 %vm7156_vm4, %v7155_v52 }
 0x31d   :  { %6603 = vmatprep.subr.bf16.mxu0 %v7155_v52 }
 0x31e   :  { %6612 = vmatpush3.bf16.msra.mxu1 %v7025_v22 }
 0x31f   :  { %6625 = vmatprep.subr.bf16.mxu1 %v7155_v52 }
 0x320   :  { %6604 = vmatpush3.bf16.msra.mxu0 %v7026_v28 }
 0x321   :  { %6614 = vmatmul.mubr.msk.bf16.vlgmr.msra.gmra.mrb[48].mxu1 %vm1672_vm3, %v3847_v13  ;;  %6617 = vmatprep.subr.bf16.mxu0 %v7155_v52 }
 0x322   :  { %6626 = vmatpush3.bf16.msra.mxu1 %v7027_v39  ;;  %6629 = vmatprep.mubr.msk.bf16.mxu1 %vm7156_vm4, %v7155_v52 }
 0x323   :  { %6606 = vmatmul.mubr.msk.bf16.vlgmr.msra.gmra.mrb[160].mxu0 %vm1672_vm3, %v3785_v57  ;;  %6627 = vmatprep.subr.bf16.mxu1 %v7155_v52 }
 0x324   :  { %6618 = vmatpush3.bf16.msra.mxu0 %v7028_v41  ;;  %6621 = vmatprep.mubr.msk.bf16.mxu0 %vm7156_vm4, %v7155_v52 }
 0x325   :  { %6619 = vmatprep.subr.bf16.mxu0 %v7155_v52 }
 0x326   :  { %6628 = vmatpush3.bf16.msra.mxu1 %v7029_v19 }
 0x328   :  { %6620 = vmatpush3.bf16.msra.mxu0 %v7030_v53 }
 0x329   :  { %6630 = vmatmul.mubr.msk.bf16.vlgmr.msra.gmra.mrb[52].mxu1 %vm1672_vm3, %v3971_v36 }
 0x32b   :  { %6622 = vmatmul.mubr.msk.bf16.vlgmr.msra.gmra.mrb[164].mxu0 %vm1672_vm3, %v3909_v49 }
 0x3c4   :  { %v3159_v48 = vpop.f32.mrb[24].mxu1 }
 0x3c5   :  { %v6519_v32 = vpop.f32.mrb[25].mxu1 }
 0x3c6   :  { %v3104_v50 = vpop.f32.mrb[136].mxu0  ;;  %v3162_v54 = vpop.f32.mrb[26].mxu1 }
 0x3c7   :  { %v3160_v17 = vadd.f32 %v3159_v48, %v3104_v50  ;;  %v6511_v10 = vpop.f32.mrb[137].mxu0  ;;  %v6520_v55 = vpop.f32.mrb[27].mxu1 }
 0x3c8   :  { %v3107_v56 = vpop.f32.mrb[138].mxu0 }
 0x3c9   :  { %v6512_v44 = vpop.f32.mrb[139].mxu0 }
 0x3cc   :  { %v3282_v59 = vpop.f32.mrb[28].mxu1 }
 0x3cd   :  { %v6535_v35 = vpop.f32.mrb[29].mxu1 }
 0x3ce   :  { %v3220_v43 = vpop.f32.mrb[140].mxu0  ;;  %v3285_v26 = vpop.f32.mrb[30].mxu1 }
 0x3cf   :  { %v3226_v62 = vadd.f32 %v3220_v43, %v3160_v17  ;;  %v6527_v46 = vpop.f32.mrb[141].mxu0  ;;  %v6536_v2 = vpop.f32.mrb[31].mxu1 }
 0x3d0   :  { %v3223_v3 = vpop.f32.mrb[142].mxu0  ;;  %v5787_v46 = vld [vmem:[%s8674_s7] ss:$0 sm:$0xff]  ;;  %s7159_s7 = smov [#allocation3]  }
 0x3d1   :  { %v6528_v7 = vpop.f32.mrb[143].mxu0  ;;  %v3288_v5 = vadd.f32 %v3282_v59, %v3226_v62  ;;  %s5401_s5 = sshll.u32 %s7159_s7, 4  ;;  %s5402_s5 = int_to_ptr.vmem [resolvable:$true] %s5401_s5 }
 0x3d2   :  { %s7130_s1 = scalar_lea.vmem %s5402_s5, 32  ;;  %p7135_p1 = scmp.lt.s32.totalorder %s5402_s5, %s5402_s5 }
 0x3d3   :  { %p7131_p0 = scmp.ne.s32.totalorder %s5402_s5, %s7130_s1  ;;  %p7136_p2 = scmp.lt.s32.totalorder %s7130_s1, %s7130_s1 }
 0x3d4   :  { %v3406_v0 = vpop.f32.mrb[32].mxu1 }
 0x3d5   :  { %v6551_v8 = vpop.f32.mrb[33].mxu1  ;;  %p7137_p3 = por %p7136_p2, %p7135_p1 }
 0x3d6   :  { %v3344_v9 = vpop.f32.mrb[144].mxu0  ;;  %v3409_v58 = vpop.f32.mrb[34].mxu1 }
 0x3d7   :  { %v3350_v25 = vadd.f32 %v3344_v9, %v3288_v5  ;;  %v6543_v29 = vpop.f32.mrb[145].mxu0  ;;  %v6552_v15 = vpop.f32.mrb[35].mxu1  ;;  %p7138_p4 = pnand %p7137_p3, %p7131_p0 }
 0x3d8   :  { %v3347_v11 = vpop.f32.mrb[146].mxu0  ;;  %v4072_v29 = vld [vmem:[%s8640_s9] sm:$0x1] }
 0x3d9   :  { %v6544_v14 = vpop.f32.mrb[147].mxu0  ;;  %v3412_v6 = vadd.f32 %v3406_v0, %v3350_v25  ;;  %v4077_v15 = vld [vmem:[%s8640_s9] sm:$0x1]  ;;  %4074 = vst.msk [vmem:[#allocation2] sm:$0x1] %vm4073_vm6, %v4072_v29 }
 0x3da   :  { %4078 = vst.msk [vmem:[#allocation2 + $0x5] sm:$0x1] %vm4073_vm6, %v4077_v15 }
 0x3dc   :  { %v3530_v47 = vpop.f32.mrb[36].mxu1 }
 0x3dd   :  { %v6567_v16 = vpop.f32.mrb[37].mxu1 }
 0x3de   :  { %v3468_v23 = vpop.f32.mrb[148].mxu0  ;;  %v3533_v1 = vpop.f32.mrb[38].mxu1  ;;  %v5788_v16 = vld [vmem:[%s8675_s28] ss:$0 sm:$0xff] }
 0x3df   :  { %v3474_v61 = vadd.f32 %v3468_v23, %v3412_v6  ;;  %v6559_v63 = vpop.f32.mrb[149].mxu0  ;;  %v6568_v60 = vpop.f32.mrb[39].mxu1  ;;  %v5789_v1 = vld [vmem:[%s8639_s8] ss:$0 sm:$0xff] }
 0x3e0   :  { %v3471_v20 = vpop.f32.mrb[150].mxu0  ;;  %v4083_v60 = vld [vmem:[%s8641_s10] sm:$0xff] }
 0x3e1   :  { %v6560_v51 = vpop.f32.mrb[151].mxu0  ;;  %v3536_v18 = vadd.f32 %v3530_v47, %v3474_v61 }
 0x3e4   :  { %v3654_v30 = vpop.f32.mrb[40].mxu1 }
 0x3e5   :  { %v6583_v21 = vpop.f32.mrb[41].mxu1 }
 0x3e6   :  { %v3592_v24 = vpop.f32.mrb[152].mxu0  ;;  %v3657_v27 = vpop.f32.mrb[42].mxu1 }
 0x3e7   :  { %v3598_v31 = vadd.f32 %v3592_v24, %v3536_v18  ;;  %v6575_v33 = vpop.f32.mrb[153].mxu0  ;;  %v6584_v4 = vpop.f32.mrb[43].mxu1  ;;  %v4084_v18 = vld [vmem:[%s8641_s10 + $0x8] sm:$0x3] }
 0x3e8   :  { %v3595_v34 = vpop.f32.mrb[154].mxu0 }
 0x3e9   :  { %v6576_v22 = vpop.f32.mrb[155].mxu0  ;;  %v3660_v37 = vadd.f32 %v3654_v30, %v3598_v31 }
 0x3ec   :  { %v3778_v28 = vpop.f32.mrb[44].mxu1 }
 0x3ed   :  { %v6599_v38 = vpop.f32.mrb[45].mxu1 }
 0x3ee   :  { %v3716_v39 = vpop.f32.mrb[156].mxu0  ;;  %v3781_v40 = vpop.f32.mrb[46].mxu1 }
 0x3ef   :  { %v3722_v13 = vadd.f32 %v3716_v39, %v3660_v37  ;;  %v6591_v41 = vpop.f32.mrb[157].mxu0  ;;  %v6600_v42 = vpop.f32.mrb[47].mxu1 }
 0x3f0   :  { %v3719_v57 = vpop.f32.mrb[158].mxu0  ;;  %v7031_v41 = vld [vmem:[%s8645_s14] ss:$8 sps:$4 sm:$0xff]   ;;  %v7036_v42 = vld [vmem:[%s8645_s14 + $0x14] ss:$8 sps:$4 sm:$0xff]  }
 0x3f1   :  { %v6592_v19 = vpop.f32.mrb[159].mxu0  ;;  %v3784_v45 = vadd.f32 %v3778_v28, %v3722_v13  ;;  %v7033_v13 = vld [vmem:[%s8645_s14 + $0x4] ss:$8 sps:$4 sm:$0xff]   ;;  %v7034_v57 = vld [vmem:[%s8645_s14 + $0x10] ss:$8 sps:$4 sm:$0xff]  }
 0x3f2   :  { %4186 = vmatprep.subr.bf16.mxu0 %v7033_v13  ;;  %v7039_v19 = vld [vmem:[%s8645_s14 + $0x24] ss:$8 sps:$4 sm:$0xff]  }
 0x3f3   :  { %4187 = vmatpush1.bf16.msra.mxu0 %v7031_v41 }
 0x3f4   :  { %v3902_v53 = vpop.f32.mrb[48].mxu1  ;;  %4188 = vmatprep.subr.bf16.mxu0 %v7036_v42 }
 0x3f5   :  { %v6615_v12 = vpop.f32.mrb[49].mxu1 }
 0x3f6   :  { %v3840_v36 = vpop.f32.mrb[160].mxu0  ;;  %v3905_v49 = vpop.f32.mrb[50].mxu1  ;;  %v7042_v12 = vld [vmem:[%s8645_s14 + $0x34] ss:$8 sps:$4 sm:$0xff]  }
 0x3f7   :  { %v3846_v48 = vadd.f32 %v3840_v36, %v3784_v45  ;;  %v6607_v32 = vpop.f32.mrb[161].mxu0  ;;  %v6616_v50 = vpop.f32.mrb[51].mxu1  ;;  %4189 = vmatpush1.bf16.msra.mxu0 %v7034_v57  ;;  %v7037_v45 = vld [vmem:[%s8645_s14 + $0x20] ss:$8 sps:$4 sm:$0xff]   ;;  %v7157_v36 = vmov 0  }
 0x3f8   :  { %v3843_v54 = vpop.f32.mrb[162].mxu0  ;;  %4190 = vmatprep.subr.bf16.mxu0 %v7039_v19  ;;  %4218 = vmatprep.mubr.bf16.mxu0 %v7157_v36  ;;  %v7043_v57 = vld [vmem:[%s8646_s15] sm:$0xff]  }
 0x3f9   :  { %v6608_v17 = vpop.f32.mrb[163].mxu0  ;;  %v3908_v10 = vadd.f32 %v3902_v53, %v3846_v48  ;;  %v7040_v53 = vld [vmem:[%s8645_s14 + $0x30] ss:$8 sps:$4 sm:$0xff]  }
 0x3fb   :  { %4191 = vmatpush1.bf16.msra.mxu0 %v7037_v45  ;;  %v7044_v45 = vld [vmem:[%s8646_s15 + $0x8] sm:$0xff]  }
 0x3fc   :  { %v4026_v55 = vpop.f32.mrb[52].mxu1  ;;  %4192 = vmatprep.subr.bf16.mxu0 %v7042_v12  ;;  %v7046_v12 = vld [vmem:[%s8646_s15 + $0x18] sm:$0xff]  }
 0x3fd   :  { %v6631_v56 = vpop.f32.mrb[53].mxu1 }
 0x3fe   :  { %v3964_v44 = vpop.f32.mrb[164].mxu0  ;;  %v4029_v59 = vpop.f32.mrb[54].mxu1  ;;  %v5790_v56 = vld [vmem:[%s8643_s12] ss:$0 sm:$0xff] }
 0x3ff   :  { %v3970_v35 = vadd.f32 %v3964_v44, %v3908_v10  ;;  %v6623_v43 = vpop.f32.mrb[165].mxu0  ;;  %v6632_v26 = vpop.f32.mrb[55].mxu1  ;;  %4193 = vmatpush1.bf16.msra.mxu0 %v7040_v53  ;;  %v7045_v53 = vld [vmem:[%s8646_s15 + $0x10] sm:$0xff]  }
 0x400   :  { %v3967_v62 = vpop.f32.mrb[166].mxu0  ;;  %6658 = vmatprep.subr.bf16.mxu0 %v7155_v52  ;;  %v5791_v43 = vld [vmem:[%s8644_s13] ss:$0 sm:$0xff] }
 0x401   :  { %v4032_v2 = vadd.f32 %v4026_v55, %v3970_v35  ;;  %v6624_v3 = vpop.f32.mrb[167].mxu0 }
 0x403   :  { %v4040_v7 = vadd.f32 %v5787_v46, %v4032_v2 }
 0x405   :  { %v4044_v5 = vsel %vm4043_vm5, %v4040_v7, 0.0 }
 0x406   :  { %4045 = vadd.xlane.f32.xlu0 %v4044_v5 }
 0x493   :  { %v4046_v0 = vpop.xlane.xlu0 %4045 }
 0x494   :  { %v4048_v8 = vmul.f32 0.015625, %v4046_v0 }
 0x496   :  { %v4049_v9 = vsub.f32 %v4040_v7, %v4048_v8 }
 0x498   :  { %v4050_v58 = vmul.f32 %v4049_v9, %v4049_v9 }
 0x49a   :  { %v4051_v25 = vsel %vm4043_vm5, %v4050_v58, 0.0 }
 0x49b   :  { %4052 = vadd.xlane.f32.xlu0 %v4051_v25 }
 0x528   :  { %v4053_v11 = vpop.xlane.xlu0 %4052 }
 0x529   :  { %v4054_v14 = vmul.f32 0.015625, %v4053_v11 }
 0x52b   :  { %v4055_v6 = vadd.f32 1e-05, %v4054_v14 }
 0x52d   :  { %7087 = vrsqrt.f32 %v4055_v6 }
 0x537   :  { %v7088_v47 = vpop.eup %7087 }
 0x538   :  { %v4057_v23 = vmul.f32 %v7088_v47, %v4049_v9 }
 0x53a   :  { %v4064_v61 = vmul.f32 %v5788_v16, %v4057_v23  ;;  %v8345_v16 = vld [vmem:[%s8642_s11] sm:$0xff] }
 0x53c   :  { %v4071_v63 = vadd.f32 %v5789_v1, %v4064_v61  ;;  %v8350_v1 = vld [vmem:[%s8642_s11 + $0x8] sm:$0x3] }
 0x53e   :  { %4076 = vst.msk [vmem:[#allocation2 + $0x1] sm:$0xf] %vm4075_vm7, %v4071_v63 }
 0x53f   :  { %4080 = vst.msk [vmem:[#allocation2 + $0x2] sm:$0xf0] %vm4079_vm8, %v4071_v63 }
 0x546   :  { %v4081_v20 = vld [vmem:[#allocation2] sm:$0xff]  ;;  %v4082_v51 = vld [vmem:[#allocation2 + $0x8] sm:$0x3] }
 0x547   :  { %v8277_v30 = vadd.f32 %v4083_v60, %v4081_v20  ;;  %v8281_v24 = vadd.f32 %v4084_v18, %v4082_v51 }
 0x549   :  { %v4091_v21 = vsel %vm4043_vm5, %v8277_v30, 0.0  ;;  %v4095_v27 = vsel %vm4094_vm9, %v8281_v24, 0.0 }
 0x54a   :  { %4092 = vadd.xlane.f32.xlu1 %v4091_v21 }
 0x54e   :  { %4096 = vadd.xlane.f32.xlu1 %v4095_v27 }
 0x5d7   :  { %v4093_v31 = vpop.xlane.xlu1 %4092 }
 0x5d8   :  { %v4098_v33 = vmul.f32 0.015625, %v4093_v31 }
 0x5da   :  { %v4100_v4 = vsub.f32 %v8277_v30, %v4098_v33 }
 0x5db   :  { %v4097_v34 = vpop.xlane.xlu1 %4096 }
 0x5dc   :  { %v4099_v22 = vmul.f32 0.015625, %v4097_v34  ;;  %v4102_v37 = vmul.f32 %v4100_v4, %v4100_v4 }
 0x5de   :  { %v4101_v28 = vsub.f32 %v8281_v24, %v4099_v22  ;;  %v4104_v38 = vsel %vm4043_vm5, %v4102_v37, 0.0 }
 0x5df   :  { %4105 = vadd.xlane.f32.xlu0 %v4104_v38 }
 0x5e0   :  { %v4103_v39 = vmul.f32 %v4101_v28, %v4101_v28 }
 0x5e2   :  { %v4107_v40 = vsel %vm4094_vm9, %v4103_v39, 0.0 }
 0x5e3   :  { %4108 = vadd.xlane.f32.xlu1 %v4107_v40 }
 0x66c   :  { %v4106_v49 = vpop.xlane.xlu0 %4105 }
 0x66d   :  { %v4110_v48 = vmul.f32 0.015625, %v4106_v49 }
 0x66f   :  { %v4112_v32 = vadd.f32 1e-05, %v4110_v48 }
 0x670   :  { %v4109_v50 = vpop.xlane.xlu1 %4108 }
 0x671   :  { %7089 = vrsqrt.f32 %v4112_v32  ;;  %v4111_v54 = vmul.f32 0.015625, %v4109_v50 }
 0x673   :  { %v4113_v17 = vadd.f32 1e-05, %v4111_v54 }
 0x675   :  { %7091 = vrsqrt.f32 %v4113_v17 }
 0x67b   :  { %v7090_v10 = vpop.eup %7089 }
 0x67c   :  { %v4116_v55 = vmul.f32 %v7090_v10, %v4100_v4  ;;  %v5811_v10 = vld [vmem:[%s8647_s16] ss:$0 sm:$0xff] }
 0x67e   :  { %v4124_v59 = vmul.f32 %v5790_v56, %v4116_v55 }
 0x67f   :  { %v7092_v44 = vpop.eup %7091 }
 0x680   :  { %v4117_v35 = vmul.f32 %v7092_v44, %v4101_v28  ;;  %v4132_v62 = vadd.f32 %v5791_v43, %v4124_v59 }
 0x682   :  { %v4125_v26 = vmul.f32 %v5790_v56, %v4117_v35 }
 0x684   :  { %v4133_v46 = vadd.f32 %v5791_v43, %v4125_v26 }
 0x686   :  { %v4134_v2 = vpack.c.bf16 %v4133_v46, %v4132_v62 }
 0x688   :  { %5800 = vmatmul.mubr.msk.bf16.vlgmr.msra.gmra.mrb[168].mxu0 %vm4043_vm5, %v4134_v2 }
 0x689   :  { %6666 = vmatprep.mubr.msk.bf16.mxu0 %vm7156_vm4, %v7155_v52 }
 0x75b   :  { %v4220_v3 = vpop.f32.mrb[168].mxu0 }
 0x75c   :  { %v4229_v7 = vmul.f32 0.125, %v4220_v3  ;;  %v4222_v5 = vpop.f32.mrb[169].mxu0 }
 0x75d   :  { %v4224_v0 = vpop.f32.mrb[170].mxu0 }
 0x75e   :  { %v6897_v8 = vpack.i.bf16 %v4224_v0, %v4220_v3  ;;  %v4226_v9 = vpop.f32.mrb[171].mxu0  ;;  %6637 = vmatprep.mubr.msk.f32.mxu1 %vm4043_vm5, %v4229_v7  ;;  %v4230_v6 = vmul.f32 0.125, %v4224_v0 }
 0x75f   :  { %v4347_v58 = vpack.c.bf16 %v4226_v9, %v4222_v5 }
 0x760   :  { %6898 = vrot.lane.b32.xlu0 %v6897_v8, %s7158_s4 }
 0x761   :  { %v4352_v47 = vsel %vm819_vm0, %v4347_v58, 0 }
 0x7d2   :  { %v6899_v25 = vpop.permute.xlu0 %6898 }
 0x7d3   :  { %v6901_v29 = vunpack.i.h.bf16 %v6899_v25  ;;  %v6900_v15 = vunpack.i.l.bf16 %v6899_v25  ;;  %v7047_v25 = vld [vmem:[%s8650_s19] sm:$0xff]  }
 0x7d4   :  { %6659 = vmatpush3.bf16.msra.mxu0 %v7047_v25 }
 0x7d5   :  { %v6747_v14 = vpack.c.bf16 %v6901_v29, %v6900_v15  ;;  %6660 = vmatprep.subr.bf16.mxu0 %v7155_v52  ;;  %v7048_v29 = vld [vmem:[%s8650_s19 + $0x8] sm:$0xff]   ;;  %v7049_v15 = vld [vmem:[%s8650_s19 + $0x10] sm:$0xff]  }
 0x7d7   :  { %6749 = vmatprep.subr.msk.bf16.mxu1 %vm8328_vm10, %v6747_v14 }
 0x7d8   :  { %6752 = vmatpush3.bf16.xpose.msk.msra.mxu1 %vm8328_vm10, %v6747_v14  ;;  %6661 = vmatpush3.bf16.msra.mxu0 %v7048_v29  ;;  %v7050_v14 = vld [vmem:[%s8650_s19 + $0x18] sm:$0xff]  }
 0x7d9   :  { %6640 = vmatprep.subr.bf16.mxu1 %v7155_v52  ;;  %6662 = vmatprep.subr.bf16.mxu0 %v7155_v52 }
 0x7dc   :  { %6663 = vmatpush3.bf16.msra.mxu0 %v7049_v15 }
 0x7dd   :  { %6664 = vmatprep.subr.bf16.mxu0 %v7155_v52 }
 0x7df   :  { %6638 = vmatmul.mubr.msk.f32.vlgmr.msra.gmra.mrb[56].mxu1 %vm4043_vm5, %v4230_v6  ;;  %v7051_v6 = vld [vmem:[%s8652_s21] sm:$0xff]  }
 0x7e0   :  { %6641 = vmatpush3.bf16.msra.mxu1 %v4352_v47  ;;  %6642 = vmatprep.mubr.msk.bf16.mxu1 %vm7156_vm4, %v7155_v52  ;;  %v7052_v47 = vld [vmem:[%s8652_s21 + $0x8] sm:$0xff]  }
 0x7e1   :  { %6646 = vmatprep.subr.bf16.mxu1 %v7155_v52  ;;  %6665 = vmatpush3.bf16.msra.mxu0 %v7050_v14 }
 0x8b2   :  { %v6639_v23 = vpop.f32.mrb[56].mxu1 }
 0x8b3   :  { %v4313_v61 = vpop.f32.mrb[57].mxu1  ;;  %v4319_v60 = vadd.f32 %v6639_v23, %v8350_v1 }
 0x8b4   :  { %v4314_v63 = vadd.f32 %v4313_v61, %v8345_v16 }
 0x8b5   :  { %v4327_v51 = vsel %vm4326_vm12, %v4319_v60, -inf }
 0x8b6   :  { %v4323_v20 = vsel %vm4322_vm11, %v4314_v63, -inf }
 0x8b7   :  { %4324 = vmax.xlane.f32.xlu1 %v4323_v20 }
 0x8bb   :  { %4328 = vmax.xlane.f32.xlu1 %v4327_v51 }
 0x944   :  { %v4325_v18 = vpop.xlane.xlu1 %4324 }
 0x945   :  { %v4330_v21 = vsub.f32 %v4314_v63, %v4325_v18 }
 0x947   :  { %v4332_v27 = vmul.f32 1.442695, %v4330_v21 }
 0x948   :  { %v4329_v31 = vpop.xlane.xlu1 %4328 }
 0x949   :  { %7093 = vpow2.f32 %v4332_v27  ;;  %v4331_v33 = vsub.f32 %v4319_v60, %v4329_v31  ;;  %v5812_v27 = vld [vmem:[%s8648_s17] ss:$0 sm:$0xff] }
 0x94b   :  { %v4334_v4 = vmul.f32 1.442695, %v4331_v33 }
 0x94d   :  { %7095 = vpow2.f32 %v4334_v4 }
 0x953   :  { %v7094_v34 = vpop.eup %7093 }
 0x954   :  { %v4336_v22 = vsel %vm4322_vm11, %v7094_v34, 0.0 }
 0x955   :  { %4337 = vadd.xlane.f32.xlu1 %v4336_v22 }
 0x957   :  { %v7096_v37 = vpop.eup %7095 }
 0x958   :  { %v4339_v28 = vsel %vm4326_vm12, %v7096_v37, 0.0 }
 0x959   :  { %4340 = vadd.xlane.f32.xlu1 %v4339_v28 }
 0x9e2   :  { %v4338_v38 = vpop.xlane.xlu1 %4337 }
 0x9e3   :  { %7097 = vrcp.f32 %v4338_v38 }
 0x9e6   :  { %v4341_v39 = vpop.xlane.xlu1 %4340 }
 0x9e7   :  { %7099 = vrcp.f32 %v4341_v39  ;;  %v7053_v39 = vld [vmem:[%s8652_s21 + $0x10] sm:$0xff]  }
 0x9ed   :  { %v7098_v40 = vpop.eup %7097 }
 0x9ee   :  { %v4344_v41 = vmul.f32 %v7098_v40, %v7094_v34  ;;  %v5813_v34 = vld [vmem:[%s8649_s18] ss:$0 sm:$0xff]  ;;  %v7054_v40 = vld [vmem:[%s8652_s21 + $0x18] sm:$0xff]  }
 0x9f1   :  { %v7100_v13 = vpop.eup %7099 }
 0x9f2   :  { %v4345_v42 = vmul.f32 %v7100_v13, %v7096_v37  ;;  %v7055_v13 = vld [vmem:[%s8652_s21 + $0x20] sm:$0xff]  }
 0x9f4   :  { %v4346_v19 = vpack.c.bf16 %v4345_v42, %v4344_v41  ;;  %v7057_v41 = vld [vmem:[%s8652_s21 + $0x30] sm:$0xff]   ;;  %v7058_v42 = vld [vmem:[%s8652_s21 + $0x38] sm:$0xff]  }
 0x9f6   :  { %6643 = vmatmul.mubr.msk.bf16.vlgmr.msra.gmra.mrb[60].mxu1 %vm4322_vm11, %v4346_v19 }
 0x9f7   :  { %6647 = vmatpush3.bf16.msra.mxu1 %v7043_v57  ;;  %6654 = vmatprep.mubr.msk.bf16.mxu1 %vm7156_vm4, %v7155_v52  ;;  %v5814_v57 = vld [vmem:[%s8651_s20] ss:$0 sm:$0xff] }
 0x9f8   :  { %6648 = vmatprep.subr.bf16.mxu1 %v7155_v52 }
 0x9fb   :  { %6649 = vmatpush3.bf16.msra.mxu1 %v7044_v45 }
 0x9fc   :  { %6650 = vmatprep.subr.bf16.mxu1 %v7155_v52 }
 0x9ff   :  { %6651 = vmatpush3.bf16.msra.mxu1 %v7045_v53 }
 0xa00   :  { %6652 = vmatprep.subr.bf16.mxu1 %v7155_v52 }
 0xa03   :  { %6653 = vmatpush3.bf16.msra.mxu1 %v7046_v12 }
 0xa04   :  { %6670 = vmatprep.subr.bf16.mxu1 %v7155_v52 }
 0xac9   :  { %v4388_v49 = vpop.f32.mrb[60].mxu1 }
 0xaca   :  { %v6644_v48 = vpop.f32.mrb[61].mxu1 }
 0xacb   :  { %v4391_v32 = vpop.f32.mrb[62].mxu1 }
 0xacc   :  { %v4395_v50 = vpack.c.bf16 %v4391_v32, %v4388_v49  ;;  %v6645_v54 = vpop.f32.mrb[63].mxu1 }
 0xace   :  { %6655 = vmatmul.mubr.msk.bf16.vlgmr.msra.gmra.mrb[64].mxu1 %vm4043_vm5, %v4395_v50 }
 0xacf   :  { %6686 = vmatprep.mubr.msk.bf16.mxu1 %vm7156_vm4, %v7155_v52  ;;  %6671 = vmatpush3.bf16.msra.mxu1 %v7051_v6 }
 0xad0   :  { %6672 = vmatprep.subr.bf16.mxu1 %v7155_v52 }
 0xad3   :  { %6673 = vmatpush3.bf16.msra.mxu1 %v7052_v47 }
 0xad4   :  { %6674 = vmatprep.subr.bf16.mxu1 %v7155_v52 }
 0xad7   :  { %6675 = vmatpush3.bf16.msra.mxu1 %v7053_v39 }
 0xad8   :  { %6676 = vmatprep.subr.bf16.mxu1 %v7155_v52 }
 0xadb   :  { %6677 = vmatpush3.bf16.msra.mxu1 %v7054_v40  ;;  %v5831_v40 = vld [vmem:[%s8643_s12 + $0x1] ss:$0 sm:$0xff] }
 0xadc   :  { %6678 = vmatprep.subr.bf16.mxu1 %v7155_v52 }
 0xadf   :  { %6679 = vmatpush3.bf16.msra.mxu1 %v7055_v13 }
 0xae0   :  { %6680 = vmatprep.subr.bf16.mxu1 %v7155_v52 }
 0xba1   :  { %v4465_v17 = vpop.f32.mrb[64].mxu1 }
 0xba2   :  { %v4472_v55 = vadd.f32 %v4465_v17, %v8277_v30  ;;  %v6656_v56 = vpop.f32.mrb[65].mxu1 }
 0xba3   :  { %v4468_v44 = vpop.f32.mrb[66].mxu1 }
 0xba4   :  { %v8384_v59 = vadd.f32 %v5811_v10, %v4472_v55  ;;  %v4473_v35 = vadd.f32 %v4468_v44, %v8281_v24  ;;  %v6657_v43 = vpop.f32.mrb[67].mxu1 }
 0xba6   :  { %v8387_v26 = vadd.f32 %v5811_v10, %v4473_v35  ;;  %v4485_v62 = vsel %vm4043_vm5, %v8384_v59, 0.0 }
 0xba7   :  { %4486 = vadd.xlane.f32.xlu1 %v4485_v62 }
 0xba8   :  { %v4488_v46 = vsel %vm4094_vm9, %v8387_v26, 0.0 }
 0xbab   :  { %4489 = vadd.xlane.f32.xlu1 %v4488_v46 }
 0xc34   :  { %v4487_v2 = vpop.xlane.xlu1 %4486 }
 0xc35   :  { %v4491_v3 = vmul.f32 0.015625, %v4487_v2  ;;  %v5828_v2 = vld [vmem:[%s8653_s22] ss:$0 sm:$0xff] }
 0xc37   :  { %v4493_v30 = vsub.f32 %v8384_v59, %v4491_v3 }
 0xc38   :  { %v4490_v7 = vpop.xlane.xlu1 %4489 }
 0xc39   :  { %v4492_v5 = vmul.f32 0.015625, %v4490_v7  ;;  %v4495_v0 = vmul.f32 %v4493_v30, %v4493_v30 }
 0xc3b   :  { %v4494_v24 = vsub.f32 %v8387_v26, %v4492_v5  ;;  %v4497_v8 = vsel %vm4043_vm5, %v4495_v0, 0.0 }
 0xc3c   :  { %4498 = vadd.xlane.f32.xlu0 %v4497_v8 }
 0xc3d   :  { %v4496_v9 = vmul.f32 %v4494_v24, %v4494_v24 }
 0xc3f   :  { %v4500_v58 = vsel %vm4094_vm9, %v4496_v9, 0.0 }
 0xc40   :  { %4501 = vadd.xlane.f32.xlu1 %v4500_v58 }
 0xcc9   :  { %v4499_v23 = vpop.xlane.xlu0 %4498 }
 0xcca   :  { %v4503_v61 = vmul.f32 0.015625, %v4499_v23 }
 0xccc   :  { %v4505_v63 = vadd.f32 1e-05, %v4503_v61 }
 0xccd   :  { %v4502_v60 = vpop.xlane.xlu1 %4501 }
 0xcce   :  { %7101 = vrsqrt.f32 %v4505_v63  ;;  %v4504_v20 = vmul.f32 0.015625, %v4502_v60  ;;  %v7061_v63 = vld [vmem:[%s8645_s14 + $0x44] ss:$8 sps:$4 sm:$0xff]   ;;  %v7059_v60 = vld [vmem:[%s8645_s14 + $0x40] ss:$8 sps:$4 sm:$0xff]  }
 0xccf   :  { %4837 = vmatprep.subr.bf16.mxu0 %v7061_v63 }
 0xcd0   :  { %v4506_v51 = vadd.f32 1e-05, %v4504_v20  ;;  %v7064_v20 = vld [vmem:[%s8645_s14 + $0x54] ss:$8 sps:$4 sm:$0xff]  }
 0xcd2   :  { %7103 = vrsqrt.f32 %v4506_v51  ;;  %v7062_v51 = vld [vmem:[%s8645_s14 + $0x50] ss:$8 sps:$4 sm:$0xff]  }
 0xcd8   :  { %v7102_v18 = vpop.eup %7101 }
 0xcd9   :  { %v4509_v21 = vmul.f32 %v7102_v18, %v4493_v30  ;;  %v7067_v18 = vld [vmem:[%s8645_s14 + $0x64] ss:$8 sps:$4 sm:$0xff]  }
 0xcdb   :  { %v4517_v33 = vmul.f32 %v5812_v27, %v4509_v21  ;;  %v7065_v21 = vld [vmem:[%s8645_s14 + $0x60] ss:$8 sps:$4 sm:$0xff]  }
 0xcdc   :  { %v7104_v31 = vpop.eup %7103 }
 0xcdd   :  { %v4510_v4 = vmul.f32 %v7104_v31, %v4494_v24  ;;  %v4525_v37 = vadd.f32 %v5813_v34, %v4517_v33  ;;  %v7070_v31 = vld [vmem:[%s8645_s14 + $0x74] ss:$8 sps:$4 sm:$0xff]  }
 0xcdf   :  { %v4518_v22 = vmul.f32 %v5812_v27, %v4510_v4  ;;  %v7068_v27 = vld [vmem:[%s8645_s14 + $0x70] ss:$8 sps:$4 sm:$0xff]  }
 0xce1   :  { %v4526_v28 = vadd.f32 %v5813_v34, %v4518_v22 }
 0xce3   :  { %v4527_v38 = vpack.c.bf16 %v4526_v28, %v4525_v37 }
 0xce5   :  { %6667 = vmatmul.mubr.msk.bf16.vlgmr.msra.gmra.mrb[172].mxu0 %vm4043_vm5, %v4527_v38 }
 0xce6   :  { %4869 = vmatprep.mubr.bf16.mxu0 %v7157_v36  ;;  %v7056_v36 = vld [vmem:[%s8652_s21 + $0x28] sm:$0xff]   ;;  %4838 = vmatpush1.bf16.msra.mxu0 %v7059_v60 }
 0xce7   :  { %6681 = vmatpush3.bf16.msra.mxu1 %v7056_v36  ;;  %4839 = vmatprep.subr.bf16.mxu0 %v7064_v20  ;;  %v7072_v60 = vld [vmem:[%s8646_s15 + $0x28] sm:$0xff]   ;;  %v7073_v20 = vld [vmem:[%s8646_s15 + $0x30] sm:$0xff]  }
 0xce8   :  { %6682 = vmatprep.subr.bf16.mxu1 %v7155_v52 }
 0xcea   :  { %4840 = vmatpush1.bf16.msra.mxu0 %v7062_v51  ;;  %v7074_v51 = vld [vmem:[%s8646_s15 + $0x38] sm:$0xff]  }
 0xceb   :  { %6683 = vmatpush3.bf16.msra.mxu1 %v7057_v41  ;;  %4841 = vmatprep.subr.bf16.mxu0 %v7067_v18 }
 0xcec   :  { %6684 = vmatprep.subr.bf16.mxu1 %v7155_v52 }
 0xcee   :  { %4842 = vmatpush1.bf16.msra.mxu0 %v7065_v21 }
 0xcef   :  { %6685 = vmatpush3.bf16.msra.mxu1 %v7058_v42  ;;  %4843 = vmatprep.subr.bf16.mxu0 %v7070_v31  ;;  %v5832_v42 = vld [vmem:[%s8644_s13 + $0x1] ss:$0 sm:$0xff] }
 0xcf0   :  { %6715 = vmatprep.subr.bf16.mxu1 %v7155_v52 }
 0xcf2   :  { %4844 = vmatpush1.bf16.msra.mxu0 %v7068_v27 }
 0xdb8   :  { %v4604_v19 = vpop.f32.mrb[172].mxu0 }
 0xdb9   :  { %v4605_v45 = vadd.f32 %v5814_v57, %v4604_v19  ;;  %v6668_v53 = vpop.f32.mrb[173].mxu0 }
 0xdba   :  { %v4607_v12 = vpop.f32.mrb[174].mxu0 }
 0xdbb   :  { %v4613_v49 = vmul.f32 0.70710677, %v4605_v45  ;;  %v4608_v48 = vadd.f32 %v5814_v57, %v4607_v12  ;;  %v6669_v32 = vpop.f32.mrb[175].mxu0  ;;  %v4611_v55 = vmul.f32 0.5, %v4605_v45 }
 0xdbd   :  { %7105 = verf.f32 %v4613_v49  ;;  %v4614_v50 = vmul.f32 0.70710677, %v4608_v48  ;;  %v4612_v56 = vmul.f32 0.5, %v4608_v48 }
 0xdbf   :  { %7107 = verf.f32 %v4614_v50 }
 0xdc7   :  { %v7106_v54 = vpop.eup %7105 }
 0xdc8   :  { %v4617_v17 = vadd.f32 1.0, %v7106_v54 }
 0xdc9   :  { %v7108_v10 = vpop.eup %7107 }
 0xdca   :  { %v4618_v44 = vadd.f32 1.0, %v7108_v10  ;;  %v4619_v35 = vmul.f32 %v4617_v17, %v4611_v55 }
 0xdcc   :  { %v4620_v43 = vmul.f32 %v4618_v44, %v4612_v56 }
 0xdce   :  { %v4621_v62 = vpack.c.bf16 %v4620_v43, %v4619_v35 }
 0xdd0   :  { %6687 = vmatmul.mubr.bf16.vlgmr.msra.gmra.mrb[68].mxu1 %v4621_v62 }
 0xdd1   :  { %6723 = vmatprep.mubr.msk.bf16.mxu1 %vm7156_vm4, %v7155_v52 }
 0xea3   :  { %v4720_v46 = vpop.f32.mrb[68].mxu1 }
 0xea4   :  { %v4727_v3 = vadd.f32 %v4720_v46, %v8384_v59  ;;  %v6688_v30 = vpop.f32.mrb[69].mxu1 }
 0xea5   :  { %v4723_v7 = vpop.f32.mrb[70].mxu1 }
 0xea6   :  { %v8461_v5 = vadd.f32 %v5828_v2, %v4727_v3  ;;  %v4728_v0 = vadd.f32 %v4723_v7, %v8387_v26  ;;  %v6689_v24 = vpop.f32.mrb[71].mxu1 }
 0xea8   :  { %v8464_v8 = vadd.f32 %v5828_v2, %v4728_v0  ;;  %v4742_v9 = vsel %vm4043_vm5, %v8461_v5, 0.0 }
 0xea9   :  { %4743 = vadd.xlane.f32.xlu1 %v4742_v9 }
 0xeaa   :  { %v4745_v58 = vsel %vm4094_vm9, %v8464_v8, 0.0 }
 0xead   :  { %4746 = vadd.xlane.f32.xlu1 %v4745_v58 }
 0xf36   :  { %v4744_v25 = vpop.xlane.xlu1 %4743 }
 0xf37   :  { %v4748_v29 = vmul.f32 0.015625, %v4744_v25 }
 0xf39   :  { %v4750_v59 = vsub.f32 %v8461_v5, %v4748_v29 }
 0xf3a   :  { %v4747_v15 = vpop.xlane.xlu1 %4746 }
 0xf3b   :  { %v4749_v14 = vmul.f32 0.015625, %v4747_v15  ;;  %v4752_v6 = vmul.f32 %v4750_v59, %v4750_v59 }
 0xf3d   :  { %v4751_v26 = vsub.f32 %v8464_v8, %v4749_v14  ;;  %v4754_v47 = vsel %vm4043_vm5, %v4752_v6, 0.0 }
 0xf3e   :  { %4755 = vadd.xlane.f32.xlu1 %v4754_v47 }
 0xf3f   :  { %v4753_v23 = vmul.f32 %v4751_v26, %v4751_v26 }
 0xf41   :  { %v4757_v61 = vsel %vm4094_vm9, %v4753_v23, 0.0 }
 0xf42   :  { %4758 = vadd.xlane.f32.xlu1 %v4757_v61  ;;  %v7071_v61 = vld [vmem:[%s8646_s15 + $0x20] sm:$0xff]  }
 0xfcb   :  { %v4756_v33 = vpop.xlane.xlu1 %4755 }
 0xfcc   :  { %v4760_v4 = vmul.f32 0.015625, %v4756_v33 }
 0xfce   :  { %v4762_v34 = vadd.f32 1e-05, %v4760_v4 }
 0xfcf   :  { %v4759_v22 = vpop.xlane.xlu1 %4758 }
 0xfd0   :  { %7109 = vrsqrt.f32 %v4762_v34  ;;  %v4761_v37 = vmul.f32 0.015625, %v4759_v22  ;;  %v5869_v34 = vld [vmem:[%s8647_s16 + $0x1] ss:$0 sm:$0xff] }
 0xfd2   :  { %v4763_v28 = vadd.f32 1e-05, %v4761_v37 }
 0xfd4   :  { %7111 = vrsqrt.f32 %v4763_v28 }
 0xfda   :  { %v7110_v38 = vpop.eup %7109 }
 0xfdb   :  { %v4766_v39 = vmul.f32 %v7110_v38, %v4750_v59 }
 0xfdd   :  { %v4774_v36 = vmul.f32 %v5831_v40, %v4766_v39 }
 0xfde   :  { %v7112_v13 = vpop.eup %7111 }
 0xfdf   :  { %v4767_v41 = vmul.f32 %v7112_v13, %v4751_v26  ;;  %v4782_v19 = vadd.f32 %v5832_v42, %v4774_v36 }
 0xfe1   :  { %v4775_v57 = vmul.f32 %v5831_v40, %v4767_v41 }
 0xfe3   :  { %v4783_v45 = vadd.f32 %v5832_v42, %v4775_v57 }
 0xfe5   :  { %v4784_v53 = vpack.c.bf16 %v4783_v45, %v4782_v19 }
 0xfe7   :  { %5849 = vmatmul.mubr.msk.bf16.vlgmr.msra.gmra.mrb[176].mxu0 %vm4043_vm5, %v4784_v53 }
0x10ba   :  { %v4871_v12 = vpop.f32.mrb[176].mxu0 }
0x10bb   :  { %v4880_v49 = vmul.f32 0.125, %v4871_v12  ;;  %v4873_v48 = vpop.f32.mrb[177].mxu0 }
0x10bc   :  { %v4875_v32 = vpop.f32.mrb[178].mxu0 }
0x10bd   :  { %v6902_v50 = vpack.i.bf16 %v4875_v32, %v4871_v12  ;;  %v4877_v54 = vpop.f32.mrb[179].mxu0  ;;  %6694 = vmatprep.mubr.msk.f32.mxu0 %vm4043_vm5, %v4880_v49  ;;  %v4881_v35 = vmul.f32 0.125, %v4875_v32  ;;  %v7075_v32 = vld [vmem:[%s8650_s19 + $0x20] sm:$0xff]  }
0x10be   :  { %v4996_v17 = vpack.c.bf16 %v4877_v54, %v4873_v48  ;;  %6716 = vmatpush3.bf16.msra.mxu1 %v7075_v32  ;;  %v7077_v54 = vld [vmem:[%s8650_s19 + $0x30] sm:$0xff]  }
0x10bf   :  { %6903 = vrot.lane.b32.xlu1 %v6902_v50, %s7158_s4  ;;  %6717 = vmatprep.subr.bf16.mxu1 %v7155_v52  ;;  %v7076_v50 = vld [vmem:[%s8650_s19 + $0x28] sm:$0xff]  }
0x10c0   :  { %v5001_v43 = vsel %vm819_vm0, %v4996_v17, 0  ;;  %v7078_v17 = vld [vmem:[%s8650_s19 + $0x38] sm:$0xff]  }
0x10c2   :  { %6718 = vmatpush3.bf16.msra.mxu1 %v7076_v50 }
0x10c3   :  { %6719 = vmatprep.subr.bf16.mxu1 %v7155_v52 }
0x10c6   :  { %6720 = vmatpush3.bf16.msra.mxu1 %v7077_v54 }
0x10c7   :  { %6721 = vmatprep.subr.bf16.mxu1 %v7155_v52 }
0x10ca   :  { %6722 = vmatpush3.bf16.msra.mxu1 %v7078_v17 }
0x1131   :  { %v6904_v10 = vpop.permute.xlu1 %6903 }
0x1132   :  { %v6906_v55 = vunpack.i.h.bf16 %v6904_v10  ;;  %v6905_v56 = vunpack.i.l.bf16 %v6904_v10  ;;  %v7079_v10 = vld [vmem:[%s8652_s21 + $0x40] sm:$0xff]  }
0x1134   :  { %v6753_v44 = vpack.c.bf16 %v6906_v55, %v6905_v56  ;;  %v7080_v55 = vld [vmem:[%s8652_s21 + $0x48] sm:$0xff]  }
0x1136   :  { %6755 = vmatprep.subr.msk.bf16.mxu0 %vm8328_vm10, %v6753_v44 }
0x1137   :  { %6758 = vmatpush3.bf16.xpose.msk.msra.mxu0 %vm8328_vm10, %v6753_v44 }
0x1138   :  { %6697 = vmatprep.subr.bf16.mxu0 %v7155_v52 }
0x113e   :  { %6695 = vmatmul.mubr.msk.f32.vlgmr.msra.gmra.mrb[180].mxu0 %vm4043_vm5, %v4881_v35 }
0x113f   :  { %6698 = vmatpush3.bf16.msra.mxu0 %v5001_v43  ;;  %6699 = vmatprep.mubr.msk.bf16.mxu0 %vm7156_vm4, %v7155_v52 }
0x1140   :  { %6703 = vmatprep.subr.bf16.mxu0 %v7155_v52 }
0x1211   :  { %v6696_v62 = vpop.f32.mrb[180].mxu0 }
0x1212   :  { %v4964_v46 = vpop.f32.mrb[181].mxu0  ;;  %v4970_v11 = vadd.f32 %v6696_v62, %v8350_v1 }
0x1213   :  { %v4965_v2 = vadd.f32 %v4964_v46, %v8345_v16 }
0x1214   :  { %v4976_v30 = vsel %vm4326_vm12, %v4970_v11, -inf }
0x1215   :  { %v4973_v3 = vsel %vm4322_vm11, %v4965_v2, -inf }
0x1216   :  { %4974 = vmax.xlane.f32.xlu0 %v4973_v3  ;;  %v5872_v3 = vld [vmem:[%s8648_s17 + $0x1] ss:$0 sm:$0xff] }
0x121a   :  { %4977 = vmax.xlane.f32.xlu0 %v4976_v30 }
0x12a3   :  { %v4975_v7 = vpop.xlane.xlu0 %4974 }
0x12a4   :  { %v4979_v0 = vsub.f32 %v4965_v2, %v4975_v7 }
0x12a6   :  { %v4981_v24 = vmul.f32 1.442695, %v4979_v0 }
0x12a7   :  { %v4978_v9 = vpop.xlane.xlu0 %4977 }
0x12a8   :  { %7113 = vpow2.f32 %v4981_v24  ;;  %v4980_v58 = vsub.f32 %v4970_v11, %v4978_v9  ;;  %v5873_v24 = vld [vmem:[%s8649_s18 + $0x1] ss:$0 sm:$0xff] }
0x12aa   :  { %v4983_v25 = vmul.f32 1.442695, %v4980_v58 }
0x12ac   :  { %7115 = vpow2.f32 %v4983_v25 }
0x12b2   :  { %v7114_v29 = vpop.eup %7113 }
0x12b3   :  { %v4985_v59 = vsel %vm4322_vm11, %v7114_v29, 0.0 }
0x12b4   :  { %4986 = vadd.xlane.f32.xlu0 %v4985_v59  ;;  %v7081_v59 = vld [vmem:[%s8652_s21 + $0x50] sm:$0xff]  }
0x12b6   :  { %v7116_v16 = vpop.eup %7115 }
0x12b7   :  { %v4988_v1 = vsel %vm4326_vm12, %v7116_v16, 0.0 }
0x12b8   :  { %4989 = vadd.xlane.f32.xlu1 %v4988_v1  ;;  %v7083_v1 = vld [vmem:[%s8652_s21 + $0x60] sm:$0xff]  }
0x1341   :  { %v4987_v15 = vpop.xlane.xlu0 %4986 }
0x1342   :  { %7117 = vrcp.f32 %v4987_v15  ;;  %v7084_v15 = vld [vmem:[%s8652_s21 + $0x68] sm:$0xff]  }
0x1345   :  { %v4990_v14 = vpop.xlane.xlu1 %4989 }
0x1346   :  { %7119 = vrcp.f32 %v4990_v14  ;;  %v7085_v14 = vld [vmem:[%s8652_s21 + $0x70] sm:$0xff]  }
0x134c   :  { %v7118_v6 = vpop.eup %7117 }
0x134d   :  { %v4993_v47 = vmul.f32 %v7118_v6, %v7114_v29  ;;  %v7086_v6 = vld [vmem:[%s8652_s21 + $0x78] sm:$0xff]  }
0x1350   :  { %v7120_v26 = vpop.eup %7119 }
0x1351   :  { %v4994_v23 = vmul.f32 %v7120_v26, %v7116_v16  ;;  %v7082_v16 = vld [vmem:[%s8652_s21 + $0x58] sm:$0xff]   ;;  %v5883_v26 = vld [vmem:[%s8651_s20 + $0x1] ss:$0 sm:$0xff] }
0x1353   :  { %v4995_v63 = vpack.c.bf16 %v4994_v23, %v4993_v47 }
0x1355   :  { %6700 = vmatmul.mubr.msk.bf16.vlgmr.msra.gmra.mrb[184].mxu0 %vm4322_vm11, %v4995_v63 }
0x1356   :  { %6704 = vmatpush3.bf16.msra.mxu0 %v7071_v61  ;;  %6711 = vmatprep.mubr.msk.bf16.mxu0 %vm7156_vm4, %v7155_v52 }
0x1357   :  { %6705 = vmatprep.subr.bf16.mxu0 %v7155_v52 }
0x135a   :  { %6706 = vmatpush3.bf16.msra.mxu0 %v7072_v60 }
0x135b   :  { %6707 = vmatprep.subr.bf16.mxu0 %v7155_v52 }
0x135e   :  { %6708 = vmatpush3.bf16.msra.mxu0 %v7073_v20 }
0x135f   :  { %6709 = vmatprep.subr.bf16.mxu0 %v7155_v52 }
0x1362   :  { %6710 = vmatpush3.bf16.msra.mxu0 %v7074_v51 }
0x1363   :  { %6727 = vmatprep.subr.bf16.mxu0 %v7155_v52 }
0x1428   :  { %v5037_v18 = vpop.f32.mrb[184].mxu0 }
0x1429   :  { %v6701_v21 = vpop.f32.mrb[185].mxu0 }
0x142a   :  { %v5040_v27 = vpop.f32.mrb[186].mxu0 }
0x142b   :  { %v5044_v31 = vpack.c.bf16 %v5040_v27, %v5037_v18  ;;  %v6702_v33 = vpop.f32.mrb[187].mxu0 }
0x142d   :  { %6712 = vmatmul.mubr.msk.bf16.vlgmr.msra.gmra.mrb[188].mxu0 %vm4043_vm5, %v5044_v31 }
0x142e   :  { %6743 = vmatprep.mubr.msk.bf16.mxu0 %vm7156_vm4, %v7155_v52  ;;  %6728 = vmatpush3.bf16.msra.mxu0 %v7079_v10 }
0x142f   :  { %6729 = vmatprep.subr.bf16.mxu0 %v7155_v52 }
0x1432   :  { %6730 = vmatpush3.bf16.msra.mxu0 %v7080_v55 }
0x1433   :  { %6731 = vmatprep.subr.bf16.mxu0 %v7155_v52 }
0x1436   :  { %6732 = vmatpush3.bf16.msra.mxu0 %v7081_v59 }
0x1437   :  { %6733 = vmatprep.subr.bf16.mxu0 %v7155_v52 }
0x143a   :  { %6734 = vmatpush3.bf16.msra.mxu0 %v7082_v16 }
0x143b   :  { %6735 = vmatprep.subr.bf16.mxu0 %v7155_v52 }
0x143e   :  { %6736 = vmatpush3.bf16.msra.mxu0 %v7083_v1 }
0x143f   :  { %6737 = vmatprep.subr.bf16.mxu0 %v7155_v52 }
0x1442   :  { %6738 = vmatpush3.bf16.msra.mxu0 %v7084_v15 }
0x1443   :  { %6739 = vmatprep.subr.bf16.mxu0 %v7155_v52 }
0x1446   :  { %6740 = vmatpush3.bf16.msra.mxu0 %v7085_v14 }
0x1447   :  { %6741 = vmatprep.subr.bf16.mxu0 %v7155_v52 }
0x144a   :  { %6742 = vmatpush3.bf16.msra.mxu0 %v7086_v6 }
0x1500   :  { %v5115_v4 = vpop.f32.mrb[188].mxu0 }
0x1501   :  { %v5122_v22 = vadd.f32 %v5115_v4, %v8461_v5  ;;  %v6713_v37 = vpop.f32.mrb[189].mxu0 }
0x1502   :  { %v5118_v28 = vpop.f32.mrb[190].mxu0 }
0x1503   :  { %v8549_v38 = vadd.f32 %v5869_v34, %v5122_v22  ;;  %v5123_v39 = vadd.f32 %v5118_v28, %v8464_v8  ;;  %v6714_v40 = vpop.f32.mrb[191].mxu0 }
0x1505   :  { %v5138_v13 = vsel %vm4043_vm5, %v8549_v38, 0.0  ;;  %v5133_v36 = vadd.f32 %v5869_v34, %v5123_v39  ;;  %v5914_v39 = vld [vmem:[%s8653_s22 + $0x1] ss:$0 sm:$0xff] }
0x1506   :  { %5139 = vadd.xlane.f32.xlu0 %v5138_v13 }
0x1507   :  { %v5141_v41 = vsel %vm4094_vm9, %v5133_v36, 0.0 }
0x150a   :  { %5142 = vadd.xlane.f32.xlu0 %v5141_v41 }
0x1593   :  { %v5140_v42 = vpop.xlane.xlu0 %5139 }
0x1594   :  { %v5144_v57 = vmul.f32 0.015625, %v5140_v42 }
0x1596   :  { %v5146_v19 = vsub.f32 %v8549_v38, %v5144_v57 }
0x1597   :  { %v5143_v5 = vpop.xlane.xlu0 %5142 }
0x1598   :  { %v5145_v45 = vmul.f32 0.015625, %v5143_v5  ;;  %v5148_v53 = vmul.f32 %v5146_v19, %v5146_v19 }
0x159a   :  { %v5147_v12 = vsub.f32 %v5133_v36, %v5145_v45  ;;  %v5150_v49 = vsel %vm4043_vm5, %v5148_v53, 0.0 }
0x159b   :  { %5151 = vadd.xlane.f32.xlu0 %v5150_v49 }
0x159c   :  { %v5149_v8 = vmul.f32 %v5147_v12, %v5147_v12 }
0x159e   :  { %v5153_v48 = vsel %vm4094_vm9, %v5149_v8, 0.0 }
0x159f   :  { %5154 = vadd.xlane.f32.xlu0 %v5153_v48 }
0x1628   :  { %v5152_v56 = vpop.xlane.xlu0 %5151 }
0x1629   :  { %v5156_v44 = vmul.f32 0.015625, %v5152_v56 }
0x162b   :  { %v5158_v35 = vadd.f32 1e-05, %v5156_v44 }
0x162c   :  { %v5155_v43 = vpop.xlane.xlu0 %5154 }
0x162d   :  { %7121 = vrsqrt.f32 %v5158_v35  ;;  %v5157_v62 = vmul.f32 0.015625, %v5155_v43 }
0x162f   :  { %v5159_v46 = vadd.f32 1e-05, %v5157_v62 }
0x1631   :  { %7123 = vrsqrt.f32 %v5159_v46 }
0x1637   :  { %v7122_v2 = vpop.eup %7121 }
0x1638   :  { %v5162_v11 = vmul.f32 %v7122_v2, %v5146_v19 }
0x163a   :  { %v5170_v7 = vmul.f32 %v5872_v3, %v5162_v11 }
0x163b   :  { %v7124_v30 = vpop.eup %7123 }
0x163c   :  { %v5163_v0 = vmul.f32 %v7124_v30, %v5147_v12  ;;  %v5178_v58 = vadd.f32 %v5873_v24, %v5170_v7 }
0x163e   :  { %v5171_v9 = vmul.f32 %v5872_v3, %v5163_v0 }
0x1640   :  { %v5179_v25 = vadd.f32 %v5873_v24, %v5171_v9 }
0x1642   :  { %v5180_v29 = vpack.c.bf16 %v5179_v25, %v5178_v58 }
0x1644   :  { %6724 = vmatmul.mubr.msk.bf16.vlgmr.msra.gmra.mrb[72].mxu1 %vm4043_vm5, %v5180_v29 }
0x1717   :  { %v5259_v47 = vpop.f32.mrb[72].mxu1 }
0x1718   :  { %v5260_v23 = vadd.f32 %v5883_v26, %v5259_v47  ;;  %v6725_v61 = vpop.f32.mrb[73].mxu1 }
0x1719   :  { %v5262_v63 = vpop.f32.mrb[74].mxu1 }
0x171a   :  { %v5268_v60 = vmul.f32 0.70710677, %v5260_v23  ;;  %v5263_v20 = vadd.f32 %v5883_v26, %v5262_v63  ;;  %v6726_v51 = vpop.f32.mrb[75].mxu1  ;;  %v5266_v31 = vmul.f32 0.5, %v5260_v23 }
0x171c   :  { %7125 = verf.f32 %v5268_v60  ;;  %v5269_v18 = vmul.f32 0.70710677, %v5263_v20  ;;  %v5267_v33 = vmul.f32 0.5, %v5263_v20 }
0x171e   :  { %7127 = verf.f32 %v5269_v18 }
0x1726   :  { %v7126_v52 = vpop.eup %7125 }
0x1727   :  { %v5272_v21 = vadd.f32 1.0, %v7126_v52 }
0x1728   :  { %v7128_v27 = vpop.eup %7127 }
0x1729   :  { %v5273_v4 = vadd.f32 1.0, %v7128_v27  ;;  %v5274_v34 = vmul.f32 %v5272_v21, %v5266_v31 }
0x172b   :  { %v5275_v22 = vmul.f32 %v5273_v4, %v5267_v33 }
0x172d   :  { %v5276_v37 = vpack.c.bf16 %v5275_v22, %v5274_v34 }
0x172f   :  { %6744 = vmatmul.mubr.bf16.vlgmr.msra.gmra.mrb[192].mxu0 %v5276_v37 }
0x1802   :  { %v5376_v28 = vpop.f32.mrb[192].mxu0 }
0x1803   :  { %v5382_v40 = vadd.f32 %v5376_v28, %v8549_v38  ;;  %v6745_v13 = vpop.f32.mrb[193].mxu0 }
0x1804   :  { %v5379_v36 = vpop.f32.mrb[194].mxu0 }
0x1805   :  { %v5391_v41 = vadd.f32 %v5914_v39, %v5382_v40  ;;  %v6746_v42 = vpop.f32.mrb[195].mxu0 }
0x1807   :  { %5392 = vst.msk [vmem:[#allocation3] sm:$0x1] %vm4073_vm6, %v5391_v41 }
0x1808   :  { %5394 = vst.msk [vmem:[#allocation3 - $0x4] sm:$0x20] %vm5393_vm13, %v5391_v41 }
0x1809   :  { %7141 = shalt.err (!%p7138_p4)
}
0x180a   :  { %s7142_s26 = scalar_lea.hbm %s8654_s23, 32 }
0x180b   :  { %p7143_p5 = scmp.ne.s32.totalorder %s8654_s23, %s7142_s26  ;;  %p7146_p6 = scmp.lt.u32.totalorder %s7142_s26, %s8654_s23 }
0x180d   :  { %p7148_p7 = pnand %p7146_p6, %p7143_p5 }
0x180f   :  { %7151 = shalt.err (!%p7148_p7)
}
0x1810   :  { %5404 = dma.vmem_to_hbm [thread:$0]  %s5402_s5, 32, %s8654_s23, [#allocation4]  }
0x1811   :  { %7152 = dma.done.wait [#allocation4], 32  }
0x1812   :  { %7153 = vsyncadd [#allocation4], 4294967264 }
0x1813   :  { %5408 = vsyncpa [#allocation4], 1 }

</bundles_post_ra>
